<compile_context>
chip_gen: v7x
topology: tpu7x:2x2x1
jax: 0.10.0
libtpu: 0.0.40
codegen_flags: <defaults>
</compile_context>

<pallas_src>
import jax
import jax.numpy as jnp
from jax import lax
from jax.experimental import pallas as pl
from jax.experimental.pallas import tpu as pltpu

# ----------------------------- problem sizes --------------------------------
N = 2          # batch
C_IN = 4       # in_channels
C_OUT = 16     # out_channels
T = 16         # temporal frames
V = 16         # graph vertices
K = 3          # num_subsets = A.shape[0]
RATIO = 0.125
MID = int(RATIO * C_OUT)      # mid_channels = 2
KM = K * MID                  # 6
EPS = 1e-5
HIGHEST = lax.Precision.HIGHEST

PW = 128                      # lane-padded panel width (KM*V = 96 -> 128)
NT = N * T                    # 32 folded (n, t) rows
NV = N * V                    # 32 folded (n, v) rows
XK = 72                       # contraction dim: 64 data + 1 ones + 7 zero pad

# column layout of the fused weight w_all (XK, CAT_W): all slots 128-aligned
RES0, RES1 = 0, C_OUT * V             # 0   .. 256  down residual (+b_down+b_post)
PRE0, PRE1 = RES1, RES1 + PW          # 256 .. 384  pre conv (BN folded)
CV2_0, CV2_1 = PRE1, PRE1 + PW        # 384 .. 512  conv2 / T
CV1_0, CV1_1 = CV2_1, CV2_1 + PW      # 512 .. 640  conv1 / T (panel-broadcast)
CAT_W = CV1_1                         # 640

# column layout of the constant slab cmat (128, CM_W)
SM0, SM1 = 0, PW                      # s_mat      (sum over mid-channels)
BD0, BD1 = SM1, SM1 + PW              # bd_mask    (block-diagonal mask)
MP0, MP1 = BD1, BD1 + C_OUT * V       # m_post     (post conv, BN folded)
AP0, AP1 = MP1, MP1 + PW              # a_panel    (learned A, rows 0:NV)
CM_W = AP1                            # 640


# ------------------------------- Pallas kernel -------------------------------
def unit_gcn_kernel(ab_ref, x_ref, w_ref, c_ref, s_ref, out_ref, gcl_ref):
    alpha0 = ab_ref[0]                         # SMEM scalars
    beta0 = ab_ref[1]

    # one fused matmul for every 1x1 conv (biases via the ones column)
    h = jnp.dot(x_ref[...], w_ref[...], precision=HIGHEST,
                preferred_element_type=jnp.float32)              # (64, 640)

    res_big = h[0:NT, RES0:RES1]                                 # (32, 256) rows=(n,t)
    pre_big = jnp.maximum(h[0:NT, PRE0:PRE1], 0.0)               # (32, 128) pad cols = 0
    h_cv2 = h[0:NT, CV2_0:CV2_1]                                 # (32, 128) conv2/T
    term1 = h[NT:NT + NV, CV1_0:CV1_1]                           # (32, 128) x1[n,km,v], rows=(n,v)

    s_mat = c_ref[:, SM0:SM1]                                    # (128, 128)
    bd_mask = c_ref[:, BD0:BD1]                                  # (128, 128)
    m_post = c_ref[:, MP0:MP1]                                   # (128, 256)
    a_panel = c_ref[0:NV, AP0:AP1]                               # (32, 128)

    rep0 = s_ref[0:PW, :]                                        # (128, 32) sample-0 replication
    rep1 = s_ref[PW:2 * PW, :]                                   # (128, 32) sample-1 replication
    blk = s_ref[2 * PW:2 * PW + NT, :]                           # (32, 32) per-sample block sum

    # conv2 temporal mean, broadcast to that sample's V rows (one MXU matmul)
    x2_brd = jnp.dot(blk, h_cv2, precision=HIGHEST,
                     preferred_element_type=jnp.float32)         # (32, 128)

    # inter graph: tanh(x1[n,km,v] - x2[n,km,w]) * alpha[0]
    inter = jnp.tanh(term1 - x2_brd) * alpha0                    # (32, 128)

    # intra graph: softmax_v( sum_m x1[n,k,m,v] * x2[n,k,m,w] ) * beta[0]
    p0 = term1 * x2_brd
    intra = jnp.dot(p0, s_mat, precision=HIGHEST,
                    preferred_element_type=jnp.float32)          # (32, 128)
    mx = jnp.max(intra, axis=0, keepdims=True)                   # global col max: valid shift
    ex = jnp.exp(intra - mx)
    denom = jnp.dot(blk, ex, precision=HIGHEST,
                    preferred_element_type=jnp.float32)          # per-sample col sums, broadcast
    intra_sm = ex * pl.reciprocal(denom, approx=True) * beta0

    gcl = inter + intra_sm                                       # (32, 128)
    gcl_ref[...] = gcl                                           # lane-dense unmasked store

    # per-sample block-diagonal effective adjacency (replication on the MXU)
    aeff = gcl + a_panel                                         # (32, 128)
    abd0 = jnp.dot(rep0, aeff, precision=HIGHEST,
                   preferred_element_type=jnp.float32) * bd_mask  # (128, 128)
    abd1 = jnp.dot(rep1, aeff, precision=HIGHEST,
                   preferred_element_type=jnp.float32) * bd_mask  # (128, 128)

    # graph aggregation per sample (tile-aligned 16-row slices of pre_big)
    y0 = jnp.dot(pre_big[0:T, :], abd0, precision=HIGHEST,
                 preferred_element_type=jnp.float32)             # (16, 128)
    y1 = jnp.dot(pre_big[T:NT, :], abd1, precision=HIGHEST,
                 preferred_element_type=jnp.float32)             # (16, 128)
    y_big = jnp.concatenate([y0, y1], axis=0)                    # (32, 128)

    # post 1x1 conv (+ folded output BN, bias folded into res_big), residual, ReLU
    post = jnp.dot(y_big, m_post, precision=HIGHEST,
                   preferred_element_type=jnp.float32)           # (32, 256)
    out_ref[...] = jnp.maximum(post + res_big, 0.0)              # lane-dense store


# ------------------------------ plain-JAX glue --------------------------------
def fold_bn(w, b, gamma, bias, mean, var, eps=EPS):
    """Fold an eval-mode BatchNorm into the preceding 1x1 conv. w:(OC,IC), b:(OC,)."""
    s = gamma / jnp.sqrt(var + eps)
    return w * s[:, None], (b - mean) * s + bias


def kron_1x1(w):
    """1x1 conv weight (OC, IC) -> (IC*V, OC*V) matrix acting on the kron layout."""
    oc, ic = w.shape
    eye = jnp.eye(V, dtype=w.dtype)
    return jnp.einsum('oi,vw->ivow', w, eye).reshape(ic * V, oc * V)


def pad_cols(m, width):
    return jnp.pad(m, ((0, 0), (0, width - m.shape[1])))


def pad_rows(m, rows):
    return jnp.pad(m, ((0, rows - m.shape[0]), (0, 0)))


def pad_vec(v, width):
    return jnp.pad(v, (0, width - v.shape[0]))


def build_operands(x, p):
    f32 = jnp.float32
    # fold eval-mode BatchNorms into the adjacent 1x1 convolutions (glue)
    w_pre_f, b_pre_f = fold_bn(p['w_pre'], p['b_pre'], *p['bn_pre'])
    w_post_f, b_post_f = fold_bn(p['w_post'], p['b_post'], *p['bn_out'])
    w_down_f, b_down_f = fold_bn(p['w_down'], p['b_down'], *p['bn_down'])

    # ---- fused input: [x_big (n,t rows); x_vtc (n,v rows)] + ones column ----
    x_big = x.transpose(0, 2, 1, 3).reshape(NT, C_IN * V)    # lanes = c*V + v
    x_vtc = x.transpose(0, 3, 2, 1).reshape(NV, T * C_IN)    # lanes = t*C_IN + c
    xcat = jnp.concatenate([x_big, x_vtc], axis=0)           # (64, 64)
    x_stack = jnp.concatenate(
        [xcat, jnp.ones((NT + NV, 1), f32),
         jnp.zeros((NT + NV, XK - C_IN * V - 1), f32)], axis=1)          # (64, 72)

    # ---- fused weight: [down | pre | conv2/T | conv1/T-panel] + bias row ----
    w_rows = jnp.concatenate(
        [kron_1x1(w_down_f),                                              # (64, 256)
         pad_cols(kron_1x1(w_pre_f), PW),                                 # (64, 128)
         pad_cols(kron_1x1(p['w2']) / T, PW),                             # (64, 128)
         pad_cols(jnp.repeat(jnp.tile(p['w1'].T / T, (T, 1)), V, axis=1), PW)],
        axis=1)                                                           # (64, 640)
    bias_row = jnp.concatenate(
        [jnp.repeat(b_down_f + b_post_f, V),          # post bias folded into residual slot
         pad_vec(jnp.repeat(b_pre_f, V), PW),
         pad_vec(jnp.repeat(p['b2'], V) / T, PW),     # /T: summed over T rows in-kernel
         pad_vec(jnp.repeat(p['b1'], V), PW)])[None, :]                   # (1, 640)
    w_all = jnp.concatenate(
        [w_rows, bias_row,
         jnp.zeros((XK - C_IN * V - 1, CAT_W), f32)], axis=0)             # (72, 640)

    # ---- constant slab: [s_mat | bd_mask | m_post | a_panel] ----------------
    pidx = jnp.arange(PW)
    valid = pidx < KM * V
    vv = valid[:, None] & valid[None, :]
    k_of = pidx // (MID * V)
    w_of = pidx % V
    km_of = pidx // V
    # S sums the per-mid-channel products within each subset
    s_mat = ((k_of[:, None] == k_of[None, :]) &
             (w_of[:, None] == w_of[None, :]) & vv).astype(f32)           # (128, 128)
    # block-diagonal mask of the (KM*V, KM*V) effective adjacency (pads zeroed)
    bd_mask = ((km_of[:, None] == km_of[None, :]) & vv).astype(f32)       # (128, 128)
    m_post = pad_rows(kron_1x1(w_post_f), PW)                             # (128, 256) pad rows = 0
    # learned adjacency in panel layout, tiled over the N samples
    a_panel = jnp.repeat(p['A'], MID, axis=0).transpose(1, 0, 2).reshape(V, KM * V)
    a_panel = jnp.tile(pad_cols(a_panel, PW), (N, 1))                     # (32, 128)
    cmat = jnp.concatenate([s_mat, bd_mask, m_post, pad_rows(a_panel, PW)], axis=1)

    # ---- small constants: per-sample replication + per-sample block-sum -----
    r = jnp.arange(PW)
    c = jnp.arange(NT)
    rep0 = ((c[None, :] == (r % V)[:, None]) & ((r // V)[:, None] < KM)).astype(f32)
    rep1 = ((c[None, :] == (r % V)[:, None] + V) & ((r // V)[:, None] < KM)).astype(f32)
    blk = (c[:, None] // T == c[None, :] // T).astype(f32)   # NOTE: relies on T == V
    small_c = jnp.concatenate([rep0, rep1, blk], axis=0)                  # (288, 32)

    ab = jnp.stack([p['alpha'][0], p['beta'][0]])                         # (2,) -> SMEM
    return ab, x_stack, w_all, cmat, small_c


def unit_gcn_forward(x, p):
    ab, x_stack, w_all, cmat, small_c = build_operands(x, p)

    out_big, gcl_panel = pl.pallas_call(
        unit_gcn_kernel,
        in_specs=[
            pl.BlockSpec(memory_space=pltpu.MemorySpace.SMEM),   # alpha / beta scalars
            pl.BlockSpec(memory_space=pltpu.MemorySpace.VMEM),   # x_stack
            pl.BlockSpec(memory_space=pltpu.MemorySpace.VMEM),   # fused weight
            pl.BlockSpec(memory_space=pltpu.MemorySpace.VMEM),   # constant slab
            pl.BlockSpec(memory_space=pltpu.MemorySpace.VMEM),   # small constants
        ],
        out_specs=[
            pl.BlockSpec(memory_space=pltpu.MemorySpace.VMEM),
            pl.BlockSpec(memory_space=pltpu.MemorySpace.VMEM),
        ],
        out_shape=[
            jax.ShapeDtypeStruct((NT, C_OUT * V), jnp.float32),  # out, kron layout
            jax.ShapeDtypeStruct((NV, PW), jnp.float32),         # gcl panel (lane padded)
        ],
    )(ab, x_stack, w_all, cmat, small_c)

    out = out_big.reshape(N, T, C_OUT, V).transpose(0, 2, 1, 3)           # back to NCHW
    gcl = gcl_panel.reshape(N, V, PW)[:, :, :KM * V]
    gcl = gcl.reshape(N, V, KM, V).transpose(0, 2, 1, 3)                  # (N, KM, V, V)
    return out, gcl


# -------------------------- pure-JAX reference (NCHW) -------------------------
def conv1x1_ref(x, w, b):
    return jnp.einsum('oi,nitv->notv', w, x, precision=HIGHEST) + b[None, :, None, None]


def unit_gcn_reference(x, p):
    n = x.shape[0]
    w_pre_f, b_pre_f = fold_bn(p['w_pre'], p['b_pre'], *p['bn_pre'])
    w_post_f, b_post_f = fold_bn(p['w_post'], p['b_post'], *p['bn_out'])
    w_down_f, b_down_f = fold_bn(p['w_down'], p['b_down'], *p['bn_down'])

    res = conv1x1_ref(x, w_down_f, b_down_f)
    a = p['A'][None, :, None, None]

    pre = jax.nn.relu(conv1x1_ref(x, w_pre_f, b_pre_f)).reshape(n, K, MID, T, V)
    x1 = conv1x1_ref(x, p['w1'], p['b1']).reshape(n, K, MID, T, V).mean(axis=3, keepdims=True)
    x2 = conv1x1_ref(x, p['w2'], p['b2']).reshape(n, K, MID, T, V).mean(axis=3, keepdims=True)

    diff = x1[..., None] - x2[..., None, :]
    inter = jnp.tanh(diff) * p['alpha'][0]
    a = inter + a
    intra = jnp.einsum('nkctv,nkctw->nktvw', x1, x2, precision=HIGHEST)[:, :, None]
    intra = jax.nn.softmax(intra, axis=-2) * p['beta'][0]
    a = intra + a
    a = jnp.squeeze(a, axis=3)

    y = jnp.einsum('nkctv,nkcvw->nkctw', pre, a, precision=HIGHEST).reshape(n, K * MID, T, V)
    out = jax.nn.relu(conv1x1_ref(y, w_post_f, b_post_f) + res)
    gcl = jnp.squeeze(inter + intra, axis=3).reshape(n, -1, V, V)
    return out, gcl


# ------------------------------ parameter init --------------------------------
def init_params(key):
    keys = iter(jax.random.split(key, 32))

    def nrm(shape, scale=1.0):
        return scale * jax.random.normal(next(keys), shape, dtype=jnp.float32)

    def bn_params(c):
        gamma = 1.0 + 0.1 * nrm((c,))
        bias = 0.1 * nrm((c,))
        mean = 0.1 * nrm((c,))
        var = 0.5 + jnp.square(nrm((c,), 0.5))
        return (gamma, bias, mean, var)

    p = {}
    p['A'] = nrm((K, V, V), 0.3)
    # torch __init__ zeros alpha/beta; nonzero values are used so the
    # inter-/intra-graph paths are actually exercised.
    p['alpha'] = nrm((K,), 0.5)
    p['beta'] = nrm((K,), 0.5)
    p['w_pre'] = nrm((KM, C_IN), C_IN ** -0.5)
    p['b_pre'] = nrm((KM,), 0.1)
    p['bn_pre'] = bn_params(KM)
    p['w1'] = nrm((KM, C_IN), C_IN ** -0.5)
    p['b1'] = nrm((KM,), 0.1)
    p['w2'] = nrm((KM, C_IN), C_IN ** -0.5)
    p['b2'] = nrm((KM,), 0.1)
    p['w_post'] = nrm((C_OUT, KM), KM ** -0.5)
    p['b_post'] = nrm((C_OUT,), 0.1)
    p['bn_out'] = bn_params(C_OUT)
    p['w_down'] = nrm((C_OUT, C_IN), C_IN ** -0.5)
    p['b_down'] = nrm((C_OUT,), 0.1)
    p['bn_down'] = bn_params(C_OUT)
    return p


# ----------------------------------- main --------------------------------------
if __name__ == "__main__":
    key = jax.random.PRNGKey(0)
    kx, kp = jax.random.split(key)
    x = jax.random.normal(kx, (N, C_IN, T, V), dtype=jnp.float32)
    params = init_params(kp)

    out, gcl = jax.jit(unit_gcn_forward)(x, params)
    jax.block_until_ready((out, gcl))

    out_exp, gcl_exp = unit_gcn_reference(x, params)
    assert out.shape == (N, C_OUT, T, V), out.shape
    assert gcl.shape == (N, K * MID, V, V), gcl.shape

    # All kernel matmuls run at HIGHEST (true f32); remaining deltas come from
    # the approximate softmax reciprocal and summation-order differences.
    def check(name, got, exp, atol, rtol):
        err = jnp.abs(got - exp)
        ok = bool(jnp.all(err <= atol + rtol * jnp.abs(exp)))
        assert ok, f"{name} mismatch: max abs err = {float(jnp.max(err))}"

    check("output", out, out_exp, atol=5e-3, rtol=5e-3)
    check("gcl", gcl, gcl_exp, atol=5e-3, rtol=5e-3)
    print("KERNEL_OK")
</pallas_src>

<mosaic_0001>
module attributes {stable_mosaic.version = 11 : i64} {
  func.func @unit_gcn_kernel(%arg0: memref<2xf32, #tpu.memory_space<smem>>, %arg1: memref<64x72xf32, #tpu.memory_space<vmem>>, %arg2: memref<72x640xf32, #tpu.memory_space<vmem>>, %arg3: memref<128x640xf32, #tpu.memory_space<vmem>>, %arg4: memref<288x32xf32, #tpu.memory_space<vmem>>, %arg5: memref<32x256xf32, #tpu.memory_space<vmem>>, %arg6: memref<32x128xf32, #tpu.memory_space<vmem>>) attributes {dimension_semantics = [], scalar_prefetch = 0 : i64, scratch_operands = 0 : i64, tpu.core_type = #tpu.core_type<tc>} {
    %c0 = arith.constant 0 : index
    %0 = memref.load %arg0[%c0] : memref<2xf32, #tpu.memory_space<smem>>
    %c1 = arith.constant 1 : index
    %1 = memref.load %arg0[%c1] : memref<2xf32, #tpu.memory_space<smem>>
    %c0_0 = arith.constant 0 : index
    %c0_1 = arith.constant 0 : index
    %2 = vector.load %arg1[%c0_0, %c0_1] : memref<64x72xf32, #tpu.memory_space<vmem>>, vector<64x72xf32>
    %c0_2 = arith.constant 0 : index
    %c0_3 = arith.constant 0 : index
    %3 = vector.load %arg2[%c0_2, %c0_3] : memref<72x640xf32, #tpu.memory_space<vmem>>, vector<72x640xf32>
    %cst = arith.constant dense<0.000000e+00> : vector<64x640xf32>
    %4 = tpu.matmul %2, %3, %cst {dimension_numbers = #tpu.dot_dimension_numbers<[1], [0], [0], [1], [0, 0, 1, 1], [], []>, precision = #tpu.contract_precision<fp32>} : vector<64x72xf32>, vector<72x640xf32>, vector<64x640xf32> -> vector<64x640xf32>
    %5 = vector.extract_strided_slice %4 {offsets = [0, 0], sizes = [32, 256], strides = [1, 1]} : vector<64x640xf32> to vector<32x256xf32>
    %6 = vector.extract_strided_slice %4 {offsets = [0, 256], sizes = [32, 128], strides = [1, 1]} : vector<64x640xf32> to vector<32x128xf32>
    %cst_4 = arith.constant 0.000000e+00 : f32
    %7 = vector.broadcast %cst_4 : f32 to vector<32x128xf32>
    %8 = arith.maximumf %6, %7 : vector<32x128xf32>
    %9 = vector.extract_strided_slice %4 {offsets = [0, 384], sizes = [32, 128], strides = [1, 1]} : vector<64x640xf32> to vector<32x128xf32>
    %10 = vector.extract_strided_slice %4 {offsets = [32, 512], sizes = [32, 128], strides = [1, 1]} : vector<64x640xf32> to vector<32x128xf32>
    %c0_5 = arith.constant 0 : index
    %c0_6 = arith.constant 0 : index
    %11 = vector.load %arg3[%c0_5, %c0_6] : memref<128x640xf32, #tpu.memory_space<vmem>>, vector<128x128xf32>
    %c0_7 = arith.constant 0 : index
    %c128 = arith.constant 128 : index
    %12 = vector.load %arg3[%c0_7, %c128] : memref<128x640xf32, #tpu.memory_space<vmem>>, vector<128x128xf32>
    %c0_8 = arith.constant 0 : index
    %c256 = arith.constant 256 : index
    %13 = vector.load %arg3[%c0_8, %c256] : memref<128x640xf32, #tpu.memory_space<vmem>>, vector<128x256xf32>
    %c0_9 = arith.constant 0 : index
    %c512 = arith.constant 512 : index
    %14 = vector.load %arg3[%c0_9, %c512] : memref<128x640xf32, #tpu.memory_space<vmem>>, vector<32x128xf32>
    %c0_10 = arith.constant 0 : index
    %c0_11 = arith.constant 0 : index
    %15 = vector.load %arg4[%c0_10, %c0_11] : memref<288x32xf32, #tpu.memory_space<vmem>>, vector<128x32xf32>
    %c128_12 = arith.constant 128 : index
    %c0_13 = arith.constant 0 : index
    %16 = vector.load %arg4[%c128_12, %c0_13] : memref<288x32xf32, #tpu.memory_space<vmem>>, vector<128x32xf32>
    %c256_14 = arith.constant 256 : index
    %c0_15 = arith.constant 0 : index
    %17 = vector.load %arg4[%c256_14, %c0_15] : memref<288x32xf32, #tpu.memory_space<vmem>>, vector<32x32xf32>
    %cst_16 = arith.constant dense<0.000000e+00> : vector<32x128xf32>
    %18 = tpu.matmul %17, %9, %cst_16 {dimension_numbers = #tpu.dot_dimension_numbers<[1], [0], [0], [1], [0, 0, 1, 1], [], []>, precision = #tpu.contract_precision<fp32>} : vector<32x32xf32>, vector<32x128xf32>, vector<32x128xf32> -> vector<32x128xf32>
    %19 = arith.subf %10, %18 : vector<32x128xf32>
    %20 = math.tanh %19 : vector<32x128xf32>
    %21 = vector.broadcast %0 : f32 to vector<32x128xf32>
    %22 = arith.mulf %20, %21 : vector<32x128xf32>
    %23 = arith.mulf %10, %18 : vector<32x128xf32>
    %cst_17 = arith.constant dense<0.000000e+00> : vector<32x128xf32>
    %24 = tpu.matmul %23, %11, %cst_17 {dimension_numbers = #tpu.dot_dimension_numbers<[1], [0], [0], [1], [0, 0, 1, 1], [], []>, precision = #tpu.contract_precision<fp32>} : vector<32x128xf32>, vector<128x128xf32>, vector<32x128xf32> -> vector<32x128xf32>
    %cst_18 = arith.constant dense<0xFF800000> : vector<128xf32>
    %25 = vector.multi_reduction <maximumf>, %24, %cst_18 [0] : vector<32x128xf32> to vector<128xf32>
    %26 = vector.shape_cast %25 : vector<128xf32> to vector<1x128xf32>
    %27 = vector.broadcast %26 : vector<1x128xf32> to vector<32x128xf32>
    %28 = arith.subf %24, %27 : vector<32x128xf32>
    %29 = math.exp %28 : vector<32x128xf32>
    %cst_19 = arith.constant dense<0.000000e+00> : vector<32x128xf32>
    %30 = tpu.matmul %17, %29, %cst_19 {dimension_numbers = #tpu.dot_dimension_numbers<[1], [0], [0], [1], [0, 0, 1, 1], [], []>, precision = #tpu.contract_precision<fp32>} : vector<32x32xf32>, vector<32x128xf32>, vector<32x128xf32> -> vector<32x128xf32>
    %31 = tpu.reciprocal %30 {approx = true} : vector<32x128xf32> -> vector<32x128xf32>
    %32 = arith.mulf %29, %31 : vector<32x128xf32>
    %33 = vector.broadcast %1 : f32 to vector<32x128xf32>
    %34 = arith.mulf %32, %33 : vector<32x128xf32>
    %35 = arith.addf %22, %34 : vector<32x128xf32>
    %c0_20 = arith.constant 0 : index
    %c0_21 = arith.constant 0 : index
    %36 = vector.load %arg6[%c0_20, %c0_21] : memref<32x128xf32, #tpu.memory_space<vmem>>, vector<32x128xf32>
    tpu.vector_store %arg6[%c0_20, %c0_21], %35 {strides = array<i32>} : memref<32x128xf32, #tpu.memory_space<vmem>>, vector<32x128xf32>,
    %37 = arith.addf %35, %14 : vector<32x128xf32>
    %cst_22 = arith.constant dense<0.000000e+00> : vector<128x128xf32>
    %38 = tpu.matmul %15, %37, %cst_22 {dimension_numbers = #tpu.dot_dimension_numbers<[1], [0], [0], [1], [0, 0, 1, 1], [], []>, precision = #tpu.contract_precision<fp32>} : vector<128x32xf32>, vector<32x128xf32>, vector<128x128xf32> -> vector<128x128xf32>
    %39 = arith.mulf %38, %12 : vector<128x128xf32>
    %cst_23 = arith.constant dense<0.000000e+00> : vector<128x128xf32>
    %40 = tpu.matmul %16, %37, %cst_23 {dimension_numbers = #tpu.dot_dimension_numbers<[1], [0], [0], [1], [0, 0, 1, 1], [], []>, precision = #tpu.contract_precision<fp32>} : vector<128x32xf32>, vector<32x128xf32>, vector<128x128xf32> -> vector<128x128xf32>
    %41 = arith.mulf %40, %12 : vector<128x128xf32>
    %42 = vector.extract_strided_slice %8 {offsets = [0, 0], sizes = [16, 128], strides = [1, 1]} : vector<32x128xf32> to vector<16x128xf32>
    %cst_24 = arith.constant dense<0.000000e+00> : vector<16x128xf32>
    %43 = tpu.matmul %42, %39, %cst_24 {dimension_numbers = #tpu.dot_dimension_numbers<[1], [0], [0], [1], [0, 0, 1, 1], [], []>, precision = #tpu.contract_precision<fp32>} : vector<16x128xf32>, vector<128x128xf32>, vector<16x128xf32> -> vector<16x128xf32>
    %44 = vector.extract_strided_slice %8 {offsets = [16, 0], sizes = [16, 128], strides = [1, 1]} : vector<32x128xf32> to vector<16x128xf32>
    %cst_25 = arith.constant dense<0.000000e+00> : vector<16x128xf32>
    %45 = tpu.matmul %44, %41, %cst_25 {dimension_numbers = #tpu.dot_dimension_numbers<[1], [0], [0], [1], [0, 0, 1, 1], [], []>, precision = #tpu.contract_precision<fp32>} : vector<16x128xf32>, vector<128x128xf32>, vector<16x128xf32> -> vector<16x128xf32>
    %46 = tpu.concatenate %43, %45 in 0 : vector<16x128xf32>, vector<16x128xf32> -> vector<32x128xf32>
    %cst_26 = arith.constant dense<0.000000e+00> : vector<32x256xf32>
    %47 = tpu.matmul %46, %13, %cst_26 {dimension_numbers = #tpu.dot_dimension_numbers<[1], [0], [0], [1], [0, 0, 1, 1], [], []>, precision = #tpu.contract_precision<fp32>} : vector<32x128xf32>, vector<128x256xf32>, vector<32x256xf32> -> vector<32x256xf32>
    %48 = arith.addf %47, %5 : vector<32x256xf32>
    %cst_27 = arith.constant 0.000000e+00 : f32
    %49 = vector.broadcast %cst_27 : f32 to vector<32x256xf32>
    %50 = arith.maximumf %48, %49 : vector<32x256xf32>
    %c0_28 = arith.constant 0 : index
    %c0_29 = arith.constant 0 : index
    %51 = vector.load %arg5[%c0_28, %c0_29] : memref<32x256xf32, #tpu.memory_space<vmem>>, vector<32x256xf32>
    tpu.vector_store %arg5[%c0_28, %c0_29], %50 {strides = array<i32>} : memref<32x256xf32, #tpu.memory_space<vmem>>, vector<32x256xf32>,
    return
  }
}

</mosaic_0001>

<bundles_post_ra>
// kernel: tile.14
= control target key start
LH: loop header
LB: loop body
LE: loop exit
PB: predicated region body
PF: predicated region fallthrough
CT: control target
= control target key end

     0   :  { %vm6_vm0 = vcmask 1043458   ;;  %vm10_vm1 = vcmask 1045508   ;;  %s15_s6 = smov 3  ;;  %s18_s7 = smov 12  ;;  %vm12_vm2 = vcmask 31744   ;;  %vm29_vm3 = vcmask 523744   ;;  %s578_s0 = inlined_call_operand.vmem [shape: f32[16,4,6], index: 0, kind: input, shape index: {}]   ;;  %s579_s1 = inlined_call_operand.vmem [shape: f32[64,6], index: 1, kind: output, shape index: {}]  }
   0x1   :  { %v269_v0 = vld [vmem:[%s578_s0 + $0xf] ss:$16 sm:%s15_s6]   ;;  %s23_s12 = smov 48  ;;  %s49_s15 = smov 3  ;;  %vm46_vm4 = vcmask 490944   ;;  %vm63_vm5 = vcmask 458144  }
   0x2   :  { %v270_v1 = vld [vmem:[%s578_s0 + $0xf] ss:$16 sm:%s18_s7]   ;;  %s52_s16 = smov 12  ;;  %v275_v5 = vld [vmem:[%s578_s0 + $0xd] ss:$16 sm:%s49_s15]   ;;  %s57_s21 = smov 48 }
   0x3   :  { %v21_v2 = vsel %vm6_vm0, %v270_v1, %v269_v0  ;;  %v271_v3 = vld [vmem:[%s578_s0 + $0xf] ss:$16 sm:%s23_s12]   ;;  %v276_v6 = vld [vmem:[%s578_s0 + $0xd] ss:$16 sm:%s52_s16]   ;;  %s329_s22 = smov 60   ;;  %s32_s25 = smov 3 }
   0x4   :  { %v26_v4 = vsel %vm10_vm1, %v271_v3, %v21_v2  ;;  %v55_v7 = vsel %vm6_vm0, %v276_v6, %v275_v5  ;;  %v277_v8 = vld [vmem:[%s578_s0 + $0xd] ss:$16 sm:%s57_s21]   ;;  %s35_s26 = smov 12  ;;  %v272_v10 = vld [vmem:[%s578_s0 + $0xe] ss:$16 sm:%s32_s25]   ;;  %s40_s2 = smov 48 }
   0x5   :  { %27 = vrot.lane.b32.xlu0 %v26_v4, %s329_s22  ;;  %v60_v9 = vsel %vm10_vm1, %v277_v8, %v55_v7  ;;  %v273_v11 = vld [vmem:[%s578_s0 + $0xe] ss:$16 sm:%s35_s26]   ;;  %s330_s3 = smov 52   ;;  %s66_s6 = smov 3  ;;  %vm80_vm6 = vcmask 425344   ;;  %vm97_vm7 = vcmask 392544  }
   0x6   :  { %61 = vrot.lane.b32.xlu1 %v60_v9, %s330_s3  ;;  %v38_v12 = vsel %vm6_vm0, %v273_v11, %v272_v10  ;;  %v274_v13 = vld [vmem:[%s578_s0 + $0xe] ss:$16 sm:%s40_s2]   ;;  %s69_s7 = smov 12  ;;  %s74_s12 = smov 48  ;;  %vm114_vm8 = vcmask 359744   ;;  %vm131_vm9 = vcmask 326944  }
   0x7   :  { %v43_v14 = vsel %vm10_vm1, %v274_v13, %v38_v12  ;;  %v278_v15 = vld [vmem:[%s578_s0 + $0xc] ss:$16 sm:%s66_s6]   ;;  %s331_s13 = smov 56   ;;  %s83_s16 = smov 3  ;;  %vm148_vm10 = vcmask 294144   ;;  %vm165_vm11 = vcmask 261344  }
   0x8   :  { %v279_v16 = vld [vmem:[%s578_s0 + $0xc] ss:$16 sm:%s69_s7]   ;;  %s86_s17 = smov 12  ;;  %v281_v20 = vld [vmem:[%s578_s0 + $0xb] ss:$16 sm:%s83_s16]   ;;  %s91_s22 = smov 48 }
   0x9   :  { %44 = vrot.lane.b32.xlu0 %v43_v14, %s331_s13  ;;  %v72_v17 = vsel %vm6_vm0, %v279_v16, %v278_v15  ;;  %v280_v18 = vld [vmem:[%s578_s0 + $0xc] ss:$16 sm:%s74_s12]   ;;  %s332_s23 = smov 48   ;;  %s100_s26 = smov 3  ;;  %vm182_vm12 = vcmask 228544   ;;  %vm199_vm13 = vcmask 195744  }
   0xa   :  { %v77_v19 = vsel %vm10_vm1, %v280_v18, %v72_v17  ;;  %v282_v21 = vld [vmem:[%s578_s0 + $0xb] ss:$16 sm:%s86_s17]   ;;  %s103_s27 = smov 12  ;;  %v284_v25 = vld [vmem:[%s578_s0 + $0xa] ss:$16 sm:%s100_s26]   ;;  %s108_s3 = smov 48 }
   0xb   :  { %78 = vrot.lane.b32.xlu1 %v77_v19, %s332_s23  ;;  %v89_v22 = vsel %vm6_vm0, %v282_v21, %v281_v20  ;;  %v283_v23 = vld [vmem:[%s578_s0 + $0xb] ss:$16 sm:%s91_s22]   ;;  %s333_s4 = smov 44   ;;  %s117_s7 = smov 3  ;;  %vm216_vm14 = vcmask 162944   ;;  %vm233_vm15 = vcmask 130144  }
   0xc   :  { %v94_v24 = vsel %vm10_vm1, %v283_v23, %v89_v22  ;;  %v285_v26 = vld [vmem:[%s578_s0 + $0xa] ss:$16 sm:%s103_s27]   ;;  %s120_s8 = smov 12  ;;  %v287_v30 = vld [vmem:[%s578_s0 + $0x9] ss:$16 sm:%s117_s7]   ;;  %s125_s13 = smov 48 }
   0xd   :  { %95 = vrot.lane.b32.xlu0 %v94_v24, %s333_s4  ;;  %v106_v27 = vsel %vm6_vm0, %v285_v26, %v284_v25  ;;  %v286_v28 = vld [vmem:[%s578_s0 + $0xa] ss:$16 sm:%s108_s3]   ;;  %s334_s14 = smov 40   ;;  %s134_s17 = smov 3 }
   0xe   :  { %v111_v29 = vsel %vm10_vm1, %v286_v28, %v106_v27  ;;  %v288_v31 = vld [vmem:[%s578_s0 + $0x9] ss:$16 sm:%s120_s8]   ;;  %s137_s18 = smov 12  ;;  %v290_v35 = vld [vmem:[%s578_s0 + $0x8] ss:$16 sm:%s134_s17]   ;;  %s142_s23 = smov 48 }
   0xf   :  { %112 = vrot.lane.b32.xlu1 %v111_v29, %s334_s14  ;;  %v123_v32 = vsel %vm6_vm0, %v288_v31, %v287_v30  ;;  %v289_v33 = vld [vmem:[%s578_s0 + $0x9] ss:$16 sm:%s125_s13]   ;;  %s335_s24 = smov 36   ;;  %s151_s27 = smov 3 }
  0x10   :  { %v128_v34 = vsel %vm10_vm1, %v289_v33, %v123_v32  ;;  %v291_v36 = vld [vmem:[%s578_s0 + $0x8] ss:$16 sm:%s137_s18]   ;;  %s154_s28 = smov 12  ;;  %v293_v40 = vld [vmem:[%s578_s0 + $0x7] ss:$16 sm:%s151_s27]   ;;  %s159_s4 = smov 48 }
  0x11   :  { %129 = vrot.lane.b32.xlu0 %v128_v34, %s335_s24  ;;  %v140_v37 = vsel %vm6_vm0, %v291_v36, %v290_v35  ;;  %v292_v38 = vld [vmem:[%s578_s0 + $0x8] ss:$16 sm:%s142_s23]   ;;  %s336_s5 = smov 32   ;;  %s168_s8 = smov 3 }
  0x12   :  { %v145_v39 = vsel %vm10_vm1, %v292_v38, %v140_v37  ;;  %v294_v41 = vld [vmem:[%s578_s0 + $0x7] ss:$16 sm:%s154_s28]   ;;  %s171_s9 = smov 12  ;;  %v296_v45 = vld [vmem:[%s578_s0 + $0x6] ss:$16 sm:%s168_s8]   ;;  %s176_s14 = smov 48 }
  0x13   :  { %146 = vrot.lane.b32.xlu1 %v145_v39, %s336_s5  ;;  %v157_v42 = vsel %vm6_vm0, %v294_v41, %v293_v40  ;;  %v295_v43 = vld [vmem:[%s578_s0 + $0x7] ss:$16 sm:%s159_s4]   ;;  %s337_s15 = smov 28   ;;  %s185_s18 = smov 3 }
  0x14   :  { %v162_v44 = vsel %vm10_vm1, %v295_v43, %v157_v42  ;;  %v297_v46 = vld [vmem:[%s578_s0 + $0x6] ss:$16 sm:%s171_s9]   ;;  %s188_s19 = smov 12  ;;  %v299_v50 = vld [vmem:[%s578_s0 + $0x5] ss:$16 sm:%s185_s18]   ;;  %s193_s24 = smov 48 }
  0x15   :  { %163 = vrot.lane.b32.xlu0 %v162_v44, %s337_s15  ;;  %v174_v47 = vsel %vm6_vm0, %v297_v46, %v296_v45  ;;  %v298_v48 = vld [vmem:[%s578_s0 + $0x6] ss:$16 sm:%s176_s14]   ;;  %s338_s25 = smov 24   ;;  %s202_s28 = smov 3 }
  0x16   :  { %v179_v49 = vsel %vm10_vm1, %v298_v48, %v174_v47  ;;  %v300_v51 = vld [vmem:[%s578_s0 + $0x5] ss:$16 sm:%s188_s19]   ;;  %s205_s29 = smov 12  ;;  %v302_v55 = vld [vmem:[%s578_s0 + $0x4] ss:$16 sm:%s202_s28]   ;;  %s210_s5 = smov 48 }
  0x17   :  { %180 = vrot.lane.b32.xlu1 %v179_v49, %s338_s25  ;;  %v191_v52 = vsel %vm6_vm0, %v300_v51, %v299_v50  ;;  %v301_v53 = vld [vmem:[%s578_s0 + $0x5] ss:$16 sm:%s193_s24]   ;;  %s339_s6 = smov 20   ;;  %s219_s9 = smov 3 }
  0x18   :  { %v196_v54 = vsel %vm10_vm1, %v301_v53, %v191_v52  ;;  %v303_v56 = vld [vmem:[%s578_s0 + $0x4] ss:$16 sm:%s205_s29]   ;;  %s222_s10 = smov 12  ;;  %v305_v60 = vld [vmem:[%s578_s0 + $0x3] ss:$16 sm:%s219_s9]   ;;  %s227_s15 = smov 48 }
  0x19   :  { %197 = vrot.lane.b32.xlu0 %v196_v54, %s339_s6  ;;  %v208_v57 = vsel %vm6_vm0, %v303_v56, %v302_v55  ;;  %v304_v58 = vld [vmem:[%s578_s0 + $0x4] ss:$16 sm:%s210_s5]   ;;  %s340_s16 = smov 16   ;;  %s236_s19 = smov 3 }
  0x1a   :  { %v213_v59 = vsel %vm10_vm1, %v304_v58, %v208_v57  ;;  %v306_v61 = vld [vmem:[%s578_s0 + $0x3] ss:$16 sm:%s222_s10]   ;;  %s239_s20 = smov 12  ;;  %v308_v1 = vld [vmem:[%s578_s0 + $0x2] ss:$16 sm:%s236_s19]   ;;  %s244_s25 = smov 48 }
  0x1b   :  { %214 = vrot.lane.b32.xlu1 %v213_v59, %s340_s16  ;;  %v225_v62 = vsel %vm6_vm0, %v306_v61, %v305_v60  ;;  %v307_v63 = vld [vmem:[%s578_s0 + $0x3] ss:$16 sm:%s227_s15]   ;;  %s341_s26 = smov 12   ;;  %s253_s29 = smov 3 }
  0x1c   :  { %v230_v0 = vsel %vm10_vm1, %v307_v63, %v225_v62  ;;  %v309_v2 = vld [vmem:[%s578_s0 + $0x2] ss:$16 sm:%s239_s20]   ;;  %s256_s30 = smov 12  ;;  %v311_v6 = vld [vmem:[%s578_s0 + $0x1] ss:$16 sm:%s253_s29]   ;;  %s261_s6 = smov 48 }
  0x1d   :  { %231 = vrot.lane.b32.xlu0 %v230_v0, %s341_s26  ;;  %v242_v3 = vsel %vm6_vm0, %v309_v2, %v308_v1  ;;  %v310_v4 = vld [vmem:[%s578_s0 + $0x2] ss:$16 sm:%s244_s25]   ;;  %s342_s7 = smov 8   ;;  %s2_s10 = smov 3 }
  0x1e   :  { %v247_v5 = vsel %vm10_vm1, %v310_v4, %v242_v3  ;;  %v312_v7 = vld [vmem:[%s578_s0 + $0x1] ss:$16 sm:%s256_s30]   ;;  %s4_s11 = smov 12  ;;  %s8_s12 = smov 48  ;;  %v3_v11 = vld [vmem:[%s578_s0] ss:$16 sm:%s2_s10]  }
  0x1f   :  { %248 = vrot.lane.b32.xlu1 %v247_v5, %s342_s7  ;;  %v259_v8 = vsel %vm6_vm0, %v312_v7, %v311_v6  ;;  %v313_v9 = vld [vmem:[%s578_s0 + $0x1] ss:$16 sm:%s261_s6]   ;;  %s343_s17 = smov 4  }
  0x20   :  { %v264_v10 = vsel %vm10_vm1, %v313_v9, %v259_v8  ;;  %v5_v12 = vld [vmem:[%s578_s0] ss:$16 sm:%s4_s11]  }
  0x21   :  { %265 = vrot.lane.b32.xlu0 %v264_v10, %s343_s17  ;;  %v7_v13 = vsel %vm6_vm0, %v5_v12, %v3_v11  ;;  %v9_v14 = vld [vmem:[%s578_s0] ss:$16 sm:%s8_s12]   ;;  %vm250_vm0 = vcmask 97344  }
  0x22   :  { %v11_v15 = vsel %vm10_vm1, %v9_v14, %v7_v13  ;;  %vm267_vm1 = vcmask 64544  }
  0x23   :  { %13 = vst.msk [vmem:[%s579_s1] sm:$0x3f] %vm12_vm2, %v11_v15  }
  0x77   :  { %v28_v16 = vpop.permute.xlu0 %27  }
  0x78   :  { %30 = vst.msk [vmem:[%s579_s1] sm:$0x3f] %vm29_vm3, %v28_v16   ;;  %v62_v17 = vpop.permute.xlu1 %61  }
  0x7b   :  { %v45_v18 = vpop.permute.xlu0 %44  }
  0x7c   :  { %47 = vst.msk [vmem:[%s579_s1] sm:$0x3f] %vm46_vm4, %v45_v18  }
  0x7d   :  { %64 = vst.msk [vmem:[%s579_s1] sm:$0x3f] %vm63_vm5, %v62_v17   ;;  %v79_v19 = vpop.permute.xlu1 %78  }
  0x7e   :  { %81 = vst.msk [vmem:[%s579_s1] sm:$0x3f] %vm80_vm6, %v79_v19  }
  0x7f   :  { %v96_v20 = vpop.permute.xlu0 %95  }
  0x80   :  { %98 = vst.msk [vmem:[%s579_s1] sm:$0x3f] %vm97_vm7, %v96_v20  }
  0x81   :  { %v113_v21 = vpop.permute.xlu1 %112  }
  0x82   :  { %115 = vst.msk [vmem:[%s579_s1] sm:$0x3f] %vm114_vm8, %v113_v21  }
  0x83   :  { %v130_v22 = vpop.permute.xlu0 %129  }
  0x84   :  { %132 = vst.msk [vmem:[%s579_s1] sm:$0x3f] %vm131_vm9, %v130_v22  }
  0x85   :  { %v147_v23 = vpop.permute.xlu1 %146  }
  0x86   :  { %149 = vst.msk [vmem:[%s579_s1] sm:$0x3f] %vm148_vm10, %v147_v23  }
  0x87   :  { %v164_v24 = vpop.permute.xlu0 %163  }
  0x88   :  { %166 = vst.msk [vmem:[%s579_s1] sm:$0x3f] %vm165_vm11, %v164_v24  }
  0x89   :  { %v181_v25 = vpop.permute.xlu1 %180  }
  0x8a   :  { %183 = vst.msk [vmem:[%s579_s1] sm:$0x3f] %vm182_vm12, %v181_v25  }
  0x8b   :  { %v198_v26 = vpop.permute.xlu0 %197  }
  0x8c   :  { %200 = vst.msk [vmem:[%s579_s1] sm:$0x3f] %vm199_vm13, %v198_v26  }
  0x8d   :  { %v215_v27 = vpop.permute.xlu1 %214  }
  0x8e   :  { %217 = vst.msk [vmem:[%s579_s1] sm:$0x3f] %vm216_vm14, %v215_v27  }
  0x8f   :  { %v232_v28 = vpop.permute.xlu0 %231  }
  0x90   :  { %234 = vst.msk [vmem:[%s579_s1] sm:$0x3f] %vm233_vm15, %v232_v28  }
  0x91   :  { %v249_v29 = vpop.permute.xlu1 %248  }
  0x92   :  { %251 = vst.msk [vmem:[%s579_s1] sm:$0x3f] %vm250_vm0, %v249_v29  }
  0x93   :  { %v266_v30 = vpop.permute.xlu0 %265  }
  0x94   :  { %268 = vst.msk [vmem:[%s579_s1] sm:$0x3f] %vm267_vm1, %v266_v30  }

// kernel: unit_gcn_forward.1
= control target key start
LH: loop header
LB: loop body
LE: loop exit
PB: predicated region body
PF: predicated region fallthrough
CT: control target
= control target key end

     0   :  { %12 = vsyncpa [#allocation3], 0  ;;  %s17680_s0 = inlined_call_operand.vmem [shape: f32[2], index: 0, kind: input, shape index: {}]   ;;  %s17681_s1 = inlined_call_operand.vmem [shape: f32[64,72], index: 1, kind: input, shape index: {}]   ;;  %s17682_s2 = inlined_call_operand.vmem [shape: f32[72,640], index: 2, kind: input, shape index: {}]   ;;  %s17683_s3 = inlined_call_operand.vmem [shape: f32[128,640], index: 3, kind: input, shape index: {}]   ;;  %s17684_s4 = inlined_call_operand.vmem [shape: f32[288,32], index: 4, kind: input, shape index: {}]   ;;  %s17685_s5 = inlined_call_operand.vmem [shape: f32[32,256], index: 5, kind: output, shape index: {0}]   ;;  %s17686_s6 = inlined_call_operand.vmem [shape: f32[32,128], index: 6, kind: output, shape index: {1}]  }
   0x1   :  { %s19_s23 = sshll.u32 %s17680_s0, 4  ;;  %s20_s23 = int_to_ptr.vmem [resolvable:$true] %s19_s23 }
   0x2   :  { %s13664_s24 = scalar_lea.vmem %s20_s23, 16  ;;  %p13669_p1 = scmp.lt.s32.totalorder %s20_s23, %s20_s23 }
   0x3   :  { %p13665_p0 = scmp.ne.s32.totalorder %s20_s23, %s13664_s24  ;;  %p13670_p2 = scmp.lt.s32.totalorder %s13664_s24, %s13664_s24 }
   0x5   :  { %p13671_p3 = por %p13670_p2, %p13669_p1 }
   0x7   :  { %p13672_p4 = pnand %p13671_p3, %p13665_p0 }
   0x9   :  { %13675 = shalt.err (!%p13672_p4)
}
   0xa   :  { %s13678_s25 = smov [#allocation2]  }
   0xb   :  { %22 = dma.vmem_to_smem %s20_s23, 16, %s13678_s25, [#allocation3]  }
   0xc   :  { %13676 = dma.done.wait [#allocation3], 16  }
   0xd   :  { %13677 = vsyncadd [#allocation3], 4294967280 }
   0xe   :  { %34 = sfence }
   0xf   :  { %v13721_v0 = vld [vmem:[%s17682_s2 + $0x8] sm:$0xff]  ;;  %v13726_v1 = vld [vmem:[%s17682_s2 + $0x30] sm:$0xff]  ;;  %v45_v2 = vld [vmem:[%s17682_s2] sm:$0xff]  ;;  %v17692_v9 = vmov 0.0   ;;  %vm90_vm0 = vcmask 588800   ;;  %vm2986_vm1 = vcmask 261120  }
  0x10   :  { %v17688_v3 = vand.u32 4294901760, %v13721_v0  ;;  %v17687_v4 = vand.u32 4294901760, %v13726_v1  ;;  %v50_v5 = vld [vmem:[%s17682_s2 + $0x28] sm:$0xff]  ;;  %v117_v6 = vand.u32 4294901760, %v45_v2  ;;  %v56_v7 = vld [vmem:[%s17682_s2 + $0x58] sm:$0xff]  ;;  %v61_v8 = vld [vmem:[%s17682_s2 + $0x80] sm:$0xff]  ;;  %197 = vmatprep.mubr.f32.mxu1 %v17692_v9  ;;  %432 = vmatprep.mubr.f32.mxu0 %v17692_v9 }
  0x11   :  { %v121_v10 = vand.u32 4294901760, %v50_v5  ;;  %v123_v11 = vand.u32 4294901760, %v56_v7  ;;  %v127_v12 = vand.u32 4294901760, %v61_v8  ;;  %v55_v13 = vld [vmem:[%s17682_s2 + $0x50] sm:$0xff]  ;;  %v60_v14 = vld [vmem:[%s17682_s2 + $0x78] sm:$0xff]  ;;  %v66_v15 = vld [vmem:[%s17682_s2 + $0xa8] sm:$0xff] }
  0x12   :  { %v13757_v16 = vpack.c.bf16 %v17687_v4, %v17688_v3  ;;  %v125_v17 = vand.u32 4294901760, %v55_v13  ;;  %v129_v18 = vand.u32 4294901760, %v60_v14  ;;  %v71_v19 = vld [vmem:[%s17682_s2 + $0xd0] sm:$0xff]  ;;  %v65_v20 = vld [vmem:[%s17682_s2 + $0xa0] sm:$0xff]  ;;  %v13768_v21 = vld [vmem:[%s17682_s2 + $0xc8] sm:$0xff]  ;;  %v131_v27 = vand.u32 4294901760, %v66_v15 }
  0x13   :  { %v13770_v22 = vpack.c.bf16 %v121_v10, %v117_v6  ;;  %v13772_v23 = vpack.c.bf16 %v127_v12, %v123_v11  ;;  %v13777_v24 = vld [vmem:[%s17682_s2 + $0xf8] sm:$0xff]  ;;  %v13782_v25 = vld [vmem:[%s17682_s2 + $0x120] sm:$0xff]  ;;  %v135_v28 = vand.u32 4294901760, %v71_v19  ;;  %v133_v29 = vand.u32 4294901760, %v65_v20  ;;  %v13795_v33 = vld [vmem:[%s17682_s2 + $0xf0] sm:$0xff]  ;;  %s35_s0 = sld [smem:[#allocation2]] }
  0x14   :  { %18056 = vst [vmem:[#allocation5_spill] sm:$0xff] %v13757_v16  ;;  %11999 = vmatprep.subr.bf16.mxu1 %v13757_v16  ;;  %v13785_v26 = vpack.c.bf16 %v129_v18, %v125_v17  ;;  %v137_v30 = vand.u32 4294901760, %v13768_v21  ;;  %v139_v31 = vand.u32 4294901760, %v13777_v24  ;;  %v17691_v32 = vand.u32 4294901760, %v13782_v25  ;;  %v13800_v34 = vld [vmem:[%s17682_s2 + $0x118] sm:$0xff]  ;;  %v37_v37 = vld [vmem:[%s17681_s1] sm:$0xff] }
  0x15   :  { %18057 = vst [vmem:[#allocation6_spill] sm:$0xff] %v13770_v22  ;;  %18058 = vst [vmem:[#allocation7_spill] sm:$0xff] %v13772_v23  ;;  %12001 = vmatpush1.bf16.msra.mxu1 %v13770_v22  ;;  %v13802_v35 = vsub.f32 %v45_v2, %v117_v6  ;;  %v13804_v36 = vpack.c.bf16 %v135_v28, %v131_v27  ;;  %v38_v38 = vld [vmem:[%s17681_s1 + $0x8] sm:$0xff]  ;;  %v13812_v39 = vsub.f32 %v50_v5, %v121_v10  ;;  %v39_v43 = vld [vmem:[%s17681_s1 + $0x10] sm:$0xff]  ;;  %s9843_s8 = sld [smem:[#allocation2 + $0x1]] }
  0x16   :  { %18059 = vst [vmem:[#allocation8_spill] sm:$0xff] %v13785_v26  ;;  %12003 = vmatprep.subr.bf16.mxu1 %v13772_v23  ;;  %v13814_v40 = vsub.f32 %v56_v7, %v123_v11  ;;  %v13816_v41 = vsub.f32 %v61_v8, %v127_v12  ;;  %v13818_v42 = vsub.f32 %v55_v13, %v125_v17  ;;  %v40_v44 = vld [vmem:[%s17681_s1 + $0x18] sm:$0xff]  ;;  %v17690_v47 = vand.u32 4294901760, %v13795_v33  ;;  %v13845_v51 = vld [vmem:[%s17682_s2 + $0x148] sm:$0xff]  ;;  %v53_v59 = vld [vmem:[%s17682_s2 + $0x40] sm:$0xff] }
  0x17   :  { %18060 = vst [vmem:[#allocation9_spill] sm:$0xff] %v13804_v36  ;;  %v13827_v45 = vsub.f32 %v60_v14, %v129_v18  ;;  %v13829_v46 = vpack.c.bf16 %v137_v30, %v133_v29  ;;  %v17689_v48 = vand.u32 4294901760, %v13800_v34  ;;  %v13834_v49 = vsub.f32 %v66_v15, %v131_v27  ;;  %18063 = vst [vmem:[#allocation12_spill] sm:$0xff] %v13845_v51  ;;  %v48_v58 = vld [vmem:[%s17682_s2 + $0x18] sm:$0xff]  ;;  %v47_v2 = vld [vmem:[%s17682_s2 + $0x10] sm:$0xff] }
  0x18   :  { %v13840_v50 = vpack.c.bf16 %v17691_v32, %v139_v31  ;;  %v92_v52 = vsel %vm90_vm0, %v37_v37, 0  ;;  %v95_v53 = vsel %vm90_vm0, %v38_v38, 0  ;;  %v98_v56 = vsel %vm90_vm0, %v39_v43, 0  ;;  %v13875_v5 = vld [vmem:[%s17682_s2 + $0x38] sm:$0xff]  ;;  %v13890_v8 = vld [vmem:[%s17682_s2 + $0x140] sm:$0xff]  ;;  %v58_v18 = vld [vmem:[%s17682_s2 + $0x68] sm:$0xff] }
  0x19   :  { %12005 = vmatpush1.bf16.msra.mxu1 %v13785_v26  ;;  %18061 = vst [vmem:[#allocation10_spill] sm:$0xff] %v13829_v46  ;;  %v13849_v54 = vand.u32 4294901760, %v92_v52  ;;  %v13851_v55 = vand.u32 4294901760, %v95_v53  ;;  %v101_v57 = vsel %vm90_vm0, %v40_v44, 0  ;;  %v13861_v60 = vsub.f32 %v71_v19, %v135_v28  ;;  %18069 = vst [vmem:[#allocation18_spill] sm:$0xff] %v13890_v8  ;;  %v41_v17 = vld [vmem:[%s17681_s1 + $0x20] sm:$0xff] }
  0x1a   :  { %12007 = vmatprep.subr.bf16.mxu1 %v13804_v36  ;;  %18062 = vst [vmem:[#allocation11_spill] sm:$0xff] %v13840_v50  ;;  %v13863_v61 = vsub.f32 %v65_v20, %v133_v29  ;;  %v13865_v62 = vand.u32 4294901760, %v98_v56  ;;  %v13867_v63 = vand.u32 4294901760, %v101_v57  ;;  %v13882_v6 = vpack.c.bf16 %v17689_v48, %v17690_v47  ;;  %v63_v29 = vld [vmem:[%s17682_s2 + $0x90] sm:$0xff]  ;;  %v62_v47 = vld [vmem:[%s17682_s2 + $0x88] sm:$0xff] }
  0x1b   :  { %18064 = vst [vmem:[#allocation13_spill] sm:$0xff] %v13849_v54  ;;  %18065 = vst [vmem:[#allocation14_spill] sm:$0xff] %v13851_v55  ;;  %v13885_v7 = vand.u32 4294901760, %v13845_v51  ;;  %v13893_v10 = vsub.f32 %v92_v52, %v13849_v54  ;;  %v13896_v11 = vsub.f32 %v95_v53, %v13851_v55  ;;  %v1083_v14 = vand.u32 4294901760, %v48_v58  ;;  %v13936_v52 = vld [vmem:[%s17682_s2 + $0x60] sm:$0xff]  ;;  %v43_v22 = vld [vmem:[%s17681_s1 + $0x30] sm:$0xff] }
  0x1c   :  { %18066 = vst [vmem:[#allocation15_spill] sm:$0xff] %v13865_v62  ;;  %18067 = vst [vmem:[#allocation16_spill] sm:$0xff] %v13867_v63  ;;  %v13900_v12 = vsub.f32 %v98_v56, %v13865_v62  ;;  %v13903_v13 = vsub.f32 %v101_v57, %v13867_v63  ;;  %v1087_v15 = vand.u32 4294901760, %v53_v59  ;;  %v1085_v27 = vand.u32 4294901760, %v47_v2  ;;  %v83_v16 = vld [vmem:[%s17682_s2 + $0x130] sm:$0xff] }
  0x1d   :  { %12009 = vmatpush1.bf16.msra.mxu1 %v13829_v46  ;;  %18068 = vst [vmem:[#allocation17_spill] sm:$0xff] %v13882_v6  ;;  %18070 = vst [vmem:[#allocation19_spill] sm:$0xff] %v13893_v10  ;;  %v13912_v19 = vand.u32 4294901760, %v13893_v10  ;;  %v13915_v20 = vand.u32 4294901760, %v13896_v11  ;;  %v1089_v28 = vand.u32 4294901760, %v13875_v5  ;;  %v13922_v37 = vsub.f32 %v13768_v21, %v137_v30  ;;  %v72_v46 = vld [vmem:[%s17682_s2 + $0xd8] sm:$0xff] }
  0x1e   :  { %18071 = vst [vmem:[#allocation20_spill] sm:$0xff] %v13896_v11  ;;  %12011 = vmatprep.subr.bf16.mxu1 %v13840_v50  ;;  %18072 = vst [vmem:[#allocation21_spill] sm:$0xff] %v13900_v12  ;;  %v13925_v38 = vand.u32 4294901760, %v13890_v8  ;;  %v13928_v43 = vand.u32 4294901760, %v13900_v12  ;;  %v13931_v44 = vand.u32 4294901760, %v13903_v13  ;;  %v104_v53 = vsel %vm90_vm0, %v41_v17, 0 }
  0x1f   :  { %18073 = vst [vmem:[#allocation22_spill] sm:$0xff] %v13903_v13  ;;  %18074 = vst [vmem:[#allocation23_spill] sm:$0xff] %v13912_v19  ;;  %v201_v21 = vsub.f32 %v13893_v10, %v13912_v19  ;;  %v212_v30 = vsub.f32 %v13896_v11, %v13915_v20  ;;  %v1091_v56 = vand.u32 4294901760, %v58_v18  ;;  %v13947_v57 = vsub.f32 %v13777_v24, %v139_v31  ;;  %v42_v17 = vld [vmem:[%s17681_s1 + $0x28] sm:$0xff]  ;;  %v73_v19 = vld [vmem:[%s17682_s2 + $0xe0] sm:$0xff] }
  0x20   :  { %18075 = vst [vmem:[#allocation24_spill] sm:$0xff] %v13915_v20  ;;  %18076 = vst [vmem:[#allocation25_spill] sm:$0xff] %v13925_v38  ;;  %v13950_v4 = vpack.c.bf16 %v1087_v15, %v1083_v14  ;;  %v13952_v3 = vand.u32 4294901760, %v104_v53  ;;  %v1095_v48 = vand.u32 4294901760, %v63_v29  ;;  %v13962_v9 = vsub.f32 %v48_v58, %v1083_v14  ;;  %v68_v20 = vld [vmem:[%s17682_s2 + $0xb8] sm:$0xff]  ;;  %v78_v10 = vld [vmem:[%s17682_s2 + $0x108] sm:$0xff] }
  0x21   :  { %18077 = vst [vmem:[#allocation26_spill] sm:$0xff] %v13928_v43  ;;  %18078 = vst [vmem:[#allocation27_spill] sm:$0xff] %v13931_v44  ;;  %12013 = vmatpush1.bf16.msra.mxu1 %v13882_v6  ;;  %v13960_v32 = vand.u32 4294901760, %v201_v21  ;;  %v13964_v24 = vpack.c.bf16 %v1089_v28, %v1085_v27  ;;  %v1093_v31 = vand.u32 4294901760, %v13936_v52  ;;  %v223_v6 = vsub.f32 %v13900_v12, %v13928_v43  ;;  %v67_v21 = vld [vmem:[%s17682_s2 + $0xb0] sm:$0xff] }
  0x22   :  { %148 = vmatprep.subr.mxu1 %v13885_v7  ;;  %18079 = vst [vmem:[#allocation28_spill] sm:$0xff] %v13950_v4  ;;  %18080 = vst [vmem:[#allocation29_spill] sm:$0xff] %v13952_v3  ;;  %v13975_v50 = vsub.f32 %v53_v59, %v1087_v15  ;;  %v13978_v58 = vsub.f32 %v104_v53, %v13952_v3  ;;  %v13980_v14 = vpack.c.bf16 %v1095_v48, %v1091_v56  ;;  %v18087_v23 = vmov 0.0   ;;  %v77_v3 = vld [vmem:[%s17682_s2 + $0x100] sm:$0xff] }
  0x23   :  { %18081 = vst [vmem:[#allocation30_spill] sm:$0xff] %v13960_v32  ;;  %18082 = vst [vmem:[#allocation31_spill] sm:$0xff] %v13964_v24  ;;  %v13989_v36 = vand.u32 4294901760, %v212_v30  ;;  %v234_v59 = vsub.f32 %v13903_v13, %v13931_v44  ;;  %v1097_v15 = vand.u32 4294901760, %v62_v47  ;;  %v107_v53 = vsel %vm90_vm0, %v42_v17, 0 }
  0x24   :  { %18083 = vst [vmem:[#allocation32_spill] sm:$0xff] %v13978_v58  ;;  %18084 = vst [vmem:[#allocation33_spill] sm:$0xff] %v13980_v14  ;;  %v13997_v43 = vand.u32 4294901760, %v13978_v58  ;;  %v13999_v12 = vand.u32 4294901760, %v107_v53  ;;  %v1099_v26 = vand.u32 4294901760, %v68_v20  ;;  %v1103_v11 = vand.u32 4294901760, %v73_v19 }
  0x25   :  { %150 = vmatpush1.msra.mxu1 %v13925_v38  ;;  %v14003_v30 = vsub.f32 %v47_v2, %v1085_v27  ;;  %v14005_v44 = vpack.c.bf16 %v1097_v15, %v1093_v31  ;;  %v1101_v17 = vand.u32 4294901760, %v67_v21  ;;  %v1105_v13 = vand.u32 4294901760, %v72_v46 }
  0x26   :  { %203 = vmatmul.mubr.f32.vlgmr.msra.gmra.mrb[0].mxu1 %v13960_v32  ;;  %12095 = vmatprep.subr.bf16.mxu1 %v13950_v4  ;;  %18085 = vst [vmem:[#allocation34_spill] sm:$0xff] %v13997_v43  ;;  %18086 = vst [vmem:[#allocation35_spill] sm:$0xff] %v13999_v12  ;;  %v14014_v4 = vsub.f32 %v13875_v5, %v1089_v28  ;;  %v14020_v2 = vsub.f32 %v107_v53, %v13999_v12  ;;  %v82_v5 = vld [vmem:[%s17682_s2 + $0x128] sm:$0xff]  ;;  %v14033_v28 = vand.u32 4294901760, %v223_v6 }
  0x27   :  { %208 = vmatprep.mubr.f32.mxu1 %v18087_v23  ;;  %12097 = vmatpush1.bf16.msra.mxu1 %v13964_v24  ;;  %18088 = vst [vmem:[#allocation36_spill] sm:$0xff] %v14005_v44  ;;  %v14017_v24 = vsub.f32 %v58_v18, %v1091_v56  ;;  %v14022_v27 = vpack.c.bf16 %v1103_v11, %v1099_v26  ;;  %v14035_v18 = vand.u32 4294901760, %v234_v59  ;;  %v110_v6 = vsel %vm90_vm0, %v43_v22, 0 }
  0x28   :  { %12099 = vmatprep.subr.bf16.mxu1 %v13980_v14  ;;  %18089 = vst [vmem:[#allocation37_spill] sm:$0xff] %v14020_v2  ;;  %v245_v56 = vsub.f32 %v13978_v58, %v13997_v43  ;;  %v14039_v53 = vsub.f32 %v63_v29, %v1095_v48  ;;  %v44_v14 = vld [vmem:[%s17681_s1 + $0x38] sm:$0xff]  ;;  %v14046_v12 = vand.u32 4294901760, %v14020_v2  ;;  %v14048_v63 = vpack.c.bf16 %v1105_v13, %v1101_v17 }
  0x29   :  { %18090 = vst [vmem:[#allocation38_spill] sm:$0xff] %v14022_v27  ;;  %v1107_v59 = vand.u32 4294901760, %v78_v10  ;;  %v14053_v48 = vand.u32 4294901760, %v110_v6  ;;  %v1111_v29 = vand.u32 4294901760, %v83_v16  ;;  %v1109_v43 = vand.u32 4294901760, %v77_v3 }
  0x2a   :  { %214 = vmatmul.mubr.f32.gmra.mrb[2].mxu1 %v13989_v36  ;;  %18091 = vst [vmem:[#allocation39_spill] sm:$0xff] %v14046_v12  ;;  %18092 = vst [vmem:[#allocation40_spill] sm:$0xff] %v14048_v63  ;;  %v1113_v58 = vand.u32 4294901760, %v82_v5  ;;  %v14056_v62 = vsub.f32 %v13936_v52, %v1093_v31  ;;  %v14058_v55 = vsub.f32 %v62_v47, %v1097_v15  ;;  %v113_v22 = vsel %vm90_vm0, %v44_v14, 0  ;;  %v14076_v47 = vld [vmem:[%s17682_s2 + $0x158] sm:$0xff]  ;;  %v87_v14 = vld [vmem:[%s17682_s2 + $0x150] sm:$0xff] }
  0x2b   :  { %219 = vmatprep.mubr.f32.mxu1 %v18087_v23  ;;  %12101 = vmatpush1.bf16.msra.mxu1 %v14005_v44  ;;  %18093 = vst [vmem:[#allocation41_spill] sm:$0xff] %v14053_v48  ;;  %v14061_v54 = vsub.f32 %v68_v20, %v1099_v26  ;;  %v14064_v8 = vsub.f32 %v73_v19, %v1103_v11  ;;  %v14079_v26 = vand.u32 4294901760, %v245_v56  ;;  %v14085_v20 = vand.u32 4294901760, %v113_v22 }
  0x2c   :  { %12103 = vmatprep.subr.bf16.mxu1 %v14022_v27  ;;  %v14066_v38 = vsub.f32 %v67_v21, %v1101_v17  ;;  %v14069_v44 = vsub.f32 %v110_v6, %v14053_v48  ;;  %v14071_v51 = vpack.c.bf16 %v1111_v29, %v1107_v59  ;;  %v254_v11 = vsub.f32 %v14020_v2, %v14046_v12 }
  0x2d   :  { %18097 = vst [vmem:[#allocation45_spill] sm:$0xff] %v14079_v26  ;;  %v14083_v19 = vsub.f32 %v72_v46, %v1105_v13  ;;  %18098 = vst [vmem:[#allocation46_spill] sm:$0xff] %v14085_v20  ;;  %v14092_v31 = vpack.c.bf16 %v1113_v58, %v1109_v43  ;;  %v17761_v21 = vand.u32 4294901760, %v13962_v9  ;;  %v17760_v46 = vand.u32 4294901760, %v13975_v50 }
  0x2e   :  { %18094 = vst [vmem:[#allocation42_spill] sm:$0xff] %v14066_v38  ;;  %18095 = vst [vmem:[#allocation43_spill] sm:$0xff] %v14069_v44  ;;  %225 = vmatmul.mubr.f32.gmra.mrb[4].mxu1 %v14033_v28  ;;  %v14090_v52 = vand.u32 4294901760, %v14069_v44  ;;  %v14100_v13 = vsub.f32 %v78_v10, %v1107_v59  ;;  %v14103_v15 = vsub.f32 %v113_v22, %v14085_v20  ;;  %v14106_v17 = vand.u32 4294901760, %v14076_v47 }
  0x2f   :  { %18096 = vst [vmem:[#allocation44_spill] sm:$0xff] %v14071_v51  ;;  %230 = vmatprep.mubr.f32.mxu1 %v18087_v23  ;;  %12105 = vmatpush1.bf16.msra.mxu1 %v14048_v63  ;;  %18100 = vst [vmem:[#allocation48_spill] sm:$0xff] %v14092_v31  ;;  %v14109_v6 = vsub.f32 %v83_v16, %v1111_v29  ;;  %v1249_v12 = vsub.f32 %v13962_v9, %v17761_v21  ;;  %v14119_v59 = vand.u32 4294901760, %v254_v11 }
  0x30   :  { %18099 = vst [vmem:[#allocation47_spill] sm:$0xff] %v14090_v52  ;;  %12107 = vmatprep.subr.bf16.mxu1 %v14071_v51  ;;  %18101 = vst [vmem:[#allocation49_spill] sm:$0xff] %v14103_v15  ;;  %v1261_v2 = vsub.f32 %v13975_v50, %v17760_v46  ;;  %v14121_v22 = vsub.f32 %v77_v3, %v1109_v43  ;;  %v14123_v51 = vand.u32 4294901760, %v87_v14  ;;  %v14134_v3 = vand.u32 4294901760, %v14103_v15 }
  0x31   :  { %18102 = vst [vmem:[#allocation50_spill] sm:$0xff] %v14106_v17  ;;  %18103 = vst [vmem:[#allocation51_spill] sm:$0xff] %v14109_v6  ;;  %v263_v29 = vsub.f32 %v14069_v44, %v14090_v52  ;;  %v1250_v46 = vand.u32 4294901760, %v1249_v12  ;;  %v14131_v56 = vsub.f32 %v82_v5, %v1113_v58  ;;  %v18110_v11 = vand.u32 4294901760, %v14003_v30 }
  0x32   :  { %236 = vmatmul.mubr.f32.gmra.mrb[6].mxu1 %v14035_v18  ;;  %18104 = vst [vmem:[#allocation52_spill] sm:$0xff] %v14119_v59  ;;  %18105 = vst [vmem:[#allocation53_spill] sm:$0xff] %v14121_v22  ;;  %v1262_v21 = vand.u32 4294901760, %v1261_v2  ;;  %v14138_v43 = vsub.f32 %v87_v14, %v14123_v51  ;;  %v18111_v12 = vand.u32 4294901760, %v14014_v4  ;;  %v17774_v58 = vand.u32 4294901760, %v14056_v62 }
  0x33   :  { %18106 = vst [vmem:[#allocation54_spill] sm:$0xff] %v14123_v51  ;;  %241 = vmatprep.mubr.f32.mxu1 %v18087_v23  ;;  %12109 = vmatpush1.bf16.msra.mxu1 %v14092_v31  ;;  %18107 = vst [vmem:[#allocation55_spill] sm:$0xff] %v14131_v56  ;;  %v1255_v16 = vsub.f32 %v14003_v30, %v18110_v11  ;;  %v17777_v5 = vand.u32 4294901760, %v14058_v55  ;;  %v18112_v10 = vand.u32 4294901760, %v14017_v24  ;;  %v18113_v44 = vand.u32 4294901760, %v14039_v53 }
  0x34   :  { %18108 = vst [vmem:[#allocation56_spill] sm:$0xff] %v14134_v3  ;;  %1116 = vmatprep.subr.mxu1 %v14106_v17  ;;  %18109 = vst [vmem:[#allocation57_spill] sm:$0xff] %v14138_v43  ;;  %v12110_v52 = vpack.c.bf16 %v1262_v21, %v1250_v46  ;;  %v1267_v2 = vsub.f32 %v14014_v4, %v18111_v12  ;;  %v17778_v21 = vand.u32 4294901760, %v14061_v54  ;;  %v14158_v11 = vand.u32 4294901760, %v263_v29 }
  0x35   :  { %v1273_v14 = vsub.f32 %v14017_v24, %v18112_v10  ;;  %v1285_v31 = vsub.f32 %v14039_v53, %v18113_v44  ;;  %v1279_v12 = vsub.f32 %v14056_v62, %v17774_v58  ;;  %v1291_v10 = vsub.f32 %v14058_v55, %v17777_v5 }
  0x36   :  { %247 = vmatmul.mubr.f32.gmra.mrb[8].mxu1 %v14079_v26  ;;  %18114 = vst [vmem:[#allocation58_spill] sm:$0xff] %v14158_v11  ;;  %v17785_v44 = vand.u32 4294901760, %v14066_v38  ;;  %v1297_v46 = vsub.f32 %v14061_v54, %v17778_v21  ;;  %v18115_v29 = vand.u32 4294901760, %v14064_v8  ;;  %v17793_v27 = vand.u32 4294901760, %v14100_v13 }
  0x37   :  { %250 = vmatprep.mubr.f32.mxu1 %v18087_v23  ;;  %1118 = vmatpush1.msra.mxu1 %v14123_v51  ;;  %v17792_v51 = vand.u32 4294901760, %v14083_v19  ;;  %v272_v58 = vsub.f32 %v14103_v15, %v14134_v3  ;;  %v1256_v20 = vand.u32 4294901760, %v1255_v16  ;;  %v1268_v5 = vand.u32 4294901760, %v1267_v2 }
  0x38   :  { %12111 = vmatprep.subr.bf16.mxu1 %v12110_v52  ;;  %v1309_v63 = vsub.f32 %v14064_v8, %v18115_v29  ;;  %v1303_v52 = vsub.f32 %v14066_v38, %v17785_v44  ;;  %v1274_v21 = vand.u32 4294901760, %v1273_v14  ;;  %v1286_v48 = vand.u32 4294901760, %v1285_v31 }
  0x39   :  { %v1315_v29 = vsub.f32 %v14083_v19, %v17792_v51  ;;  %v1321_v26 = vsub.f32 %v14100_v13, %v17793_v27  ;;  %v1280_v16 = vand.u32 4294901760, %v1279_v12  ;;  %v1292_v2 = vand.u32 4294901760, %v1291_v10 }
  0x3a   :  { %256 = vmatmul.mubr.f32.gmra.mrb[10].mxu1 %v14119_v59  ;;  %v17794_v3 = vand.u32 4294901760, %v14109_v6  ;;  %v17795_v44 = vand.u32 4294901760, %v14121_v22  ;;  %v1298_v15 = vand.u32 4294901760, %v1297_v46  ;;  %v1310_v59 = vand.u32 4294901760, %v1309_v63 }
  0x3b   :  { %259 = vmatprep.mubr.f32.mxu1 %v18087_v23  ;;  %v1304_v14 = vand.u32 4294901760, %v1303_v52  ;;  %v17798_v31 = vand.u32 4294901760, %v14131_v56  ;;  %v1316_v38 = vand.u32 4294901760, %v1315_v29  ;;  %v14200_v12 = vsub.f32 %v14076_v47, %v14106_v17 }
  0x3c   :  { %v1333_v51 = vsub.f32 %v14109_v6, %v17794_v3  ;;  %v1327_v27 = vsub.f32 %v14121_v22, %v17795_v44  ;;  %v14203_v46 = vand.u32 4294901760, %v272_v58  ;;  %v1322_v63 = vand.u32 4294901760, %v1321_v26 }
  0x3d   :  { %v1339_v10 = vsub.f32 %v14131_v56, %v17798_v31  ;;  %v18116_v29 = vand.u32 4294901760, %v13782_v25  ;;  %v17807_v17 = vand.u32 4294901760, %v14200_v12  ;;  %v18117_v58 = vand.u32 4294901760, %v13795_v33 }
  0x3e   :  { %265 = vmatmul.mubr.f32.gmra.mrb[12].mxu1 %v14158_v11  ;;  %v1334_v47 = vand.u32 4294901760, %v1333_v51  ;;  %v1328_v44 = vand.u32 4294901760, %v1327_v27  ;;  %v18118_v31 = vand.u32 4294901760, %v13800_v34  ;;  %v12112_v11 = vpack.c.bf16 %v1268_v5, %v1256_v20 }
  0x3f   :  { %v14212_v3 = vsub.f32 %v13782_v25, %v18116_v29  ;;  %268 = vmatprep.mubr.f32.mxu1 %v18087_v23  ;;  %v14219_v26 = vsub.f32 %v13795_v33, %v18117_v58  ;;  %v1340_v56 = vand.u32 4294901760, %v1339_v10  ;;  %v12114_v25 = vpack.c.bf16 %v1286_v48, %v1274_v21 }
  0x40   :  { %v14224_v52 = vsub.f32 %v13800_v34, %v18118_v31  ;;  %v12116_v29 = vpack.c.bf16 %v1292_v2, %v1280_v16  ;;  %v12118_v22 = vpack.c.bf16 %v1310_v59, %v1298_v15  ;;  %v14226_v6 = vpack.c.bf16 %v1316_v38, %v1304_v14 }
  0x41   :  { %v14229_v51 = vpack.c.bf16 %v1334_v47, %v1322_v63  ;;  %v14234_v33 = vsub.f32 %v14200_v12, %v17807_v17  ;;  %v18119_v27 = vand.u32 4294901760, %v14138_v43  ;;  %v18120_v48 = vand.u32 4294901760, %v13721_v0 }
  0x42   :  { %274 = vmatmul.mubr.f32.gmra.mrb[14].mxu1 %v14203_v46  ;;  %v14247_v38 = vpack.c.bf16 %v1340_v56, %v1328_v44  ;;  %v18121_v15 = vand.u32 4294901760, %v13726_v1  ;;  %v17811_v5 = vand.u32 4294901760, %v13802_v35  ;;  %v17810_v21 = vand.u32 4294901760, %v13812_v39 }
  0x43   :  { %v14239_v34 = vsub.f32 %v14138_v43, %v18119_v27  ;;  %v14244_v20 = vsub.f32 %v13721_v0, %v18120_v48  ;;  %1165 = vmatprep.mubr.f32.mxu1 %v18087_v23  ;;  %v17808_v2 = vand.u32 4294901760, %v13814_v40  ;;  %v17809_v0 = vand.u32 4294901760, %v13816_v41 }
  0x44   :  { %v14252_v59 = vsub.f32 %v13726_v1, %v18121_v15  ;;  %v17813_v14 = vand.u32 4294901760, %v13818_v42  ;;  %v287_v44 = vsub.f32 %v13802_v35, %v17811_v5  ;;  %v299_v1 = vsub.f32 %v13812_v39, %v17810_v21 }
  0x45   :  { %v17812_v16 = vand.u32 4294901760, %v14244_v20  ;;  %v322_v31 = vand.u32 4294901760, %v13827_v45  ;;  %v305_v10 = vsub.f32 %v13814_v40, %v17808_v2  ;;  %v317_v47 = vsub.f32 %v13816_v41, %v17809_v0 }
  0x46   :  { %v17817_v56 = vand.u32 4294901760, %v14252_v59  ;;  %1171 = vmatmul.mubr.f32.vlgmr.msra.gmra.mrb[16].mxu1 %v13960_v32  ;;  %v311_v58 = vsub.f32 %v13818_v42, %v17813_v14  ;;  %v288_v48 = vand.u32 4294901760, %v287_v44  ;;  %v300_v15 = vand.u32 4294901760, %v299_v1 }
  0x47   :  { %v281_v63 = vsub.f32 %v14244_v20, %v17812_v16  ;;  %1176 = vmatprep.mubr.f32.mxu1 %v18087_v23  ;;  %12113 = vmatpush1.bf16.msra.mxu1 %v12112_v11  ;;  %v323_v17 = vsub.f32 %v13827_v45, %v322_v31  ;;  %v306_v0 = vand.u32 4294901760, %v305_v10  ;;  %v318_v21 = vand.u32 4294901760, %v317_v47 }
  0x48   :  { %v293_v27 = vsub.f32 %v14252_v59, %v17817_v56  ;;  %12115 = vmatprep.subr.bf16.mxu1 %v12114_v25  ;;  %v312_v5 = vand.u32 4294901760, %v311_v58  ;;  %v12016_v14 = vpack.c.bf16 %v300_v15, %v288_v48  ;;  %v328_v11 = vand.u32 4294901760, %v13834_v49 }
  0x49   :  { %v282_v2 = vand.u32 4294901760, %v281_v63  ;;  %v324_v32 = vand.u32 4294901760, %v323_v17  ;;  %v12018_v43 = vpack.c.bf16 %v318_v21, %v306_v0  ;;  %v17824_v44 = vand.u32 4294901760, %v13861_v60 }
  0x4a   :  { %v294_v16 = vand.u32 4294901760, %v293_v27  ;;  %1182 = vmatmul.mubr.f32.gmra.mrb[18].mxu1 %v13989_v36  ;;  %v17822_v1 = vand.u32 4294901760, %v13863_v61  ;;  %v17820_v56 = vand.u32 4294901760, %v13922_v37  ;;  %v329_v17 = vsub.f32 %v13834_v49, %v328_v11 }
  0x4b   :  { %1187 = vmatprep.mubr.f32.mxu1 %v18087_v23  ;;  %12117 = vmatpush1.bf16.msra.mxu1 %v12116_v29  ;;  %v12020_v63 = vpack.c.bf16 %v324_v32, %v312_v5  ;;  %v17819_v10 = vand.u32 4294901760, %v13947_v57  ;;  %v341_v21 = vsub.f32 %v13861_v60, %v17824_v44  ;;  %v17818_v32 = vand.u32 4294901760, %v14212_v3 }
  0x4c   :  { %v12014_v25 = vpack.c.bf16 %v294_v16, %v282_v2  ;;  %12119 = vmatprep.subr.bf16.mxu1 %v12118_v22  ;;  %v335_v0 = vsub.f32 %v13863_v61, %v17822_v1  ;;  %v347_v29 = vsub.f32 %v13922_v37, %v17820_v56  ;;  %v330_v5 = vand.u32 4294901760, %v329_v17  ;;  %v18122_v17 = vld [vmem:[#allocation12_spill] sm:$0xff] }
  0x4d   :  { %v353_v22 = vsub.f32 %v13947_v57, %v17819_v10  ;;  %v17821_v16 = vand.u32 4294901760, %v14219_v26  ;;  %v17823_v2 = vand.u32 4294901760, %v14224_v52  ;;  %v342_v47 = vand.u32 4294901760, %v341_v21 }
  0x4e   :  { %12015 = vmatprep.subr.bf16.mxu0 %v12014_v25  ;;  %1193 = vmatmul.mubr.f32.gmra.mrb[20].mxu1 %v14033_v28  ;;  %v336_v58 = vand.u32 4294901760, %v335_v0  ;;  %v348_v27 = vand.u32 4294901760, %v347_v29  ;;  %v365_v48 = vsub.f32 %v14212_v3, %v17818_v32  ;;  %v1346_v15 = vand.u32 4294901760, %v14234_v33  ;;  %v18123_v32 = vld [vmem:[#allocation25_spill] sm:$0xff]  ;;  %v18124_v33 = vld [vmem:[#allocation18_spill] sm:$0xff] }
  0x4f   :  { %12017 = vmatpush1.bf16.msra.mxu0 %v12016_v14  ;;  %1198 = vmatprep.mubr.f32.mxu1 %v18087_v23  ;;  %v359_v25 = vsub.f32 %v14219_v26, %v17821_v16  ;;  %v371_v14 = vsub.f32 %v14224_v52, %v17823_v2  ;;  %v14328_v21 = vsub.f32 %v18122_v17, %v13885_v7  ;;  %v354_v29 = vand.u32 4294901760, %v353_v22 }
  0x50   :  { %12121 = vmatpush1.bf16.msra.mxu1 %v14226_v6  ;;  %12019 = vmatprep.subr.bf16.mxu0 %v12018_v43  ;;  %v12022_v0 = vpack.c.bf16 %v342_v47, %v330_v5  ;;  %v366_v6 = vand.u32 4294901760, %v365_v48  ;;  %v14333_v10 = vsub.f32 %v18124_v33, %v18123_v32  ;;  %v18125_v2 = vand.u32 4294901760, %v13962_v9 }
  0x51   :  { %12123 = vmatprep.subr.bf16.mxu1 %v14229_v51  ;;  %v360_v56 = vand.u32 4294901760, %v359_v25  ;;  %v372_v16 = vand.u32 4294901760, %v371_v14  ;;  %v17825_v1 = vand.u32 4294901760, %v14328_v21  ;;  %v18126_v44 = vand.u32 4294901760, %v13975_v50 }
  0x52   :  { %1204 = vmatmul.mubr.f32.gmra.mrb[22].mxu1 %v14035_v18  ;;  %v12024_v43 = vpack.c.bf16 %v348_v27, %v336_v58  ;;  %v17826_v51 = vand.u32 4294901760, %v14333_v10  ;;  %v18127_v5 = vand.u32 4294901760, %v14003_v30  ;;  %v18128_v22 = vand.u32 4294901760, %v14014_v4 }
  0x53   :  { %v14340_v17 = vpack.c.bf16 %v18126_v44, %v18125_v2  ;;  %12021 = vmatpush1.bf16.msra.mxu0 %v12020_v63  ;;  %1209 = vmatprep.mubr.f32.mxu1 %v18087_v23  ;;  %v1352_v48 = vand.u32 4294901760, %v14239_v34  ;;  %v377_v44 = vsub.f32 %v14328_v21, %v17825_v1  ;;  %v18129_v63 = vand.u32 4294901760, %v14017_v24 }
  0x54   :  { %v14348_v47 = vpack.c.bf16 %v18128_v22, %v18127_v5  ;;  %12125 = vmatpush1.bf16.msra.mxu1 %v14247_v38  ;;  %v18130_v2 = vand.u32 4294901760, %v14039_v53  ;;  %v12126_v27 = vpack.c.bf16 %v13975_v50, %v13962_v9  ;;  %12023 = vmatprep.subr.bf16.mxu0 %v12022_v0  ;;  %v12026_v25 = vpack.c.bf16 %v366_v6, %v354_v29  ;;  %v18136_v50 = vld [vmem:[#allocation42_spill] sm:$0xff] }
  0x55   :  { %1347 = vmatprep.subr.mxu1 %v1346_v15  ;;  %v18131_v38 = vand.u32 4294901760, %v14056_v62  ;;  %v18132_v34 = vand.u32 4294901760, %v14058_v55  ;;  %v12028_v33 = vpack.c.bf16 %v372_v16, %v360_v56  ;;  %v18133_v5 = vand.u32 4294901760, %v14061_v54  ;;  %v18140_v16 = vld [vmem:[#allocation51_spill] sm:$0xff] }
  0x56   :  { %v14360_v58 = vpack.c.bf16 %v18130_v2, %v18129_v63  ;;  %v18134_v22 = vand.u32 4294901760, %v14064_v8  ;;  %v18135_v63 = vld [vmem:[#allocation45_spill] sm:$0xff]  ;;  %v383_v9 = vsub.f32 %v14333_v10, %v17826_v51  ;;  %v18137_v15 = vand.u32 4294901760, %v18136_v50 }
  0x57   :  { %v14368_v14 = vpack.c.bf16 %v18132_v34, %v18131_v38  ;;  %1215 = vmatmul.mubr.f32.gmra.mrb[24].mxu1 %v18135_v63  ;;  %12025 = vmatpush1.bf16.msra.mxu0 %v12024_v43  ;;  %v18138_v0 = vand.u32 4294901760, %v14083_v19  ;;  %v18139_v56 = vand.u32 4294901760, %v14100_v13  ;;  %v18141_v6 = vand.u32 4294901760, %v18140_v16  ;;  %v18142_v38 = vld [vmem:[#allocation53_spill] sm:$0xff] }
  0x58   :  { %v14374_v1 = vpack.c.bf16 %v18134_v22, %v18133_v5  ;;  %1218 = vmatprep.mubr.f32.mxu1 %v18087_v23  ;;  %1353 = vmatpush1.msra.mxu1 %v1352_v48  ;;  %v378_v43 = vand.u32 4294901760, %v377_v44  ;;  %v18143_v34 = vand.u32 4294901760, %v18142_v38  ;;  %v18144_v5 = vld [vmem:[#allocation55_spill] sm:$0xff]  ;;  %v12032_v48 = vpack.c.bf16 %v13812_v39, %v13802_v35  ;;  %v18147_v44 = vld [vmem:[#allocation58_spill] sm:$0xff] }
  0x59   :  { %v14384_v29 = vpack.c.bf16 %v18138_v0, %v18137_v15  ;;  %v14390_v2 = vpack.c.bf16 %v18141_v6, %v18139_v56  ;;  %v18145_v22 = vand.u32 4294901760, %v18144_v5  ;;  %12127 = vmatprep.subr.bf16.mxu1 %v12126_v27  ;;  %12027 = vmatprep.subr.bf16.mxu0 %v12026_v25  ;;  %v18146_v15 = vld [vmem:[#allocation52_spill] sm:$0xff]  ;;  %v384_v0 = vand.u32 4294901760, %v383_v9  ;;  %v18148_v25 = vld [vmem:[#allocation13_spill] sm:$0xff] }
  0x5a   :  { %v12030_v56 = vpack.c.bf16 %v14252_v59, %v14244_v20  ;;  %v12034_v27 = vpack.c.bf16 %v13816_v41, %v13814_v40  ;;  %v12038_v9 = vpack.c.bf16 %v13861_v60, %v13834_v49  ;;  %v12128_v6 = vpack.c.bf16 %v14014_v4, %v14003_v30  ;;  %v18150_v30 = vld [vmem:[#allocation15_spill] sm:$0xff] }
  0x5b   :  { %v14397_v51 = vpack.c.bf16 %v18145_v22, %v18143_v34  ;;  %1224 = vmatmul.mubr.f32.gmra.mrb[26].mxu1 %v18146_v15  ;;  %12029 = vmatpush1.bf16.msra.mxu0 %v12028_v33  ;;  %v12036_v33 = vpack.c.bf16 %v13827_v45, %v13818_v42  ;;  %v12130_v34 = vpack.c.bf16 %v14039_v53, %v14017_v24  ;;  %v18162_v45 = vand.u32 4294901760, %v13863_v61 }
  0x5c   :  { %1227 = vmatprep.mubr.f32.mxu1 %v18087_v23  ;;  %379 = vmatprep.subr.mxu0 %v378_v43  ;;  %v18149_v43 = vld [vmem:[#allocation14_spill] sm:$0xff]  ;;  %v12040_v22 = vpack.c.bf16 %v13922_v37, %v13863_v61  ;;  %v12132_v4 = vpack.c.bf16 %v14058_v55, %v14056_v62  ;;  %v12134_v24 = vpack.c.bf16 %v14064_v8, %v14061_v54  ;;  %v18153_v62 = vand.u32 4294901760, %v13802_v35  ;;  %v18167_v61 = vld [vmem:[#allocation57_spill] sm:$0xff] }
  0x5d   :  { %v12044_v53 = vpack.c.bf16 %v14224_v52, %v14219_v26  ;;  %v12136_v54 = vpack.c.bf16 %v14083_v19, %v18136_v50  ;;  %v18154_v8 = vand.u32 4294901760, %v13812_v39  ;;  %v18156_v19 = vand.u32 4294901760, %v13814_v40  ;;  %v18160_v40 = vld [vmem:[#allocation5_spill] sm:$0xff] }
  0x5e   :  { %v18157_v35 = vand.u32 4294901760, %v13816_v41  ;;  %v18161_v41 = vand.u32 4294901760, %v13861_v60  ;;  %v18165_v49 = vand.u32 4294901760, %v13947_v57  ;;  %v18166_v60 = vand.u32 4294901760, %v14212_v3 }
  0x5f   :  { %1233 = vmatmul.mubr.f32.gmra.mrb[28].mxu1 %v18147_v44  ;;  %385 = vmatpush1.msra.mxu0 %v384_v0  ;;  %v12042_v0 = vpack.c.bf16 %v14212_v3, %v13947_v57  ;;  %v18172_v57 = vld [vmem:[#allocation46_spill] sm:$0xff]  ;;  %v18173_v3 = vld [vmem:[#allocation19_spill] sm:$0xff] }
  0x60   :  { %1236 = vmatprep.mubr.f32.mxu1 %v18087_v23  ;;  %434 = vmatmul.mubr.f32.vlgmr.msra.gmra.mrb[0].mxu0 %v18148_v25  ;;  %v14463_v39 = vpack.c.bf16 %v18157_v35, %v18156_v19  ;;  %v18186_v19 = vld [vmem:[#allocation22_spill] sm:$0xff]  ;;  %v18187_v35 = vld [vmem:[#allocation17_spill] sm:$0xff] }
  0x61   :  { %439 = vmatprep.mubr.f32.mxu0 %v18087_v23  ;;  %12031 = vmatprep.subr.bf16.mxu0 %v12030_v56  ;;  %v18151_v56 = vand.u32 4294901760, %v14244_v20  ;;  %v12138_v20 = vpack.c.bf16 %v18140_v16, %v14100_v13  ;;  %v12140_v13 = vpack.c.bf16 %v18144_v5, %v18142_v38  ;;  %v18159_v16 = vld [vmem:[#allocation29_spill] sm:$0xff]  ;;  %v18164_v5 = vld [vmem:[#allocation35_spill] sm:$0xff] }
  0x62   :  { %12033 = vmatpush1.bf16.msra.mxu0 %v12032_v48  ;;  %v18152_v48 = vand.u32 4294901760, %v14252_v59  ;;  %v18158_v59 = vand.u32 4294901760, %v13818_v42  ;;  %v14483_v42 = vpack.c.bf16 %v18161_v41, %v328_v11  ;;  %v14500_v11 = vpack.c.bf16 %v18166_v60, %v18165_v49  ;;  %v18190_v41 = vld [vmem:[#allocation32_spill] sm:$0xff]  ;;  %v18193_v49 = vld [vmem:[#allocation37_spill] sm:$0xff]  ;;  %v18194_v60 = vld [vmem:[#allocation54_spill] sm:$0xff] }
  0x63   :  { %1242 = vmatmul.mubr.f32.gmra.mrb[30].mxu1 %v14203_v46  ;;  %12035 = vmatprep.subr.bf16.mxu0 %v12034_v27  ;;  %v14451_v27 = vpack.c.bf16 %v18154_v8, %v18153_v62  ;;  %v18183_v62 = vld [vmem:[#allocation11_spill] sm:$0xff]  ;;  %v18184_v8 = vld [vmem:[#allocation36_spill] sm:$0xff] }
  0x64   :  { %1400 = vmatprep.mubr.f32.mxu1 %v18087_v23  ;;  %441 = vmatmul.mubr.f32.gmra.mrb[2].mxu0 %v18149_v43  ;;  %v14442_v55 = vpack.c.bf16 %v18152_v48, %v18151_v56  ;;  %v14472_v50 = vpack.c.bf16 %v322_v31, %v18158_v59  ;;  %v18163_v31 = vand.u32 4294901760, %v13922_v37  ;;  %v18168_v37 = vand.u32 4294901760, %v14219_v26  ;;  %v18175_v26 = vld [vmem:[#allocation7_spill] sm:$0xff]  ;;  %v18180_v56 = vld [vmem:[#allocation33_spill] sm:$0xff]  ;;  %v18189_v59 = vld [vmem:[#allocation44_spill] sm:$0xff] }
  0x65   :  { %446 = vmatprep.mubr.f32.mxu0 %v18087_v23  ;;  %v18181_v48 = vld [vmem:[#allocation21_spill] sm:$0xff] }
  0x66   :  { %12037 = vmatpush1.bf16.msra.mxu0 %v12036_v33  ;;  %v18155_v33 = vld [vmem:[#allocation16_spill] sm:$0xff]  ;;  %v14490_v38 = vpack.c.bf16 %v18163_v31, %v18162_v45  ;;  %v18192_v31 = vld [vmem:[#allocation50_spill] sm:$0xff] }
  0x67   :  { %1402 = vmatmul.mubr.f32.vlgmr.msra.gmra.mrb[16].mxu1 %v18148_v25  ;;  %12039 = vmatprep.subr.bf16.mxu0 %v12038_v9  ;;  %v18169_v9 = vand.u32 4294901760, %v14224_v52  ;;  %v18174_v52 = vld [vmem:[#allocation6_spill] sm:$0xff]  ;;  %v18191_v45 = vld [vmem:[#allocation48_spill] sm:$0xff] }
  0x68   :  { %1407 = vmatprep.mubr.f32.mxu1 %v18087_v23  ;;  %12129 = vmatpush1.bf16.msra.mxu1 %v12128_v6 }
  0x69   :  { %12131 = vmatprep.subr.bf16.mxu1 %v12130_v34  ;;  %448 = vmatmul.mubr.f32.gmra.mrb[4].mxu0 %v18150_v30  ;;  %v14508_v6 = vpack.c.bf16 %v18169_v9, %v18168_v37  ;;  %v18170_v34 = vld [vmem:[#allocation28_spill] sm:$0xff]  ;;  %v18195_v37 = vld [vmem:[#allocation43_spill] sm:$0xff] }
  0x6a   :  { %453 = vmatprep.mubr.f32.mxu0 %v18087_v23  ;;  %12041 = vmatpush1.bf16.msra.mxu0 %v12040_v22  ;;  %v18171_v22 = vld [vmem:[#allocation41_spill] sm:$0xff]  ;;  %v18197_v9 = vld [vmem:[#allocation23_spill] sm:$0xff] }
  0x6b   :  { %1409 = vmatmul.mubr.f32.gmra.mrb[18].mxu1 %v18149_v43  ;;  %12043 = vmatprep.subr.bf16.mxu0 %v12042_v0  ;;  %v18176_v0 = vld [vmem:[#allocation20_spill] sm:$0xff] }
  0x6c   :  { %1414 = vmatprep.mubr.f32.mxu1 %v18087_v23  ;;  %12133 = vmatpush1.bf16.msra.mxu1 %v12132_v4  ;;  %v18177_v4 = vld [vmem:[#allocation8_spill] sm:$0xff] }
  0x6d   :  { %12135 = vmatprep.subr.bf16.mxu1 %v12134_v24  ;;  %455 = vmatmul.mubr.f32.gmra.mrb[6].mxu0 %v18155_v33  ;;  %v18178_v24 = vld [vmem:[#allocation9_spill] sm:$0xff] }
  0x6e   :  { %460 = vmatprep.mubr.f32.mxu0 %v18087_v23  ;;  %12045 = vmatpush1.bf16.msra.mxu0 %v12044_v53  ;;  %v18179_v53 = vld [vmem:[#allocation31_spill] sm:$0xff] }
  0x6f   :  { %1416 = vmatmul.mubr.f32.gmra.mrb[20].mxu1 %v18150_v30  ;;  %531 = vmatprep.subr.mxu0 %v14328_v21 }
  0x70   :  { %1421 = vmatprep.mubr.f32.mxu1 %v18087_v23  ;;  %12137 = vmatpush1.bf16.msra.mxu1 %v12136_v54  ;;  %v18182_v54 = vld [vmem:[#allocation10_spill] sm:$0xff] }
  0x71   :  { %12139 = vmatprep.subr.bf16.mxu1 %v12138_v20  ;;  %462 = vmatmul.mubr.f32.gmra.mrb[8].mxu0 %v18159_v16  ;;  %v18185_v20 = vld [vmem:[#allocation38_spill] sm:$0xff] }
  0x72   :  { %465 = vmatprep.mubr.f32.mxu0 %v18087_v23  ;;  %534 = vmatpush1.msra.mxu0 %v14333_v10 }
  0x73   :  { %1423 = vmatmul.mubr.f32.gmra.mrb[22].mxu1 %v18155_v33  ;;  %12047 = vmatprep.subr.bf16.mxu0 %v18160_v40 }
  0x74   :  { %1428 = vmatprep.mubr.f32.mxu1 %v18087_v23  ;;  %12141 = vmatpush1.bf16.msra.mxu1 %v12140_v13  ;;  %v18188_v13 = vld [vmem:[#allocation40_spill] sm:$0xff] }
  0x75   :  { %1499 = vmatprep.subr.mxu1 %v14200_v12  ;;  %467 = vmatmul.mubr.f32.gmra.mrb[10].mxu0 %v18164_v5 }
  0x76   :  { %470 = vmatprep.mubr.f32.mxu0 %v18087_v23 }
  0x77   :  { %1430 = vmatmul.mubr.f32.gmra.mrb[32].mxu1 %v18159_v16 }
  0x78   :  { %1433 = vmatprep.mubr.f32.mxu1 %v18087_v23  ;;  %1502 = vmatpush1.msra.mxu1 %v18167_v61 }
  0x79   :  { %12143 = vmatprep.subr.bf16.mxu1 %v18170_v34  ;;  %472 = vmatmul.mubr.f32.gmra.mrb[12].mxu0 %v18171_v22 }
  0x7a   :  { %475 = vmatprep.mubr.f32.mxu0 %v18087_v23 }
  0x7b   :  { %1435 = vmatmul.mubr.f32.gmra.mrb[34].mxu1 %v18164_v5 }
  0x7c   :  { %1438 = vmatprep.mubr.f32.mxu1 %v18087_v23 }
  0x7d   :  { %477 = vmatmul.mubr.f32.gmra.mrb[14].mxu0 %v18172_v57 }
  0x7e   :  { %581 = vmatprep.mubr.f32.mxu0 %v18087_v23 }
  0x7f   :  { %1440 = vmatmul.mubr.f32.gmra.mrb[36].mxu1 %v18171_v22 }
  0x80   :  { %1443 = vmatprep.mubr.f32.mxu1 %v18087_v23 }
  0x81   :  { %584 = vmatmul.mubr.f32.vlgmr.msra.gmra.mrb[0].mxu0 %v18173_v3 }
  0x82   :  { %589 = vmatprep.mubr.f32.mxu0 %v18087_v23  ;;  %12049 = vmatpush1.bf16.msra.mxu0 %v18174_v52 }
  0x83   :  { %1445 = vmatmul.mubr.f32.gmra.mrb[38].mxu1 %v18172_v57  ;;  %12051 = vmatprep.subr.bf16.mxu0 %v18175_v26 }
  0x84   :  { %1549 = vmatprep.mubr.f32.mxu1 %v18087_v23 }
  0x85   :  { %592 = vmatmul.mubr.f32.gmra.mrb[2].mxu0 %v18176_v0 }
  0x86   :  { %597 = vmatprep.mubr.f32.mxu0 %v18087_v23  ;;  %12053 = vmatpush1.bf16.msra.mxu0 %v18177_v4 }
  0x87   :  { %1552 = vmatmul.mubr.f32.vlgmr.msra.gmra.mrb[16].mxu1 %v18173_v3  ;;  %12055 = vmatprep.subr.bf16.mxu0 %v18178_v24 }
  0x88   :  { %1557 = vmatprep.mubr.f32.mxu1 %v18087_v23  ;;  %12145 = vmatpush1.bf16.msra.mxu1 %v18179_v53 }
  0x89   :  { %12147 = vmatprep.subr.bf16.mxu1 %v18180_v56  ;;  %600 = vmatmul.mubr.f32.gmra.mrb[4].mxu0 %v18181_v48 }
  0x8a   :  { %605 = vmatprep.mubr.f32.mxu0 %v18087_v23  ;;  %12057 = vmatpush1.bf16.msra.mxu0 %v18182_v54 }
  0x8b   :  { %1560 = vmatmul.mubr.f32.gmra.mrb[18].mxu1 %v18176_v0  ;;  %12059 = vmatprep.subr.bf16.mxu0 %v18183_v62 }
  0x8c   :  { %1565 = vmatprep.mubr.f32.mxu1 %v18087_v23  ;;  %12149 = vmatpush1.bf16.msra.mxu1 %v18184_v8 }
  0x8d   :  { %12151 = vmatprep.subr.bf16.mxu1 %v18185_v20  ;;  %608 = vmatmul.mubr.f32.gmra.mrb[6].mxu0 %v18186_v19 }
  0x8e   :  { %613 = vmatprep.mubr.f32.mxu0 %v18087_v23  ;;  %12061 = vmatpush1.bf16.msra.mxu0 %v18187_v35 }
  0x8f   :  { %1568 = vmatmul.mubr.f32.gmra.mrb[20].mxu1 %v18181_v48  ;;  %671 = vmatprep.subr.mxu0 %v13885_v7 }
  0x90   :  { %1573 = vmatprep.mubr.f32.mxu1 %v18087_v23  ;;  %12153 = vmatpush1.bf16.msra.mxu1 %v18188_v13 }
  0x91   :  { %12155 = vmatprep.subr.bf16.mxu1 %v18189_v59  ;;  %616 = vmatmul.mubr.f32.gmra.mrb[16].mxu0 %v18190_v41 }
  0x92   :  { %619 = vmatprep.mubr.f32.mxu0 %v18087_v23  ;;  %673 = vmatpush1.msra.mxu0 %v18123_v32 }
  0x93   :  { %1576 = vmatmul.mubr.f32.gmra.mrb[22].mxu1 %v18186_v19  ;;  %12063 = vmatprep.subr.bf16.mxu0 %v14442_v55  ;;  %v18196_v55 = vld [vmem:[#allocation49_spill] sm:$0xff] }
  0x94   :  { %1581 = vmatprep.mubr.f32.mxu1 %v18087_v23  ;;  %12157 = vmatpush1.bf16.msra.mxu1 %v18191_v45 }
  0x95   :  { %1639 = vmatprep.subr.mxu1 %v18192_v31  ;;  %622 = vmatmul.mubr.f32.gmra.mrb[18].mxu0 %v18193_v49 }
  0x96   :  { %625 = vmatprep.mubr.f32.mxu0 %v18087_v23 }
  0x97   :  { %1584 = vmatmul.mubr.f32.gmra.mrb[40].mxu1 %v18190_v41 }
  0x98   :  { %1587 = vmatprep.mubr.f32.mxu1 %v18087_v23  ;;  %1641 = vmatpush1.msra.mxu1 %v18194_v60 }
  0x99   :  { %12159 = vmatprep.subr.bf16.mxu1 %v14340_v17  ;;  %628 = vmatmul.mubr.f32.gmra.mrb[20].mxu0 %v18195_v37  ;;  %v18198_v17 = vld [vmem:[#allocation24_spill] sm:$0xff] }
  0x9a   :  { %631 = vmatprep.mubr.f32.mxu0 %v18087_v23 }
  0x9b   :  { %1590 = vmatmul.mubr.f32.gmra.mrb[42].mxu1 %v18193_v49 }
  0x9c   :  { %1593 = vmatprep.mubr.f32.mxu1 %v18087_v23 }
  0x9d   :  { %634 = vmatmul.mubr.f32.gmra.mrb[22].mxu0 %v18196_v55 }
  0x9e   :  { %720 = vmatprep.mubr.f32.mxu0 %v18087_v23 }
  0x9f   :  { %1596 = vmatmul.mubr.f32.gmra.mrb[44].mxu1 %v18195_v37 }
  0xa0   :  { %1599 = vmatprep.mubr.f32.mxu1 %v18087_v23 }
  0xa1   :  { %724 = vmatmul.mubr.f32.vlgmr.msra.gmra.mrb[0].mxu0 %v18197_v9 }
  0xa2   :  { %729 = vmatprep.mubr.f32.mxu0 %v18087_v23  ;;  %12065 = vmatpush1.bf16.msra.mxu0 %v14451_v27  ;;  %v18199_v27 = vld [vmem:[#allocation26_spill] sm:$0xff] }
  0xa3   :  { %1602 = vmatmul.mubr.f32.gmra.mrb[46].mxu1 %v18196_v55  ;;  %12067 = vmatprep.subr.bf16.mxu0 %v14463_v39  ;;  %v18200_v39 = vld [vmem:[#allocation27_spill] sm:$0xff] }
  0xa4   :  { %1688 = vmatprep.mubr.f32.mxu1 %v18087_v23 }
  0xa5   :  { %733 = vmatmul.mubr.f32.gmra.mrb[2].mxu0 %v18198_v17 }
  0xa6   :  { %738 = vmatprep.mubr.f32.mxu0 %v18087_v23  ;;  %12069 = vmatpush1.bf16.msra.mxu0 %v14472_v50 }
  0xa7   :  { %1692 = vmatmul.mubr.f32.vlgmr.msra.gmra.mrb[16].mxu1 %v18197_v9  ;;  %12071 = vmatprep.subr.bf16.mxu0 %v14483_v42 }
  0xa8   :  { %1697 = vmatprep.mubr.f32.mxu1 %v18087_v23  ;;  %12161 = vmatpush1.bf16.msra.mxu1 %v14348_v47  ;;  %v18201_v47 = vand.u32 4294901760, %v14328_v21  ;;  %v18204_v21 = vand.u32 4294901760, %v14200_v12  ;;  %v18208_v12 = vld [vmem:[#allocation56_spill] sm:$0xff] }
  0xa9   :  { %12163 = vmatprep.subr.bf16.mxu1 %v14360_v58  ;;  %742 = vmatmul.mubr.f32.gmra.mrb[4].mxu0 %v18199_v27  ;;  %v18202_v58 = vld [vmem:[#allocation34_spill] sm:$0xff] }
  0xaa   :  { %747 = vmatprep.mubr.f32.mxu0 %v18087_v23  ;;  %12073 = vmatpush1.bf16.msra.mxu0 %v14490_v38 }
  0xab   :  { %1701 = vmatmul.mubr.f32.gmra.mrb[18].mxu1 %v18198_v17  ;;  %12075 = vmatprep.subr.bf16.mxu0 %v14500_v11 }
  0xac   :  { %1706 = vmatprep.mubr.f32.mxu1 %v18087_v23  ;;  %12165 = vmatpush1.bf16.msra.mxu1 %v14368_v14  ;;  %v18205_v14 = vld [vmem:[#allocation39_spill] sm:$0xff] }
  0xad   :  { %12167 = vmatprep.subr.bf16.mxu1 %v14374_v1  ;;  %751 = vmatmul.mubr.f32.gmra.mrb[6].mxu0 %v18200_v39  ;;  %v18203_v1 = vand.u32 4294901760, %v14333_v10  ;;  %v18206_v10 = vand.u32 4294901760, %v18167_v61  ;;  %v69_v61 = vld [vmem:[%s17682_s2 + $0xc0] sm:$0xff] }
  0xae   :  { %756 = vmatprep.mubr.f32.mxu0 %v18087_v23  ;;  %12077 = vmatpush1.bf16.msra.mxu0 %v14508_v6  ;;  %v74_v6 = vld [vmem:[%s17682_s2 + $0xe8] sm:$0xff] }
  0xaf   :  { %1710 = vmatmul.mubr.f32.gmra.mrb[20].mxu1 %v18199_v27  ;;  %852 = vmatprep.subr.mxu0 %v18201_v47 }
  0xb0   :  { %1715 = vmatprep.mubr.f32.mxu1 %v18087_v23  ;;  %12169 = vmatpush1.bf16.msra.mxu1 %v14384_v29  ;;  %v18207_v29 = vld [vmem:[#allocation47_spill] sm:$0xff] }
  0xb1   :  { %12171 = vmatprep.subr.bf16.mxu1 %v14390_v2  ;;  %760 = vmatmul.mubr.f32.gmra.mrb[24].mxu0 %v18202_v58  ;;  %v54_v2 = vld [vmem:[%s17682_s2 + $0x48] sm:$0xff] }
  0xb2   :  { %763 = vmatprep.mubr.f32.mxu0 %v18087_v23  ;;  %856 = vmatpush1.msra.mxu0 %v18203_v1 }
  0xb3   :  { %1719 = vmatmul.mubr.f32.gmra.mrb[22].mxu1 %v18200_v39  ;;  %12079 = vmatprep.subr.bf16.mxu0 %v18160_v40  ;;  %v2055_v40 = vand.u32 4294901760, %v54_v2 }
  0xb4   :  { %1724 = vmatprep.mubr.f32.mxu1 %v18087_v23  ;;  %12173 = vmatpush1.bf16.msra.mxu1 %v14397_v51  ;;  %v49_v51 = vld [vmem:[%s17682_s2 + $0x20] sm:$0xff] }
  0xb5   :  { %1820 = vmatprep.subr.mxu1 %v18204_v21  ;;  %767 = vmatmul.mubr.f32.gmra.mrb[26].mxu0 %v18205_v14  ;;  %v2052_v50 = vand.u32 4294901760, %v49_v51 }
  0xb6   :  { %770 = vmatprep.mubr.f32.mxu0 %v18087_v23 }
  0xb7   :  { %1728 = vmatmul.mubr.f32.gmra.mrb[48].mxu1 %v18202_v58  ;;  %v14660_v42 = vpack.c.bf16 %v2055_v40, %v2052_v50 }
  0xb8   :  { %1731 = vmatprep.mubr.f32.mxu1 %v18087_v23  ;;  %1824 = vmatpush1.msra.mxu1 %v18206_v10 }
  0xb9   :  { %12175 = vmatprep.subr.bf16.mxu1 %v18170_v34  ;;  %774 = vmatmul.mubr.f32.gmra.mrb[28].mxu0 %v18207_v29  ;;  %v2064_v34 = vand.u32 4294901760, %v69_v61 }
  0xba   :  { %777 = vmatprep.mubr.f32.mxu0 %v18087_v23 }
  0xbb   :  { %1735 = vmatmul.mubr.f32.gmra.mrb[50].mxu1 %v18205_v14 }
  0xbc   :  { %1738 = vmatprep.mubr.f32.mxu1 %v18087_v23 }
  0xbd   :  { %781 = vmatmul.mubr.f32.gmra.mrb[30].mxu0 %v18208_v12 }
  0xbe   :  { %903 = vmatprep.mubr.f32.mxu0 %v18087_v23 }
  0xbf   :  { %1742 = vmatmul.mubr.f32.gmra.mrb[52].mxu1 %v18207_v29 }
  0xc0   :  { %1745 = vmatprep.mubr.f32.mxu1 %v18087_v23 }
  0xc1   :  { %905 = vmatmul.mubr.f32.vlgmr.msra.gmra.mrb[0].mxu0 %v18148_v25 }
  0xc2   :  { %910 = vmatprep.mubr.f32.mxu0 %v18087_v23  ;;  %12081 = vmatpush1.bf16.msra.mxu0 %v18174_v52  ;;  %v2067_v52 = vand.u32 4294901760, %v74_v6 }
  0xc3   :  { %1749 = vmatmul.mubr.f32.gmra.mrb[54].mxu1 %v18208_v12  ;;  %12083 = vmatprep.subr.bf16.mxu0 %v18175_v26 }
  0xc4   :  { %1871 = vmatprep.mubr.f32.mxu1 %v18087_v23 }
  0xc5   :  { %912 = vmatmul.mubr.f32.gmra.mrb[2].mxu0 %v18149_v43 }
  0xc6   :  { %917 = vmatprep.mubr.f32.mxu0 %v18087_v23  ;;  %12085 = vmatpush1.bf16.msra.mxu0 %v18177_v4  ;;  %v14699_v4 = vsub.f32 %v49_v51, %v2052_v50 }
  0xc7   :  { %1873 = vmatmul.mubr.f32.vlgmr.msra.gmra.mrb[16].mxu1 %v18148_v25  ;;  %12087 = vmatprep.subr.bf16.mxu0 %v18178_v24  ;;  %v14701_v24 = vsub.f32 %v54_v2, %v2055_v40  ;;  %v14756_v40 = vsub.f32 %v69_v61, %v2064_v34 }
  0xc8   :  { %1878 = vmatprep.mubr.f32.mxu1 %v18087_v23  ;;  %12177 = vmatpush1.bf16.msra.mxu1 %v18179_v53  ;;  %v79_v53 = vld [vmem:[%s17682_s2 + $0x110] sm:$0xff] }
  0xc9   :  { %12179 = vmatprep.subr.bf16.mxu1 %v18180_v56  ;;  %919 = vmatmul.mubr.f32.gmra.mrb[4].mxu0 %v18150_v30  ;;  %v84_v56 = vld [vmem:[%s17682_s2 + $0x138] sm:$0xff]  ;;  %v17827_v61 = vand.u32 4294901760, %v14756_v40 }
  0xca   :  { %924 = vmatprep.mubr.f32.mxu0 %v18087_v23  ;;  %12089 = vmatpush1.bf16.msra.mxu0 %v18182_v54  ;;  %v14713_v54 = vpack.c.bf16 %v2067_v52, %v2064_v34 }
  0xcb   :  { %1880 = vmatmul.mubr.f32.gmra.mrb[18].mxu1 %v18149_v43  ;;  %12091 = vmatprep.subr.bf16.mxu0 %v18183_v62  ;;  %v2070_v62 = vand.u32 4294901760, %v79_v53 }
  0xcc   :  { %1885 = vmatprep.mubr.f32.mxu1 %v18087_v23  ;;  %12181 = vmatpush1.bf16.msra.mxu1 %v18184_v8  ;;  %v2073_v8 = vand.u32 4294901760, %v84_v56 }
  0xcd   :  { %12183 = vmatprep.subr.bf16.mxu1 %v18185_v20  ;;  %926 = vmatmul.mubr.f32.gmra.mrb[6].mxu0 %v18155_v33  ;;  %v2204_v20 = vand.u32 4294901760, %v14699_v4 }
  0xce   :  { %931 = vmatprep.mubr.f32.mxu0 %v18087_v23  ;;  %12093 = vmatpush1.bf16.msra.mxu0 %v18187_v35  ;;  %v2211_v35 = vand.u32 4294901760, %v14701_v24 }
  0xcf   :  { %1887 = vmatmul.mubr.f32.gmra.mrb[20].mxu1 %v18150_v30  ;;  %985 = vmatprep.subr.mxu0 %v13885_v7  ;;  %v59_v7 = vld [vmem:[%s17682_s2 + $0x70] sm:$0xff] }
  0xd0   :  { %1892 = vmatprep.mubr.f32.mxu1 %v18087_v23  ;;  %12185 = vmatpush1.bf16.msra.mxu1 %v18188_v13  ;;  %v2058_v38 = vand.u32 4294901760, %v59_v7  ;;  %v14725_v13 = vpack.c.bf16 %v2073_v8, %v2070_v62 }
  0xd1   :  { %12187 = vmatprep.subr.bf16.mxu1 %v18189_v59  ;;  %933 = vmatmul.mubr.f32.gmra.mrb[32].mxu0 %v18159_v16  ;;  %v2205_v59 = vsub.f32 %v14699_v4, %v2204_v20 }
  0xd2   :  { %936 = vmatprep.mubr.f32.mxu0 %v18087_v23  ;;  %987 = vmatpush1.msra.mxu0 %v18123_v32  ;;  %v64_v32 = vld [vmem:[%s17682_s2 + $0x98] sm:$0xff]  ;;  %v14744_v21 = vsub.f32 %v59_v7, %v2058_v38  ;;  %v14758_v7 = vpack.c.bf16 %v2211_v35, %v2204_v20 }
  0xd3   :  { %1894 = vmatmul.mubr.f32.gmra.mrb[22].mxu1 %v18155_v33  ;;  %12191 = vmatprep.subr.bf16.mxu0 %v14660_v42  ;;  %v2061_v11 = vand.u32 4294901760, %v64_v32  ;;  %v2206_v47 = vand.u32 4294901760, %v2205_v59 }
  0xd4   :  { %1899 = vmatprep.mubr.f32.mxu1 %v18087_v23  ;;  %12189 = vmatpush1.bf16.msra.mxu1 %v18191_v45  ;;  %v2212_v45 = vsub.f32 %v14701_v24, %v2211_v35  ;;  %v17830_v2 = vand.u32 4294901760, %v14744_v21 }
  0xd5   :  { %1953 = vmatprep.subr.mxu1 %v18192_v31  ;;  %938 = vmatmul.mubr.f32.gmra.mrb[34].mxu0 %v18164_v5  ;;  %v14697_v26 = vpack.c.bf16 %v2061_v11, %v2058_v38  ;;  %v89_v31 = vld [vmem:[%s17682_s2 + $0x160] sm:$0xff]  ;;  %v14746_v10 = vsub.f32 %v64_v32, %v2061_v11  ;;  %v14761_v32 = vsub.f32 %v74_v6, %v2067_v52 }
  0xd6   :  { %941 = vmatprep.mubr.f32.mxu0 %v18087_v23  ;;  %v2213_v1 = vand.u32 4294901760, %v2212_v45  ;;  %v2219_v38 = vsub.f32 %v14744_v21, %v17830_v2  ;;  %v14774_v6 = vsub.f32 %v79_v53, %v2070_v62  ;;  %v14776_v52 = vsub.f32 %v84_v56, %v2073_v8 }
  0xd7   :  { %1901 = vmatmul.mubr.f32.gmra.mrb[56].mxu1 %v18159_v16  ;;  %v17828_v50 = vand.u32 4294901760, %v14746_v10  ;;  %v17829_v34 = vand.u32 4294901760, %v14761_v32  ;;  %v2233_v45 = vsub.f32 %v14756_v40, %v17827_v61 }
  0xd8   :  { %1904 = vmatprep.mubr.f32.mxu1 %v18087_v23  ;;  %1955 = vmatpush1.msra.mxu1 %v18194_v60  ;;  %v14738_v60 = vand.u32 4294901760, %v89_v31  ;;  %v12206_v51 = vpack.c.bf16 %v2213_v1, %v2206_v47  ;;  %v2220_v35 = vand.u32 4294901760, %v2219_v38  ;;  %v2246_v62 = vand.u32 4294901760, %v14774_v6  ;;  %v18212_v1 = vld [vmem:[#allocation30_spill] sm:$0xff] }
  0xd9   :  { %943 = vmatmul.mubr.f32.gmra.mrb[36].mxu0 %v18171_v22  ;;  %v2226_v11 = vsub.f32 %v14746_v10, %v17828_v50  ;;  %v2240_v56 = vsub.f32 %v14761_v32, %v17829_v34  ;;  %v17831_v8 = vand.u32 4294901760, %v14776_v52 }
  0xda   :  { %946 = vmatprep.mubr.f32.mxu0 %v18087_v23  ;;  %v2247_v34 = vsub.f32 %v14774_v6, %v2246_v62 }
  0xdb   :  { %1906 = vmatmul.mubr.f32.gmra.mrb[58].mxu1 %v18164_v5  ;;  %v2227_v59 = vand.u32 4294901760, %v2226_v11  ;;  %v2234_v11 = vand.u32 4294901760, %v2233_v45  ;;  %v2241_v50 = vand.u32 4294901760, %v2240_v56  ;;  %v2254_v2 = vsub.f32 %v14776_v52, %v17831_v8 }
  0xdc   :  { %1909 = vmatprep.mubr.f32.mxu1 %v18087_v23  ;;  %v2248_v56 = vand.u32 4294901760, %v2247_v34 }
  0xdd   :  { %948 = vmatmul.mubr.f32.gmra.mrb[38].mxu0 %v18172_v57  ;;  %v12210_v38 = vpack.c.bf16 %v2227_v59, %v2220_v35  ;;  %v12214_v45 = vpack.c.bf16 %v2241_v50, %v2234_v11 }
  0xde   :  { %1034 = vmatprep.mubr.f32.mxu0 %v18087_v23 }
  0xdf   :  { %1911 = vmatmul.mubr.f32.gmra.mrb[60].mxu1 %v18171_v22 }
  0xe0   :  { %1914 = vmatprep.mubr.f32.mxu1 %v18087_v23 }
  0xe1   :  { %1036 = vmatmul.mubr.f32.vlgmr.msra.gmra.mrb[0].mxu0 %v18148_v25 }
  0xe2   :  { %1041 = vmatprep.mubr.f32.mxu0 %v18087_v23  ;;  %12193 = vmatpush3.bf16.msra.mxu0 %v14660_v42 }
  0xe3   :  { %1916 = vmatmul.mubr.f32.gmra.mrb[62].mxu1 %v18172_v57  ;;  %12195 = vmatprep.subr.bf16.mxu0 %v14697_v26 }
  0xe4   :  { %2002 = vmatprep.mubr.f32.mxu1 %v18087_v23 }
  0xe5   :  { %1043 = vmatmul.mubr.f32.gmra.mrb[2].mxu0 %v18149_v43 }
  0xe6   :  { %1048 = vmatprep.mubr.f32.mxu0 %v18087_v23  ;;  %12197 = vmatpush3.bf16.msra.mxu0 %v14697_v26 }
  0xe7   :  { %2004 = vmatmul.mubr.f32.vlgmr.msra.gmra.mrb[16].mxu1 %v18148_v25  ;;  %12199 = vmatprep.subr.bf16.mxu0 %v14713_v54 }
  0xe8   :  { %2009 = vmatprep.mubr.f32.mxu1 %v18087_v23 }
  0xe9   :  { %1050 = vmatmul.mubr.f32.gmra.mrb[4].mxu0 %v18150_v30 }
  0xea   :  { %1055 = vmatprep.mubr.f32.mxu0 %v18087_v23  ;;  %12201 = vmatpush3.bf16.msra.mxu0 %v14713_v54 }
  0xeb   :  { %2011 = vmatmul.mubr.f32.gmra.mrb[18].mxu1 %v18149_v43  ;;  %12203 = vmatprep.subr.bf16.mxu0 %v14725_v13 }
  0xec   :  { %2016 = vmatprep.mubr.f32.mxu1 %v18087_v23 }
  0xed   :  { %1057 = vmatmul.mubr.f32.gmra.mrb[6].mxu0 %v18155_v33 }
  0xee   :  { %1062 = vmatprep.mubr.f32.mxu0 %v18087_v23  ;;  %12205 = vmatpush3.bf16.msra.mxu0 %v14725_v13 }
  0xef   :  { %2018 = vmatmul.mubr.f32.gmra.mrb[20].mxu1 %v18150_v30  ;;  %10634 = vmatprep.subr.mxu0 %v14738_v60 }
  0xf0   :  { %2023 = vmatprep.mubr.f32.mxu1 %v18087_v23 }
  0xf1   :  { %1064 = vmatmul.mubr.f32.gmra.mrb[40].mxu0 %v18159_v16 }
  0xf2   :  { %1067 = vmatprep.mubr.f32.mxu0 %v18087_v23  ;;  %10635 = vmatpush3.msra.mxu0 %v14738_v60 }
  0xf3   :  { %2025 = vmatmul.mubr.f32.gmra.mrb[22].mxu1 %v18155_v33  ;;  %12207 = vmatprep.subr.bf16.mxu0 %v12206_v51 }
  0xf4   :  { %2030 = vmatprep.mubr.f32.mxu1 %v18087_v23 }
  0xf5   :  { %1069 = vmatmul.mubr.f32.gmra.mrb[42].mxu0 %v18164_v5 }
  0xf6   :  { %1072 = vmatprep.mubr.f32.mxu0 %v18087_v23 }
  0xf7   :  { %2032 = vmatmul.mubr.f32.gmra.mrb[64].mxu1 %v18159_v16 }
  0xf8   :  { %2035 = vmatprep.mubr.f32.mxu1 %v18087_v23 }
  0xf9   :  { %1074 = vmatmul.mubr.f32.gmra.mrb[44].mxu0 %v18171_v22  ;;  %v14781_v20 = vpop.f32.mrb[0].mxu1 }
  0xfa   :  { %18209 = vst [vmem:[#allocation12_spill] sm:$0xff] %v14781_v20  ;;  %1077 = vmatprep.mubr.f32.mxu0 %v18087_v23  ;;  %v14787_v53 = vpop.f32.mrb[1].mxu1 }
  0xfb   :  { %18210 = vst [vmem:[#allocation25_spill] sm:$0xff] %v14787_v53  ;;  %2037 = vmatmul.mubr.f32.gmra.mrb[66].mxu1 %v18164_v5  ;;  %v2259_v53 = vsub.f32 %v89_v31, %v14738_v60 }
  0xfc   :  { %2040 = vmatprep.mubr.f32.mxu1 %v18087_v23 }
  0xfd   :  { %1079 = vmatmul.mubr.f32.gmra.mrb[46].mxu0 %v18172_v57  ;;  %v14797_v47 = vpop.f32.mrb[2].mxu1  ;;  %v14817_v8 = vand.u32 4294901760, %v2259_v53 }
  0xfe   :  { %18211 = vst [vmem:[#allocation18_spill] sm:$0xff] %v14797_v47  ;;  %10636 = vmatprep.mubr.f32.mxu0 %v18212_v1  ;;  %v14800_v61 = vpop.f32.mrb[3].mxu1  ;;  %v2255_v1 = vand.u32 4294901760, %v2254_v2 }
  0xff   :  { %18213 = vst [vmem:[#allocation45_spill] sm:$0xff] %v14800_v61  ;;  %2042 = vmatmul.mubr.f32.gmra.mrb[68].mxu1 %v18171_v22 }
 0x100   :  { %2045 = vmatprep.mubr.f32.mxu1 %v18087_v23 }
 0x101   :  { %10637 = vmatmul.mubr.f32.vlgmr.msra.gmra.mrb[48].mxu0 %v13989_v36  ;;  %v14812_v35 = vpop.f32.mrb[4].mxu1 }
 0x102   :  { %18214 = vst [vmem:[#allocation42_spill] sm:$0xff] %v14812_v35  ;;  %12209 = vmatpush3.bf16.msra.mxu0 %v12206_v51  ;;  %10639 = vmatprep.mubr.f32.mxu0 %v14033_v28  ;;  %v14815_v59 = vpop.f32.mrb[5].mxu1  ;;  %v12218_v28 = vpack.c.bf16 %v2255_v1, %v2248_v56  ;;  %v2261_v51 = vsub.f32 %v2259_v53, %v14817_v8 }
 0x103   :  { %18215 = vst [vmem:[#allocation51_spill] sm:$0xff] %v14815_v59  ;;  %12211 = vmatprep.subr.bf16.mxu0 %v12210_v38  ;;  %2047 = vmatmul.mubr.f32.gmra.mrb[70].mxu1 %v18172_v57 }
 0x105   :  { %10640 = vmatmul.mubr.f32.gmra.mrb[50].mxu0 %v14035_v18  ;;  %v14821_v31 = vpop.f32.mrb[6].mxu1  ;;  %v2262_v18 = vand.u32 4294901760, %v2261_v51 }
 0x106   :  { %18216 = vst [vmem:[#allocation53_spill] sm:$0xff] %v14821_v31  ;;  %12213 = vmatpush3.bf16.msra.mxu0 %v12210_v38  ;;  %10642 = vmatprep.mubr.f32.mxu0 %v18135_v63  ;;  %v14824_v36 = vpop.f32.mrb[7].mxu1  ;;  %v12222_v38 = vpack.c.bf16 %v14701_v24, %v14699_v4  ;;  %v12234_v4 = vpack.c.bf16 %v14776_v52, %v14774_v6 }
 0x107   :  { %18217 = vst [vmem:[#allocation55_spill] sm:$0xff] %v14824_v36  ;;  %12215 = vmatprep.subr.bf16.mxu0 %v12214_v45 }
 0x109   :  { %10643 = vmatmul.mubr.f32.gmra.mrb[52].mxu0 %v18146_v15  ;;  %v248_v2 = vpop.f32.mrb[8].mxu1  ;;  %v12226_v15 = vpack.c.bf16 %v14746_v10, %v14744_v21 }
 0x10a   :  { %12217 = vmatpush3.bf16.msra.mxu0 %v12214_v45  ;;  %10645 = vmatprep.mubr.f32.mxu0 %v18147_v44  ;;  %v249_v50 = vpop.f32.mrb[9].mxu1 }
 0x10b   :  { %12219 = vmatprep.subr.bf16.mxu0 %v12218_v28 }
 0x10d   :  { %10646 = vmatmul.mubr.f32.gmra.mrb[54].mxu0 %v14203_v46  ;;  %v257_v34 = vpop.f32.mrb[10].mxu1  ;;  %v12230_v46 = vpack.c.bf16 %v14761_v32, %v14756_v40 }
 0x10e   :  { %12221 = vmatpush3.bf16.msra.mxu0 %v12218_v28  ;;  %10666 = vmatprep.mubr.f32.mxu0 %v18148_v25  ;;  %v258_v63 = vpop.f32.mrb[11].mxu1 }
 0x10f   :  { %10664 = vmatprep.subr.mxu0 %v2262_v18 }
 0x111   :  { %v266_v11 = vpop.f32.mrb[12].mxu1 }
 0x112   :  { %10665 = vmatpush3.msra.mxu0 %v2262_v18  ;;  %v267_v44 = vpop.f32.mrb[13].mxu1 }
 0x113   :  { %12223 = vmatprep.subr.bf16.mxu0 %v12222_v38  ;;  %10667 = vmatmul.mubr.f32.vlgmr.msra.gmra.mrb[56].mxu0 %v18149_v43 }
 0x114   :  { %12225 = vmatpush3.bf16.msra.mxu0 %v12222_v38  ;;  %10669 = vmatprep.mubr.f32.mxu0 %v18150_v30 }
 0x115   :  { %12227 = vmatprep.subr.bf16.mxu0 %v12226_v15  ;;  %v275_v45 = vpop.f32.mrb[14].mxu1 }
 0x116   :  { %v276_v56 = vpop.f32.mrb[15].mxu1 }
 0x117   :  { %10670 = vmatmul.mubr.f32.gmra.mrb[58].mxu0 %v18155_v33 }
 0x118   :  { %12229 = vmatpush3.bf16.msra.mxu0 %v12226_v15  ;;  %10672 = vmatprep.mubr.f32.mxu0 %v18159_v16 }
 0x119   :  { %12231 = vmatprep.subr.bf16.mxu0 %v12230_v46 }
 0x11b   :  { %10673 = vmatmul.mubr.f32.gmra.mrb[52].mxu0 %v18164_v5 }
 0x11c   :  { %12233 = vmatpush3.bf16.msra.mxu0 %v12230_v46  ;;  %10675 = vmatprep.mubr.f32.mxu0 %v18171_v22 }
 0x11d   :  { %12235 = vmatprep.subr.bf16.mxu0 %v12234_v4 }
 0x11f   :  { %10676 = vmatmul.mubr.f32.gmra.mrb[54].mxu0 %v18172_v57 }
 0x120   :  { %12237 = vmatpush3.bf16.msra.mxu0 %v12234_v4  ;;  %10696 = vmatprep.mubr.f32.mxu0 %v18173_v3 }
 0x121   :  { %10694 = vmatprep.subr.mxu0 %v2259_v53 }
 0x124   :  { %10695 = vmatpush3.msra.mxu0 %v2259_v53 }
 0x125   :  { %12239 = vmatprep.subr.bf16.mxu0 %v14660_v42  ;;  %10697 = vmatmul.mubr.f32.vlgmr.msra.gmra.mrb[60].mxu0 %v18176_v0 }
 0x126   :  { %12241 = vmatpush3.bf16.msra.mxu0 %v14660_v42  ;;  %10699 = vmatprep.mubr.f32.mxu0 %v18181_v48 }
 0x127   :  { %12243 = vmatprep.subr.bf16.mxu0 %v14697_v26 }
 0x129   :  { %10700 = vmatmul.mubr.f32.gmra.mrb[62].mxu0 %v18186_v19 }
 0x12a   :  { %v1216_v24 = vpop.f32.mrb[24].mxu1  ;;  %12245 = vmatpush3.bf16.msra.mxu0 %v14697_v26  ;;  %10702 = vmatprep.mubr.f32.mxu0 %v18190_v41  ;;  %v18218_v41 = vand.u32 4294901760, %v14744_v21 }
 0x12b   :  { %v1217_v3 = vpop.f32.mrb[25].mxu1  ;;  %12247 = vmatprep.subr.bf16.mxu0 %v14713_v54 }
 0x12d   :  { %10703 = vmatmul.mubr.f32.gmra.mrb[52].mxu0 %v18193_v49  ;;  %v18219_v49 = vand.u32 4294901760, %v14746_v10 }
 0x12e   :  { %v1225_v53 = vpop.f32.mrb[26].mxu1  ;;  %12249 = vmatpush3.bf16.msra.mxu0 %v14713_v54  ;;  %10705 = vmatprep.mubr.f32.mxu0 %v18195_v37 }
 0x12f   :  { %v1226_v0 = vpop.f32.mrb[27].mxu1  ;;  %12251 = vmatprep.subr.bf16.mxu0 %v14725_v13  ;;  %v12258_v1 = vpack.c.bf16 %v18219_v49, %v18218_v41 }
 0x131   :  { %10706 = vmatmul.mubr.f32.gmra.mrb[54].mxu0 %v18196_v55  ;;  %v18220_v55 = vand.u32 4294901760, %v14756_v40 }
 0x132   :  { %v1234_v48 = vpop.f32.mrb[28].mxu1  ;;  %12253 = vmatpush3.bf16.msra.mxu0 %v14725_v13  ;;  %10726 = vmatprep.mubr.f32.mxu0 %v18197_v9  ;;  %v18221_v9 = vand.u32 4294901760, %v14761_v32 }
 0x133   :  { %v1235_v19 = vpop.f32.mrb[29].mxu1  ;;  %10724 = vmatprep.subr.mxu0 %v14738_v60 }
 0x134   :  { %v12262_v21 = vpack.c.bf16 %v18221_v9, %v18220_v55 }
 0x136   :  { %v1243_v28 = vpop.f32.mrb[30].mxu1  ;;  %10725 = vmatpush3.msra.mxu0 %v14738_v60 }
 0x137   :  { %v1244_v37 = vpop.f32.mrb[31].mxu1  ;;  %12255 = vmatprep.subr.bf16.mxu0 %v14758_v7  ;;  %10727 = vmatmul.mubr.f32.vlgmr.msra.gmra.mrb[64].mxu0 %v18198_v17  ;;  %v18222_v17 = vand.u32 4294901760, %v14776_v52 }
 0x138   :  { %12257 = vmatpush3.bf16.msra.mxu0 %v14758_v7  ;;  %10729 = vmatprep.mubr.f32.mxu0 %v18199_v27  ;;  %v2982_v27 = vld [vmem:[%s17684_s4 + $0x100] sm:$0xff] }
 0x139   :  { %12259 = vmatprep.subr.bf16.mxu0 %v12258_v1  ;;  %v12266_v10 = vpack.c.bf16 %v18222_v17, %v2246_v62 }
 0x13b   :  { %10730 = vmatmul.mubr.f32.gmra.mrb[66].mxu0 %v18200_v39  ;;  %v2988_v39 = vsel %vm2986_vm1, %v2982_v27, 0 }
 0x13c   :  { %12261 = vmatpush3.bf16.msra.mxu0 %v12258_v1  ;;  %10732 = vmatprep.mubr.f32.mxu0 %v18202_v58 }
 0x13d   :  { %12263 = vmatprep.subr.bf16.mxu0 %v12262_v21 }
 0x13f   :  { %10733 = vmatmul.mubr.f32.gmra.mrb[52].mxu0 %v18205_v14  ;;  %v14892_v14 = vand.u32 4294901760, %v2988_v39 }
 0x140   :  { %12265 = vmatpush3.bf16.msra.mxu0 %v12262_v21  ;;  %10735 = vmatprep.mubr.f32.mxu0 %v18207_v29 }
 0x141   :  { %12267 = vmatprep.subr.bf16.mxu0 %v12266_v10  ;;  %v14895_v29 = vsub.f32 %v2988_v39, %v14892_v14 }
 0x143   :  { %10736 = vmatmul.mubr.f32.gmra.mrb[54].mxu0 %v18208_v12  ;;  %18223 = vst [vmem:[#allocation52_spill] sm:$0xff] %v14895_v29  ;;  %v14901_v7 = vand.u32 4294901760, %v14895_v29 }
 0x144   :  { %12269 = vmatpush3.bf16.msra.mxu0 %v12266_v10  ;;  %10756 = vmatprep.mubr.f32.mxu0 %v18148_v25  ;;  %v463_v58 = vpop.f32.mrb[8].mxu0 }
 0x145   :  { %10754 = vmatprep.subr.mxu0 %v14817_v8  ;;  %v464_v40 = vpop.f32.mrb[9].mxu0  ;;  %18224 = vst [vmem:[#allocation58_spill] sm:$0xff] %v14901_v7  ;;  %v3071_v62 = vsub.f32 %v14895_v29, %v14901_v7 }
 0x147   :  { %v3072_v51 = vand.u32 4294901760, %v3071_v62 }
 0x148   :  { %10755 = vmatpush3.msra.mxu0 %v14817_v8  ;;  %v468_v12 = vpop.f32.mrb[10].mxu0 }
 0x149   :  { %12271 = vmatprep.subr.bf16.mxu0 %v14660_v42  ;;  %10757 = vmatmul.mubr.f32.vlgmr.msra.gmra.mrb[68].mxu0 %v18149_v43  ;;  %v469_v32 = vpop.f32.mrb[11].mxu0 }
 0x14a   :  { %v1431_v6 = vpop.f32.mrb[32].mxu1  ;;  %12273 = vmatpush3.bf16.msra.mxu0 %v14660_v42  ;;  %10759 = vmatprep.mubr.f32.mxu0 %v18150_v30 }
 0x14b   :  { %v1432_v52 = vpop.f32.mrb[33].mxu1  ;;  %12275 = vmatprep.subr.bf16.mxu0 %v14697_v26  ;;  %10806 = vmatprep.mubr.f32.mxu1 %v3072_v51 }
 0x14c   :  { %v473_v8 = vpop.f32.mrb[12].mxu0 }
 0x14d   :  { %10760 = vmatmul.mubr.f32.gmra.mrb[70].mxu0 %v18155_v33  ;;  %v474_v2 = vpop.f32.mrb[13].mxu0 }
 0x14e   :  { %v1436_v50 = vpop.f32.mrb[34].mxu1  ;;  %12277 = vmatpush3.bf16.msra.mxu0 %v14697_v26  ;;  %10762 = vmatprep.mubr.f32.mxu0 %v18159_v16 }
 0x14f   :  { %v1437_v18 = vpop.f32.mrb[35].mxu1  ;;  %12279 = vmatprep.subr.bf16.mxu0 %v14713_v54 }
 0x150   :  { %v478_v42 = vpop.f32.mrb[14].mxu0  ;;  %v2983_v18 = vld [vmem:[%s17684_s4 + $0x108] sm:$0xff] }
 0x151   :  { %10763 = vmatmul.mubr.f32.gmra.mrb[52].mxu0 %v18164_v5  ;;  %v479_v34 = vpop.f32.mrb[15].mxu0 }
 0x152   :  { %v1441_v63 = vpop.f32.mrb[36].mxu1  ;;  %12281 = vmatpush3.bf16.msra.mxu0 %v14713_v54  ;;  %10765 = vmatprep.mubr.f32.mxu0 %v18171_v22 }
 0x153   :  { %v1442_v38 = vpop.f32.mrb[37].mxu1  ;;  %12283 = vmatprep.subr.bf16.mxu0 %v14725_v13  ;;  %v2984_v63 = vld [vmem:[%s17684_s4 + $0x110] sm:$0xff] }
 0x154   :  { %v2991_v38 = vsel %vm2986_vm1, %v2983_v18, 0 }
 0x155   :  { %10766 = vmatmul.mubr.f32.gmra.mrb[54].mxu0 %v18172_v57 }
 0x156   :  { %v1446_v26 = vpop.f32.mrb[38].mxu1  ;;  %12285 = vmatpush3.bf16.msra.mxu0 %v14725_v13  ;;  %10786 = vmatprep.mubr.f32.mxu0 %v18148_v25 }
 0x157   :  { %v1447_v15 = vpop.f32.mrb[39].mxu1  ;;  %10784 = vmatprep.subr.mxu0 %v14738_v60  ;;  %v2985_v26 = vld [vmem:[%s17684_s4 + $0x118] sm:$0xff] }
 0x15a   :  { %10785 = vmatpush3.msra.mxu0 %v14738_v60 }
 0x15b   :  { %10787 = vmatmul.mubr.f32.vlgmr.msra.gmra.mrb[72].mxu0 %v18149_v43 }
 0x15c   :  { %10789 = vmatprep.mubr.f32.mxu0 %v18150_v30 }
 0x15f   :  { %10790 = vmatmul.mubr.f32.gmra.mrb[74].mxu0 %v18155_v33 }
 0x160   :  { %10792 = vmatprep.mubr.f32.mxu0 %v18159_v16 }
 0x163   :  { %10793 = vmatmul.mubr.f32.gmra.mrb[52].mxu0 %v18164_v5 }
 0x164   :  { %10795 = vmatprep.mubr.f32.mxu0 %v18171_v22  ;;  %v617_v54 = vpop.f32.mrb[16].mxu0 }
 0x165   :  { %v618_v13 = vpop.f32.mrb[17].mxu0  ;;  %v2994_v54 = vsel %vm2986_vm1, %v2984_v63, 0 }
 0x167   :  { %10796 = vmatmul.mubr.f32.gmra.mrb[54].mxu0 %v18172_v57 }
 0x168   :  { %v623_v25 = vpop.f32.mrb[18].mxu0  ;;  %11118 = vmatprep.mubr.f32.mxu0 %v3072_v51 }
 0x169   :  { %v624_v11 = vpop.f32.mrb[19].mxu0  ;;  %v14941_v25 = vand.u32 4294901760, %v2991_v38 }
 0x16a   :  { %v1585_v60 = vpop.f32.mrb[40].mxu1 }
 0x16b   :  { %v1586_v44 = vpop.f32.mrb[41].mxu1  ;;  %v2997_v60 = vsel %vm2986_vm1, %v2985_v26, 0 }
 0x16c   :  { %v629_v43 = vpop.f32.mrb[20].mxu0  ;;  %v14944_v44 = vand.u32 4294901760, %v2994_v54 }
 0x16d   :  { %v630_v46 = vpop.f32.mrb[21].mxu0 }
 0x16e   :  { %v1591_v30 = vpop.f32.mrb[42].mxu1 }
 0x16f   :  { %v1592_v45 = vpop.f32.mrb[43].mxu1 }
 0x170   :  { %v635_v33 = vpop.f32.mrb[22].mxu0  ;;  %v14949_v45 = vsub.f32 %v2991_v38, %v14941_v25 }
 0x171   :  { %v636_v56 = vpop.f32.mrb[23].mxu0  ;;  %v14951_v33 = vand.u32 4294901760, %v2997_v60 }
 0x172   :  { %v1597_v16 = vpop.f32.mrb[44].mxu1  ;;  %18227 = vst [vmem:[#allocation15_spill] sm:$0xff] %v14949_v45 }
 0x173   :  { %v1598_v4 = vpop.f32.mrb[45].mxu1  ;;  %18228 = vst [vmem:[#allocation16_spill] sm:$0xff] %v14951_v33 }
 0x174   :  { %v14954_v4 = vsub.f32 %v2994_v54, %v14944_v44 }
 0x176   :  { %v1603_v5 = vpop.f32.mrb[46].mxu1  ;;  %18229 = vst [vmem:[#allocation29_spill] sm:$0xff] %v14954_v4 }
 0x177   :  { %v1604_v24 = vpop.f32.mrb[47].mxu1 }
 0x184   :  { %v761_v22 = vpop.f32.mrb[24].mxu0 }
 0x185   :  { %v762_v3 = vpop.f32.mrb[25].mxu0 }
 0x188   :  { %v768_v53 = vpop.f32.mrb[26].mxu0 }
 0x189   :  { %v769_v0 = vpop.f32.mrb[27].mxu0  ;;  %v14961_v53 = vand.u32 4294901760, %v14949_v45 }
 0x18a   :  { %v1729_v57 = vpop.f32.mrb[48].mxu1  ;;  %v14964_v0 = vsub.f32 %v2997_v60, %v14951_v33 }
 0x18b   :  { %v1730_v48 = vpop.f32.mrb[49].mxu1  ;;  %18231 = vst [vmem:[#allocation35_spill] sm:$0xff] %v14961_v53 }
 0x18c   :  { %v775_v19 = vpop.f32.mrb[28].mxu0  ;;  %18232 = vst [vmem:[#allocation57_spill] sm:$0xff] %v14964_v0 }
 0x18d   :  { %v776_v41 = vpop.f32.mrb[29].mxu0 }
 0x18e   :  { %v1736_v49 = vpop.f32.mrb[50].mxu1 }
 0x18f   :  { %v1737_v1 = vpop.f32.mrb[51].mxu1 }
 0x190   :  { %v782_v28 = vpop.f32.mrb[30].mxu0  ;;  %v14969_v1 = vand.u32 4294901760, %v14954_v4 }
 0x191   :  { %v783_v37 = vpop.f32.mrb[31].mxu0 }
 0x192   :  { %v1743_v55 = vpop.f32.mrb[52].mxu1  ;;  %18233 = vst [vmem:[#allocation28_spill] sm:$0xff] %v14969_v1 }
 0x193   :  { %v1744_v9 = vpop.f32.mrb[53].mxu1 }
 0x196   :  { %v1750_v21 = vpop.f32.mrb[54].mxu1 }
 0x197   :  { %v1751_v17 = vpop.f32.mrb[55].mxu1 }
 0x1a4   :  { %v934_v10 = vpop.f32.mrb[32].mxu0 }
 0x1a5   :  { %v935_v27 = vpop.f32.mrb[33].mxu0  ;;  %v3081_v10 = vsub.f32 %v14949_v45, %v14961_v53 }
 0x1a6   :  { %v14978_v27 = vand.u32 4294901760, %v14964_v0 }
 0x1a8   :  { %v939_v39 = vpop.f32.mrb[34].mxu0  ;;  %18235 = vst [vmem:[#allocation46_spill] sm:$0xff] %v14978_v27  ;;  %v3101_v63 = vsub.f32 %v14964_v0, %v14978_v27 }
 0x1a9   :  { %v940_v58 = vpop.f32.mrb[35].mxu0 }
 0x1aa   :  { %v1902_v40 = vpop.f32.mrb[56].mxu1 }
 0x1ab   :  { %v1903_v12 = vpop.f32.mrb[57].mxu1 }
 0x1ac   :  { %v944_v32 = vpop.f32.mrb[36].mxu0 }
 0x1ad   :  { %v945_v6 = vpop.f32.mrb[37].mxu0 }
 0x1ae   :  { %v1907_v52 = vpop.f32.mrb[58].mxu1  ;;  %v3091_v6 = vsub.f32 %v14954_v4, %v14969_v1 }
 0x1af   :  { %v1908_v62 = vpop.f32.mrb[59].mxu1 }
 0x1b0   :  { %v949_v8 = vpop.f32.mrb[38].mxu0  ;;  %v14990_v54 = vand.u32 4294901760, %v3091_v6  ;;  %v15022_v6 = vld [vmem:[%s17683_s3 + $0x28] sm:$0xff] }
 0x1b1   :  { %v950_v51 = vpop.f32.mrb[39].mxu0 }
 0x1b2   :  { %v1912_v2 = vpop.f32.mrb[60].mxu1 }
 0x1b3   :  { %v1913_v50 = vpop.f32.mrb[61].mxu1 }
 0x1b4   :  { %v14984_v50 = vand.u32 4294901760, %v3081_v10 }
 0x1b6   :  { %v1917_v42 = vpop.f32.mrb[62].mxu1 }
 0x1b7   :  { %v1918_v34 = vpop.f32.mrb[63].mxu1 }
 0x1ba   :  { %v14938_v15 = vpop.f32.mrb[16].mxu1 }
 0x1bb   :  { %18225 = vst [vmem:[#allocation13_spill] sm:$0xff] %v14938_v15  ;;  %v2007_v13 = vpop.f32.mrb[17].mxu1 }
 0x1bc   :  { %v3000_v11 = vand.u32 4294901760, %v2007_v13 }
 0x1be   :  { %v3110_v43 = vsub.f32 %v2007_v13, %v3000_v11  ;;  %v14946_v46 = vpop.f32.mrb[18].mxu1 }
 0x1bf   :  { %18226 = vst [vmem:[#allocation14_spill] sm:$0xff] %v14946_v46  ;;  %v2014_v30 = vpop.f32.mrb[19].mxu1 }
 0x1c0   :  { %v3111_v56 = vand.u32 4294901760, %v3110_v43  ;;  %v3003_v16 = vand.u32 4294901760, %v2014_v30 }
 0x1c2   :  { %v14956_v5 = vpack.c.bf16 %v3003_v16, %v3000_v11  ;;  %v3117_v24 = vsub.f32 %v2014_v30, %v3003_v16  ;;  %v14958_v22 = vpop.f32.mrb[20].mxu1  ;;  %v3112_v57 = vsub.f32 %v3110_v43, %v3111_v56 }
 0x1c3   :  { %18230 = vst [vmem:[#allocation5_spill] sm:$0xff] %v14958_v22  ;;  %v2021_v3 = vpop.f32.mrb[21].mxu1 }
 0x1c4   :  { %v3118_v48 = vand.u32 4294901760, %v3117_v24  ;;  %v3006_v19 = vand.u32 4294901760, %v2021_v3  ;;  %12287 = vmatprep.subr.bf16.mxu1 %v14956_v5  ;;  %v12302_v41 = vpack.c.bf16 %v3117_v24, %v3110_v43  ;;  %v1065_v49 = vpop.f32.mrb[40].mxu0  ;;  %v3113_v40 = vand.u32 4294901760, %v3112_v57 }
 0x1c5   :  { %12289 = vmatpush3.bf16.msra.mxu1 %v14956_v5  ;;  %v1066_v28 = vpop.f32.mrb[41].mxu0 }
 0x1c6   :  { %v3119_v37 = vsub.f32 %v3117_v24, %v3118_v48  ;;  %v3124_v55 = vsub.f32 %v2021_v3, %v3006_v19  ;;  %v14971_v9 = vpop.f32.mrb[22].mxu1  ;;  %v14973_v21 = vpack.c.bf16 %v3118_v48, %v3111_v56  ;;  %v14993_v56 = vand.u32 4294901760, %v3101_v63 }
 0x1c7   :  { %18234 = vst [vmem:[#allocation41_spill] sm:$0xff] %v14971_v9  ;;  %v2028_v17 = vpop.f32.mrb[23].mxu1 }
 0x1c8   :  { %v3125_v39 = vand.u32 4294901760, %v3124_v55  ;;  %v3009_v58 = vand.u32 4294901760, %v2028_v17  ;;  %v3120_v12 = vand.u32 4294901760, %v3119_v37  ;;  %v1070_v32 = vpop.f32.mrb[42].mxu0 }
 0x1c9   :  { %v1071_v52 = vpop.f32.mrb[43].mxu0  ;;  %v15017_v32 = vld [vmem:[%s17683_s3] sm:$0xff] }
 0x1ca   :  { %v14982_v62 = vpack.c.bf16 %v3009_v58, %v3006_v19  ;;  %v3131_v8 = vsub.f32 %v2028_v17, %v3009_v58  ;;  %v12294_v51 = vpack.c.bf16 %v3120_v12, %v3113_v40  ;;  %v2033_v2 = vpop.f32.mrb[64].mxu1  ;;  %v3126_v42 = vsub.f32 %v3124_v55, %v3125_v39 }
 0x1cb   :  { %v2034_v18 = vpop.f32.mrb[65].mxu1  ;;  %v3634_v52 = vand.u32 4294901760, %v15022_v6 }
 0x1cc   :  { %v3132_v34 = vand.u32 4294901760, %v3131_v8  ;;  %12291 = vmatprep.subr.bf16.mxu1 %v14982_v62  ;;  %v12306_v38 = vpack.c.bf16 %v3131_v8, %v3124_v55  ;;  %v1075_v26 = vpop.f32.mrb[44].mxu0  ;;  %v3127_v16 = vand.u32 4294901760, %v3126_v42 }
 0x1cd   :  { %12293 = vmatpush3.bf16.msra.mxu1 %v14982_v62  ;;  %v1076_v13 = vpop.f32.mrb[45].mxu0 }
 0x1ce   :  { %v3133_v11 = vsub.f32 %v3131_v8, %v3132_v34  ;;  %12295 = vmatprep.subr.bf16.mxu1 %v12294_v51  ;;  %v12322_v60 = vpack.c.bf16 %v3132_v34, %v3125_v39  ;;  %v2038_v43 = vpop.f32.mrb[66].mxu1  ;;  %v15032_v8 = vld [vmem:[%s17683_s3 + $0x50] sm:$0xff]  ;;  %v15054_v34 = vld [vmem:[%s17683_s3 + $0xa0] sm:$0xff] }
 0x1cf   :  { %v2039_v30 = vpop.f32.mrb[67].mxu1  ;;  %v17839_v18 = vand.u32 4294901760, %v15032_v8  ;;  %v15076_v13 = vld [vmem:[%s17683_s3 + $0xf0] sm:$0xff] }
 0x1d0   :  { %10807 = vmatmul.mubr.f32.vlgmr.msra.gmra.mrb[72].mxu1 %v14984_v50  ;;  %v3134_v24 = vand.u32 4294901760, %v3133_v11  ;;  %v1080_v3 = vpop.f32.mrb[46].mxu0  ;;  %v17835_v30 = vand.u32 4294901760, %v15076_v13 }
 0x1d1   :  { %12297 = vmatpush3.bf16.msra.mxu1 %v12294_v51  ;;  %10809 = vmatprep.mubr.f32.mxu1 %v14990_v54  ;;  %v1081_v57 = vpop.f32.mrb[47].mxu0  ;;  %v15037_v51 = vld [vmem:[%s17683_s3 + $0x78] sm:$0xff]  ;;  %v15103_v3 = vld [vmem:[%s17683_s3 + $0x168] sm:$0xff] }
 0x1d2   :  { %v12298_v48 = vpack.c.bf16 %v3134_v24, %v3127_v16  ;;  %v2043_v19 = vpop.f32.mrb[68].mxu1  ;;  %v17838_v42 = vand.u32 4294901760, %v15037_v51  ;;  %v15098_v24 = vld [vmem:[%s17683_s3 + $0x140] sm:$0xff] }
 0x1d3   :  { %v2044_v49 = vpop.f32.mrb[69].mxu1 }
 0x1d4   :  { %10810 = vmatmul.mubr.f32.gmra.mrb[74].mxu1 %v14993_v56  ;;  %12299 = vmatprep.subr.bf16.mxu1 %v12298_v48  ;;  %v10638_v28 = vpop.f32.mrb[48].mxu0  ;;  %v15069_v63 = vpack.c.bf16 %v17838_v42, %v17839_v18  ;;  %v17833_v49 = vand.u32 4294901760, %v15098_v24 }
 0x1d5   :  { %12301 = vmatpush3.bf16.msra.mxu1 %v12298_v48  ;;  %10820 = vmatprep.mubr.f32.mxu1 %v14892_v14  ;;  %v2131_v37 = vpop.f32.mrb[49].mxu0  ;;  %v17832_v28 = vand.u32 4294901760, %v15103_v3 }
 0x1d6   :  { %12303 = vmatprep.subr.bf16.mxu1 %v12302_v41  ;;  %v2048_v55 = vpop.f32.mrb[70].mxu1 }
 0x1d7   :  { %v2049_v17 = vpop.f32.mrb[71].mxu1  ;;  %v15122_v37 = vpack.c.bf16 %v17832_v28, %v17833_v49 }
 0x1d8   :  { %10821 = vmatmul.mubr.f32.vlgmr.msra.gmra.mrb[72].mxu1 %v14941_v25  ;;  %v10641_v10 = vpop.f32.mrb[50].mxu0 }
 0x1d9   :  { %12305 = vmatpush3.bf16.msra.mxu1 %v12302_v41  ;;  %10823 = vmatprep.mubr.f32.mxu1 %v14944_v44  ;;  %v2149_v39 = vpop.f32.mrb[51].mxu0 }
 0x1da   :  { %12307 = vmatprep.subr.bf16.mxu1 %v12306_v38 }
 0x1dc   :  { %10824 = vmatmul.mubr.f32.gmra.mrb[74].mxu1 %v14951_v33 }
 0x1dd   :  { %12309 = vmatpush3.bf16.msra.mxu1 %v12306_v38  ;;  %10834 = vmatprep.mubr.f32.mxu1 %v14895_v29  ;;  %v17837_v38 = vand.u32 4294901760, %v15054_v34 }
 0x1de   :  { %12311 = vmatprep.subr.bf16.mxu1 %v14956_v5 }
 0x1e0   :  { %10835 = vmatmul.mubr.f32.vlgmr.msra.gmra.mrb[72].mxu1 %v14949_v45 }
 0x1e1   :  { %12313 = vmatpush3.bf16.msra.mxu1 %v14956_v5  ;;  %10837 = vmatprep.mubr.f32.mxu1 %v14954_v4 }
 0x1e2   :  { %12315 = vmatprep.subr.bf16.mxu1 %v14982_v62 }
 0x1e4   :  { %10838 = vmatmul.mubr.f32.gmra.mrb[74].mxu1 %v14964_v0 }
 0x1e5   :  { %12317 = vmatpush3.bf16.msra.mxu1 %v14982_v62  ;;  %10848 = vmatprep.mubr.f32.mxu1 %v14901_v7 }
 0x1e6   :  { %12319 = vmatprep.subr.bf16.mxu1 %v14973_v21  ;;  %v10668_v41 = vpop.f32.mrb[56].mxu0 }
 0x1e7   :  { %v2313_v58 = vpop.f32.mrb[57].mxu0 }
 0x1e8   :  { %10849 = vmatmul.mubr.f32.vlgmr.msra.gmra.mrb[72].mxu1 %v14961_v53 }
 0x1e9   :  { %12321 = vmatpush3.bf16.msra.mxu1 %v14973_v21  ;;  %10851 = vmatprep.mubr.f32.mxu1 %v14969_v1  ;;  %v3631_v21 = vand.u32 4294901760, %v15017_v32 }
 0x1ea   :  { %12323 = vmatprep.subr.bf16.mxu1 %v12322_v60  ;;  %v10671_v40 = vpop.f32.mrb[58].mxu0 }
 0x1eb   :  { %v2323_v12 = vpop.f32.mrb[59].mxu0  ;;  %v15047_v2 = vpack.c.bf16 %v3634_v52, %v3631_v21 }
 0x1ec   :  { %10852 = vmatmul.mubr.f32.gmra.mrb[74].mxu1 %v14978_v27 }
 0x1ed   :  { %12325 = vmatpush3.bf16.msra.mxu1 %v12322_v60  ;;  %10862 = vmatprep.mubr.f32.mxu1 %v14892_v14 }
 0x1ee   :  { %12327 = vmatprep.subr.bf16.mxu1 %v14956_v5 }
 0x1f0   :  { %10863 = vmatmul.mubr.f32.vlgmr.msra.gmra.mrb[72].mxu1 %v14941_v25 }
 0x1f1   :  { %12329 = vmatpush3.bf16.msra.mxu1 %v14956_v5  ;;  %10865 = vmatprep.mubr.f32.mxu1 %v14944_v44  ;;  %v15059_v5 = vld [vmem:[%s17683_s3 + $0xc8] sm:$0xff] }
 0x1f2   :  { %12331 = vmatprep.subr.bf16.mxu1 %v14982_v62  ;;  %v17836_v26 = vand.u32 4294901760, %v15059_v5 }
 0x1f4   :  { %10866 = vmatmul.mubr.f32.gmra.mrb[74].mxu1 %v14951_v33  ;;  %v15091_v43 = vpack.c.bf16 %v17836_v26, %v17837_v38  ;;  %v2896_v26 = vld [vmem:[%s17683_s3 + $0x230] sm:$0xff]  ;;  %v2897_v38 = vld [vmem:[%s17683_s3 + $0x258] sm:$0xff] }
 0x1f5   :  { %12333 = vmatpush3.bf16.msra.mxu1 %v14982_v62  ;;  %10876 = vmatprep.mubr.f32.mxu1 %v14892_v14  ;;  %v15081_v62 = vld [vmem:[%s17683_s3 + $0x118] sm:$0xff]  ;;  %v3673_v42 = vand.u32 4294901760, %v2896_v26  ;;  %v3676_v18 = vand.u32 4294901760, %v2897_v38 }
 0x1f6   :  { %12335 = vmatprep.subr.bf16.mxu1 %v15047_v2  ;;  %v17834_v16 = vand.u32 4294901760, %v15081_v62 }
 0x1f7   :  { %v15209_v23 = vsub.f32 %v2896_v26, %v3673_v42  ;;  %v15211_v9 = vsub.f32 %v2897_v38, %v3676_v18 }
 0x1f8   :  { %10877 = vmatmul.mubr.f32.vlgmr.msra.gmra.mrb[72].mxu1 %v14941_v25  ;;  %v10698_v11 = vpop.f32.mrb[60].mxu0  ;;  %v15112_v19 = vpack.c.bf16 %v17834_v16, %v17835_v30 }
 0x1f9   :  { %10879 = vmatprep.mubr.f32.mxu1 %v14944_v44  ;;  %v2441_v60 = vpop.f32.mrb[61].mxu0  ;;  %12337 = vmatpush3.bf16.msra.mxu1 %v15047_v2 }
 0x1fa   :  { %12339 = vmatprep.subr.bf16.mxu1 %v15069_v63 }
 0x1fc   :  { %10880 = vmatmul.mubr.f32.gmra.mrb[74].mxu1 %v14951_v33  ;;  %v10701_v57 = vpop.f32.mrb[62].mxu0 }
 0x1fd   :  { %v2453_v48 = vpop.f32.mrb[63].mxu0  ;;  %12341 = vmatpush3.bf16.msra.mxu1 %v15069_v63 }
 0x1fe   :  { %12343 = vmatprep.subr.bf16.mxu1 %v15091_v43 }
 0x201   :  { %12345 = vmatpush3.bf16.msra.mxu1 %v15091_v43 }
 0x202   :  { %12347 = vmatprep.subr.bf16.mxu1 %v15112_v19 }
 0x205   :  { %12349 = vmatpush3.bf16.msra.mxu1 %v15112_v19 }
 0x206   :  { %12351 = vmatprep.subr.bf16.mxu1 %v15122_v37 }
 0x209   :  { %12353 = vmatpush3.bf16.msra.mxu1 %v15122_v37 }
 0x20a   :  { %v10728_v55 = vpop.f32.mrb[64].mxu0 }
 0x20b   :  { %v2568_v17 = vpop.f32.mrb[65].mxu0  ;;  %v2892_v55 = vld [vmem:[%s17683_s3 + $0x190] sm:$0xff] }
 0x20c   :  { %v2893_v17 = vld [vmem:[%s17683_s3 + $0x1b8] sm:$0xff] }
 0x20e   :  { %v10731_v10 = vpop.f32.mrb[66].mxu0 }
 0x20f   :  { %v2582_v39 = vpop.f32.mrb[67].mxu0  ;;  %v3661_v10 = vand.u32 4294901760, %v2892_v55 }
 0x210   :  { %v3664_v39 = vand.u32 4294901760, %v2893_v17 }
 0x211   :  { %v15186_v61 = vsub.f32 %v2892_v55, %v3661_v10 }
 0x212   :  { %v15188_v47 = vsub.f32 %v2893_v17, %v3664_v39 }
 0x214   :  { %v17848_v20 = vand.u32 4294901760, %v15188_v47 }
 0x21c   :  { %v10758_v41 = vpop.f32.mrb[68].mxu0 }
 0x21d   :  { %v2718_v58 = vpop.f32.mrb[69].mxu0  ;;  %v15141_v41 = vpack.c.bf16 %v3664_v39, %v3661_v10 }
 0x21e   :  { %v2894_v58 = vld [vmem:[%s17683_s3 + $0x1e0] sm:$0xff] }
 0x21f   :  { %12355 = vmatprep.subr.bf16.mxu1 %v15141_v41 }
 0x220   :  { %v10761_v40 = vpop.f32.mrb[70].mxu0  ;;  %12357 = vmatpush3.bf16.msra.mxu1 %v15141_v41 }
 0x221   :  { %v2728_v12 = vpop.f32.mrb[71].mxu0  ;;  %v2895_v40 = vld [vmem:[%s17683_s3 + $0x208] sm:$0xff] }
 0x222   :  { %v3667_v12 = vand.u32 4294901760, %v2894_v58 }
 0x22e   :  { %v10788_v11 = vpop.f32.mrb[72].mxu0 }
 0x22f   :  { %v2836_v60 = vpop.f32.mrb[73].mxu0  ;;  %v3670_v11 = vand.u32 4294901760, %v2895_v40 }
 0x231   :  { %v15151_v60 = vpack.c.bf16 %v3670_v11, %v3667_v12 }
 0x232   :  { %v10791_v57 = vpop.f32.mrb[74].mxu0 }
 0x233   :  { %v2846_v48 = vpop.f32.mrb[75].mxu0  ;;  %v15156_v57 = vsub.f32 %v15017_v32, %v3631_v21  ;;  %12359 = vmatprep.subr.bf16.mxu1 %v15151_v60 }
 0x234   :  { %v15161_v48 = vsub.f32 %v15022_v6, %v3634_v52  ;;  %12361 = vmatpush3.bf16.msra.mxu1 %v15151_v60  ;;  %v15173_v6 = vpack.c.bf16 %v3676_v18, %v3673_v42 }
 0x235   :  { %v17840_v32 = vand.u32 4294901760, %v15156_v57 }
 0x236   :  { %v15127_v28 = vpop.f32.mrb[52].mxu0  ;;  %v17841_v21 = vand.u32 4294901760, %v15161_v48  ;;  %12363 = vmatprep.subr.bf16.mxu1 %v15173_v6 }
 0x237   :  { %18236 = vst [vmem:[#allocation19_spill] sm:$0xff] %v15127_v28  ;;  %v15129_v49 = vpop.f32.mrb[53].mxu0  ;;  %v3755_v52 = vsub.f32 %v15156_v57, %v17840_v32  ;;  %v17842_v32 = vand.u32 4294901760, %v15186_v61 }
 0x238   :  { %18237 = vst [vmem:[#allocation6_spill] sm:$0xff] %v15129_v49  ;;  %v3762_v36 = vsub.f32 %v15161_v48, %v17841_v21  ;;  %12365 = vmatpush3.bf16.msra.mxu1 %v15173_v6 }
 0x239   :  { %v3756_v31 = vand.u32 4294901760, %v3755_v52  ;;  %v3825_v21 = vsub.f32 %v15186_v61, %v17842_v32 }
 0x23a   :  { %v15131_v16 = vpop.f32.mrb[54].mxu0  ;;  %v3763_v59 = vand.u32 4294901760, %v3762_v36  ;;  %v3832_v36 = vsub.f32 %v15188_v47, %v17848_v20 }
 0x23b   :  { %18238 = vst [vmem:[#allocation7_spill] sm:$0xff] %v15131_v16  ;;  %v15133_v30 = vpop.f32.mrb[55].mxu0  ;;  %v3826_v55 = vand.u32 4294901760, %v3825_v21 }
 0x23c   :  { %18239 = vst [vmem:[#allocation20_spill] sm:$0xff] %v15133_v30  ;;  %v15183_v35 = vpack.c.bf16 %v3763_v59, %v3756_v31  ;;  %v15198_v59 = vsub.f32 %v2894_v58, %v3667_v12  ;;  %v15200_v31 = vsub.f32 %v2895_v40, %v3670_v11  ;;  %v3833_v10 = vand.u32 4294901760, %v3832_v36 }
 0x23d   :  { %v17845_v12 = vand.u32 4294901760, %v15209_v23  ;;  %v17844_v11 = vand.u32 4294901760, %v15211_v9 }
 0x23e   :  { %12367 = vmatprep.subr.bf16.mxu1 %v15183_v35  ;;  %v17847_v17 = vand.u32 4294901760, %v15198_v59  ;;  %v17846_v39 = vand.u32 4294901760, %v15200_v31  ;;  %v15204_v52 = vpack.c.bf16 %v3833_v10, %v3826_v55  ;;  %v15234_v10 = vpack.c.bf16 %v15188_v47, %v15186_v61 }
 0x23f   :  { %v3853_v36 = vsub.f32 %v15209_v23, %v17845_v12  ;;  %v3860_v42 = vsub.f32 %v15211_v9, %v17844_v11  ;;  %v18242_v12 = vand.u32 4294901760, %v15054_v34 }
 0x240   :  { %v3839_v32 = vsub.f32 %v15198_v59, %v17847_v17  ;;  %v3846_v58 = vsub.f32 %v15200_v31, %v17846_v39  ;;  %v18243_v17 = vand.u32 4294901760, %v15059_v5 }
 0x241   :  { %v3854_v38 = vand.u32 4294901760, %v3853_v36  ;;  %v3861_v26 = vand.u32 4294901760, %v3860_v42  ;;  %v18241_v42 = vand.u32 4294901760, %v15037_v51  ;;  %v15259_v39 = vsub.f32 %v15054_v34, %v18242_v12 }
 0x242   :  { %v3840_v40 = vand.u32 4294901760, %v3839_v32  ;;  %v3847_v21 = vand.u32 4294901760, %v3846_v58  ;;  %v15230_v32 = vpack.c.bf16 %v15161_v48, %v15156_v57  ;;  %v15238_v58 = vpack.c.bf16 %v15200_v31, %v15198_v59 }
 0x243   :  { %v15226_v55 = vpack.c.bf16 %v3861_v26, %v3854_v38  ;;  %v15252_v38 = vsub.f32 %v15037_v51, %v18241_v42  ;;  %v15264_v20 = vsub.f32 %v15059_v5, %v18243_v17  ;;  %v18250_v22 = vand.u32 4294901760, %v15259_v39 }
 0x244   :  { %v15224_v18 = vpack.c.bf16 %v3847_v21, %v3840_v40  ;;  %v15242_v40 = vpack.c.bf16 %v15211_v9, %v15209_v23  ;;  %v18240_v21 = vand.u32 4294901760, %v15032_v8 }
 0x245   :  { %v17853_v11 = vand.u32 4294901760, %v15252_v38 }
 0x246   :  { %v15247_v36 = vsub.f32 %v15032_v8, %v18240_v21 }
 0x247   :  { %v3776_v17 = vsub.f32 %v15252_v38, %v17853_v11 }
 0x248   :  { %v17850_v26 = vand.u32 4294901760, %v15247_v36 }
 0x24a   :  { %v3769_v34 = vsub.f32 %v15247_v36, %v17850_v26  ;;  %v18247_v26 = vand.u32 4294901760, %v15076_v13 }
 0x24c   :  { %v15295_v12 = vsub.f32 %v15076_v13, %v18247_v26  ;;  %v3770_v27 = vand.u32 4294901760, %v3769_v34  ;;  %v18251_v34 = vand.u32 4294901760, %v15264_v20 }
 0x2cb   :  { %v15266_v8 = vpop.f32.mrb[72].mxu1 }
 0x2cc   :  { %18244 = vst [vmem:[#allocation8_spill] sm:$0xff] %v15266_v8  ;;  %v3627_v21 = vmul.f32 %v15266_v8, %v15127_v28  ;;  %v15272_v42 = vpop.f32.mrb[73].mxu1 }
 0x2cd   :  { %18245 = vst [vmem:[#allocation9_spill] sm:$0xff] %v15272_v42  ;;  %v3626_v5 = vmul.f32 %v15272_v42, %v15129_v49  ;;  %v18248_v42 = vand.u32 4294901760, %v15081_v62 }
 0x2ce   :  { %v15284_v51 = vand.u32 4294901760, %v3627_v21 }
 0x2cf   :  { %v15288_v15 = vand.u32 4294901760, %v3626_v5  ;;  %v15290_v8 = vpop.f32.mrb[74].mxu1  ;;  %v15300_v49 = vsub.f32 %v15081_v62, %v18248_v42 }
 0x2d0   :  { %18246 = vst [vmem:[#allocation31_spill] sm:$0xff] %v15290_v8  ;;  %v15303_v11 = vsub.f32 %v3627_v21, %v15284_v51  ;;  %v3629_v46 = vmul.f32 %v15290_v8, %v15131_v16  ;;  %v15309_v28 = vpop.f32.mrb[75].mxu1  ;;  %v3777_v21 = vand.u32 4294901760, %v3776_v17  ;;  %v3783_v8 = vsub.f32 %v15259_v39, %v18250_v22 }
 0x2d1   :  { %18249 = vst [vmem:[#allocation33_spill] sm:$0xff] %v15309_v28  ;;  %v15312_v13 = vsub.f32 %v3626_v5, %v15288_v15  ;;  %v3628_v62 = vmul.f32 %v15309_v28, %v15133_v30  ;;  %v3790_v5 = vsub.f32 %v15264_v20, %v18251_v34  ;;  %v18252_v22 = vand.u32 4294901760, %v15098_v24 }
 0x2d2   :  { %v17863_v42 = vand.u32 4294901760, %v15303_v11  ;;  %v15319_v1 = vand.u32 4294901760, %v3629_v46  ;;  %v18253_v34 = vand.u32 4294901760, %v15103_v3  ;;  %v12370_v0 = vpack.c.bf16 %v3777_v21, %v3770_v27 }
 0x2d3   :  { %v15327_v16 = vand.u32 4294901760, %v3628_v62  ;;  %v15341_v7 = vsub.f32 %v15098_v24, %v18252_v22  ;;  %v18254_v17 = vand.u32 4294901760, %v15312_v13  ;;  %v3784_v4 = vand.u32 4294901760, %v3783_v8 }
 0x2d4   :  { %v3724_v28 = vsub.f32 %v15303_v11, %v17863_v42  ;;  %v15336_v30 = vsub.f32 %v3629_v46, %v15319_v1  ;;  %v15346_v26 = vsub.f32 %v15103_v3, %v18253_v34  ;;  %v3791_v45 = vand.u32 4294901760, %v3790_v5 }
 0x2d5   :  { %v15349_v53 = vsub.f32 %v3628_v62, %v15327_v16  ;;  %v3714_v42 = vsub.f32 %v15312_v13, %v18254_v17  ;;  %v18255_v22 = vand.u32 4294901760, %v15295_v12  ;;  %v18256_v34 = vand.u32 4294901760, %v15300_v49 }
 0x2d6   :  { %v17870_v46 = vand.u32 4294901760, %v15336_v30  ;;  %v3725_v33 = vand.u32 4294901760, %v3724_v28  ;;  %v3810_v21 = vand.u32 4294901760, %v15341_v7  ;;  %v3817_v8 = vand.u32 4294901760, %v15346_v26 }
 0x2d7   :  { %v3715_v29 = vand.u32 4294901760, %v3714_v42  ;;  %v3733_v24 = vand.u32 4294901760, %v15349_v53  ;;  %v3797_v3 = vsub.f32 %v15295_v12, %v18255_v22  ;;  %v3804_v62 = vsub.f32 %v15300_v49, %v18256_v34 }
 0x2d8   :  { %v3744_v27 = vsub.f32 %v15336_v30, %v17870_v46  ;;  %v12374_v17 = vpack.c.bf16 %v3791_v45, %v3784_v4  ;;  %v3811_v46 = vsub.f32 %v15341_v7, %v3810_v21 }
 0x2d9   :  { %10914 = vmatprep.mubr.f32.mxu1 %v3715_v29  ;;  %v3734_v42 = vsub.f32 %v15349_v53, %v3733_v24  ;;  %v3798_v22 = vand.u32 4294901760, %v3797_v3  ;;  %v3805_v34 = vand.u32 4294901760, %v3804_v62  ;;  %v3818_v29 = vsub.f32 %v15346_v26, %v3817_v8 }
 0x2da   :  { %10915 = vmatmul.mubr.f32.vlgmr.msra.gmra.mrb[76].mxu1 %v3725_v33  ;;  %v3745_v28 = vand.u32 4294901760, %v3744_v27  ;;  %v3812_v45 = vand.u32 4294901760, %v3811_v46  ;;  %v18261_v46 = vand.u32 4294901760, %v15252_v38  ;;  %v18262_v62 = vand.u32 4294901760, %v15303_v11 }
 0x2db   :  { %12369 = vmatpush3.bf16.msra.mxu1 %v15183_v35  ;;  %v3735_v5 = vand.u32 4294901760, %v3734_v42  ;;  %v12378_v35 = vpack.c.bf16 %v3805_v34, %v3798_v22  ;;  %v3819_v33 = vand.u32 4294901760, %v3818_v29  ;;  %v18265_v42 = vand.u32 4294901760, %v15336_v30 }
 0x2dc   :  { %12371 = vmatprep.subr.bf16.mxu1 %v12370_v0 }
 0x2dd   :  { %10917 = vmatprep.mubr.f32.mxu1 %v3735_v5  ;;  %v12382_v4 = vpack.c.bf16 %v3819_v33, %v3812_v45 }
 0x2de   :  { %10918 = vmatmul.mubr.f32.gmra.mrb[78].mxu1 %v3745_v28 }
 0x2df   :  { %12373 = vmatpush3.bf16.msra.mxu1 %v12370_v0  ;;  %10952 = vmatprep.mubr.f32.mxu1 %v15288_v15  ;;  %v12402_v0 = vpack.c.bf16 %v15252_v38, %v15247_v36 }
 0x2e0   :  { %12375 = vmatprep.subr.bf16.mxu1 %v12374_v17 }
 0x2e3   :  { %12377 = vmatpush3.bf16.msra.mxu1 %v12374_v17 }
 0x2e4   :  { %12379 = vmatprep.subr.bf16.mxu1 %v12378_v35 }
 0x2e7   :  { %12381 = vmatpush3.bf16.msra.mxu1 %v12378_v35 }
 0x2e8   :  { %12383 = vmatprep.subr.bf16.mxu1 %v12382_v4 }
 0x2eb   :  { %12385 = vmatpush3.bf16.msra.mxu1 %v12382_v4 }
 0x2ec   :  { %12387 = vmatprep.subr.bf16.mxu1 %v15204_v52 }
 0x2ef   :  { %12389 = vmatpush3.bf16.msra.mxu1 %v15204_v52  ;;  %v12406_v52 = vpack.c.bf16 %v15264_v20, %v15259_v39 }
 0x2f0   :  { %12391 = vmatprep.subr.bf16.mxu1 %v15224_v18 }
 0x2f3   :  { %12393 = vmatpush3.bf16.msra.mxu1 %v15224_v18  ;;  %v12410_v18 = vpack.c.bf16 %v15300_v49, %v15295_v12 }
 0x2f4   :  { %12395 = vmatprep.subr.bf16.mxu1 %v15226_v55 }
 0x2f7   :  { %12397 = vmatpush3.bf16.msra.mxu1 %v15226_v55  ;;  %v12414_v55 = vpack.c.bf16 %v15346_v26, %v15341_v7  ;;  %v18272_v7 = vand.u32 4294901760, %v15209_v23  ;;  %v18273_v26 = vand.u32 4294901760, %v15211_v9 }
 0x2f8   :  { %12399 = vmatprep.subr.bf16.mxu1 %v15230_v32 }
 0x2fa   :  { %10953 = vmatmul.mubr.f32.vlgmr.msra.gmra.mrb[76].mxu1 %v15284_v51 }
 0x2fb   :  { %10955 = vmatprep.mubr.f32.mxu1 %v15327_v16  ;;  %12401 = vmatpush3.bf16.msra.mxu1 %v15230_v32  ;;  %v18257_v32 = vand.u32 4294901760, %v15312_v13 }
 0x2fc   :  { %12403 = vmatprep.subr.bf16.mxu1 %v12402_v0 }
 0x2fe   :  { %10956 = vmatmul.mubr.f32.gmra.mrb[78].mxu1 %v15319_v1 }
 0x2ff   :  { %12405 = vmatpush3.bf16.msra.mxu1 %v12402_v0  ;;  %10990 = vmatprep.mubr.f32.mxu1 %v15312_v13  ;;  %v18260_v13 = vand.u32 4294901760, %v15247_v36  ;;  %v18267_v36 = vand.u32 4294901760, %v15300_v49  ;;  %v18271_v49 = vand.u32 4294901760, %v15200_v31 }
 0x300   :  { %12407 = vmatprep.subr.bf16.mxu1 %v12406_v52 }
 0x301   :  { %v12466_v3 = vpack.c.bf16 %v18261_v46, %v18260_v13 }
 0x303   :  { %12409 = vmatpush3.bf16.msra.mxu1 %v12406_v52 }
 0x304   :  { %12411 = vmatprep.subr.bf16.mxu1 %v12410_v18 }
 0x307   :  { %12413 = vmatpush3.bf16.msra.mxu1 %v12410_v18 }
 0x308   :  { %12415 = vmatprep.subr.bf16.mxu1 %v12414_v55 }
 0x30b   :  { %12417 = vmatpush3.bf16.msra.mxu1 %v12414_v55 }
 0x30c   :  { %12419 = vmatprep.subr.bf16.mxu1 %v15234_v10 }
 0x30f   :  { %12421 = vmatpush3.bf16.msra.mxu1 %v15234_v10  ;;  %v18258_v10 = vand.u32 4294901760, %v15156_v57  ;;  %v18263_v57 = vand.u32 4294901760, %v15259_v39  ;;  %v18269_v39 = vand.u32 4294901760, %v15188_v47 }
 0x310   :  { %12423 = vmatprep.subr.bf16.mxu1 %v15238_v58 }
 0x313   :  { %12425 = vmatpush3.bf16.msra.mxu1 %v15238_v58  ;;  %v18259_v58 = vand.u32 4294901760, %v15161_v48  ;;  %v18264_v48 = vand.u32 4294901760, %v15264_v20  ;;  %v12478_v20 = vpack.c.bf16 %v3817_v8, %v3810_v21  ;;  %v12490_v21 = vpack.c.bf16 %v18273_v26, %v18272_v7  ;;  %v18280_v7 = vld [vmem:[#allocation35_spill] sm:$0xff] }
 0x314   :  { %12427 = vmatprep.subr.bf16.mxu1 %v15242_v40 }
 0x315   :  { %v12470_v27 = vpack.c.bf16 %v18264_v48, %v18263_v57 }
 0x317   :  { %12429 = vmatpush3.bf16.msra.mxu1 %v15242_v40  ;;  %v12462_v40 = vpack.c.bf16 %v18259_v58, %v18258_v10 }
 0x318   :  { %12431 = vmatprep.subr.bf16.mxu1 %v15047_v2 }
 0x31a   :  { %10991 = vmatmul.mubr.f32.vlgmr.msra.gmra.mrb[76].mxu1 %v15303_v11  ;;  %v18266_v11 = vand.u32 4294901760, %v15295_v12  ;;  %v18270_v12 = vand.u32 4294901760, %v15198_v59 }
 0x31b   :  { %10993 = vmatprep.mubr.f32.mxu1 %v15349_v53  ;;  %12433 = vmatpush3.bf16.msra.mxu1 %v15047_v2 }
 0x31c   :  { %12435 = vmatprep.subr.bf16.mxu1 %v15069_v63  ;;  %v12474_v53 = vpack.c.bf16 %v18267_v36, %v18266_v11 }
 0x31e   :  { %10994 = vmatmul.mubr.f32.gmra.mrb[78].mxu1 %v15336_v30  ;;  %v18268_v30 = vand.u32 4294901760, %v15186_v61 }
 0x31f   :  { %12437 = vmatpush3.bf16.msra.mxu1 %v15069_v63  ;;  %11028 = vmatprep.mubr.f32.mxu1 %v18257_v32 }
 0x320   :  { %12439 = vmatprep.subr.bf16.mxu1 %v15091_v43  ;;  %v12482_v38 = vpack.c.bf16 %v18269_v39, %v18268_v30 }
 0x323   :  { %12441 = vmatpush3.bf16.msra.mxu1 %v15091_v43 }
 0x324   :  { %12443 = vmatprep.subr.bf16.mxu1 %v15112_v19 }
 0x327   :  { %12445 = vmatpush3.bf16.msra.mxu1 %v15112_v19 }
 0x328   :  { %12447 = vmatprep.subr.bf16.mxu1 %v15122_v37 }
 0x32b   :  { %12449 = vmatpush3.bf16.msra.mxu1 %v15122_v37 }
 0x32c   :  { %12451 = vmatprep.subr.bf16.mxu1 %v15141_v41 }
 0x32f   :  { %12453 = vmatpush3.bf16.msra.mxu1 %v15141_v41 }
 0x330   :  { %12455 = vmatprep.subr.bf16.mxu1 %v15151_v60 }
 0x333   :  { %12457 = vmatpush3.bf16.msra.mxu1 %v15151_v60 }
 0x334   :  { %12459 = vmatprep.subr.bf16.mxu1 %v15173_v6 }
 0x337   :  { %12461 = vmatpush3.bf16.msra.mxu1 %v15173_v6 }
 0x338   :  { %12463 = vmatprep.subr.bf16.mxu1 %v12462_v40 }
 0x33a   :  { %11029 = vmatmul.mubr.f32.vlgmr.msra.gmra.mrb[76].mxu1 %v18262_v62 }
 0x33b   :  { %11031 = vmatprep.mubr.f32.mxu1 %v3733_v24  ;;  %12465 = vmatpush3.bf16.msra.mxu1 %v12462_v40  ;;  %v12486_v24 = vpack.c.bf16 %v18271_v49, %v18270_v12  ;;  %v18278_v12 = vld [vmem:[#allocation57_spill] sm:$0xff] }
 0x33c   :  { %12467 = vmatprep.subr.bf16.mxu1 %v12466_v3 }
 0x33e   :  { %11032 = vmatmul.mubr.f32.gmra.mrb[78].mxu1 %v18265_v42 }
 0x33f   :  { %12469 = vmatpush3.bf16.msra.mxu1 %v12466_v3  ;;  %11066 = vmatprep.mubr.f32.mxu1 %v15288_v15 }
 0x340   :  { %12471 = vmatprep.subr.bf16.mxu1 %v12470_v27 }
 0x343   :  { %12473 = vmatpush3.bf16.msra.mxu1 %v12470_v27 }
 0x344   :  { %12475 = vmatprep.subr.bf16.mxu1 %v12474_v53 }
 0x347   :  { %12477 = vmatpush3.bf16.msra.mxu1 %v12474_v53 }
 0x348   :  { %12479 = vmatprep.subr.bf16.mxu1 %v12478_v20 }
 0x34b   :  { %12481 = vmatpush3.bf16.msra.mxu1 %v12478_v20 }
 0x34c   :  { %12483 = vmatprep.subr.bf16.mxu1 %v12482_v38 }
 0x34f   :  { %12485 = vmatpush3.bf16.msra.mxu1 %v12482_v38  ;;  %v18275_v38 = vld [vmem:[#allocation52_spill] sm:$0xff] }
 0x350   :  { %12487 = vmatprep.subr.bf16.mxu1 %v12486_v24 }
 0x353   :  { %12489 = vmatpush3.bf16.msra.mxu1 %v12486_v24  ;;  %v18279_v24 = vld [vmem:[#allocation58_spill] sm:$0xff] }
 0x354   :  { %12491 = vmatprep.subr.bf16.mxu1 %v12490_v21 }
 0x357   :  { %12493 = vmatpush3.bf16.msra.mxu1 %v12490_v21  ;;  %v18281_v21 = vld [vmem:[#allocation28_spill] sm:$0xff] }
 0x358   :  { %12495 = vmatprep.subr.bf16.mxu1 %v15047_v2 }
 0x35a   :  { %11067 = vmatmul.mubr.f32.vlgmr.msra.gmra.mrb[76].mxu1 %v15284_v51 }
 0x35b   :  { %11069 = vmatprep.mubr.f32.mxu1 %v15327_v16  ;;  %12497 = vmatpush3.bf16.msra.mxu1 %v15047_v2 }
 0x35c   :  { %12499 = vmatprep.subr.bf16.mxu1 %v15069_v63 }
 0x35e   :  { %11070 = vmatmul.mubr.f32.gmra.mrb[78].mxu1 %v15319_v1 }
 0x35f   :  { %12501 = vmatpush3.bf16.msra.mxu1 %v15069_v63  ;;  %11104 = vmatprep.mubr.f32.mxu1 %v15288_v15 }
 0x360   :  { %12503 = vmatprep.subr.bf16.mxu1 %v15091_v43 }
 0x363   :  { %12505 = vmatpush3.bf16.msra.mxu1 %v15091_v43 }
 0x364   :  { %12507 = vmatprep.subr.bf16.mxu1 %v15112_v19 }
 0x367   :  { %12509 = vmatpush3.bf16.msra.mxu1 %v15112_v19 }
 0x368   :  { %12511 = vmatprep.subr.bf16.mxu1 %v15122_v37 }
 0x36b   :  { %12513 = vmatpush3.bf16.msra.mxu1 %v15122_v37 }
 0x36c   :  { %12515 = vmatprep.subr.bf16.mxu1 %v15141_v41 }
 0x36f   :  { %12517 = vmatpush3.bf16.msra.mxu1 %v15141_v41 }
 0x370   :  { %12519 = vmatprep.subr.bf16.mxu1 %v15151_v60 }
 0x373   :  { %12521 = vmatpush3.bf16.msra.mxu1 %v15151_v60 }
 0x374   :  { %12523 = vmatprep.subr.bf16.mxu1 %v15173_v6 }
 0x377   :  { %12525 = vmatpush3.bf16.msra.mxu1 %v15173_v6 }
 0x37a   :  { %11105 = vmatmul.mubr.f32.vlgmr.msra.gmra.mrb[76].mxu1 %v15284_v51 }
 0x37b   :  { %11107 = vmatprep.mubr.f32.mxu1 %v15327_v16 }
 0x37e   :  { %11108 = vmatmul.mubr.f32.gmra.mrb[78].mxu1 %v15319_v1 }
 0x44d   :  { %v11106_v23 = vpop.f32.mrb[76].mxu1 }
 0x44e   :  { %v4378_v61 = vpop.f32.mrb[77].mxu1 }
 0x44f   :  { %v4400_v47 = vmax.f32 %v4378_v61, %v11106_v23 }
 0x451   :  { %v11109_v15 = vpop.f32.mrb[78].mxu1 }
 0x452   :  { %v4390_v9 = vpop.f32.mrb[79].mxu1 }
 0x453   :  { %v4401_v2 = vmax.f32 %v4390_v9, %v11109_v15 }
 0x455   :  { %v4402_v63 = vmax.f32 %v4400_v47, %v4401_v2  ;;  %v2954_v47 = vld [vmem:[%s17684_s4 + $0x20] sm:$0xff] }
 0x457   :  { %v4403_v43 = vrot.slane %v4402_v63, 4 }
 0x459   :  { %v4404_v19 = vmax.f32 %v4402_v63, %v4403_v43 }
 0x45b   :  { %v4405_v37 = vrot.slane %v4404_v19, 2 }
 0x45d   :  { %v4406_v41 = vmax.f32 %v4404_v19, %v4405_v37 }
 0x45f   :  { %v4407_v60 = vrot.slane %v4406_v41, 1 }
 0x461   :  { %v4408_v59 = vmax.f32 %v4406_v41, %v4407_v60 }
 0x463   :  { %v4409_v6 = vsub.f32 %v4378_v61, %v4408_v59  ;;  %v4410_v31 = vsub.f32 %v11106_v23, %v4408_v59  ;;  %v4411_v51 = vsub.f32 %v4390_v9, %v4408_v59  ;;  %v4412_v8 = vsub.f32 %v11109_v15, %v4408_v59  ;;  %v18282_v23 = vld [vmem:[#allocation46_spill] sm:$0xff]  ;;  %v2950_v61 = vld [vmem:[%s17684_s4] sm:$0xff] }
 0x464   :  { %v5061_v15 = vsel %vm2986_vm1, %v2950_v61, 0  ;;  %v5073_v9 = vsel %vm2986_vm1, %v2954_v47, 0  ;;  %v2951_v59 = vld [vmem:[%s17684_s4 + $0x8] sm:$0xff] }
 0x465   :  { %v4413_v16 = vmul.f32 1.442695, %v4409_v6  ;;  %v4415_v5 = vmul.f32 1.442695, %v4410_v31  ;;  %v4417_v1 = vmul.f32 1.442695, %v4411_v51 }
 0x466   :  { %v4419_v17 = vmul.f32 1.442695, %v4412_v8  ;;  %v15534_v2 = vand.u32 4294901760, %v5061_v15  ;;  %v2955_v6 = vld [vmem:[%s17684_s4 + $0x28] sm:$0xff]  ;;  %v5064_v31 = vsel %vm2986_vm1, %v2951_v59, 0  ;;  %v18285_v8 = vld [vmem:[#allocation19_spill] sm:$0xff] }
 0x467   :  { %13640 = vpow2.f32 %v4413_v16  ;;  %v5076_v51 = vsel %vm2986_vm1, %v2955_v6, 0  ;;  %v18286_v16 = vld [vmem:[#allocation8_spill] sm:$0xff] }
 0x468   :  { %13642 = vpow2.f32 %v4415_v5  ;;  %18283 = vst [vmem:[#allocation21_spill] sm:$0xff] %v15534_v2  ;;  %v18287_v5 = vsub.f32 %v18285_v8, %v18286_v16 }
 0x469   :  { %13644 = vpow2.f32 %v4417_v1  ;;  %v2952_v1 = vld [vmem:[%s17684_s4 + $0x10] sm:$0xff] }
 0x46a   :  { %13646 = vpow2.f32 %v4419_v17  ;;  %v2956_v17 = vld [vmem:[%s17684_s4 + $0x30] sm:$0xff] }
 0x46b   :  { %13648 = vtanh.f32 %v18287_v5 }
 0x471   :  { %v15487_v22 = vpop.eup %13640 }
 0x472   :  { %v15489_v28 = vpop.eup %13642  ;;  %v4422_v34 = vand.u32 4294901760, %v15487_v22 }
 0x473   :  { %v15492_v29 = vpop.eup %13644  ;;  %v4425_v35 = vand.u32 4294901760, %v15489_v28 }
 0x474   :  { %v15495_v45 = vpop.eup %13646  ;;  %v4428_v33 = vand.u32 4294901760, %v15492_v29  ;;  %v4532_v4 = vsub.f32 %v15487_v22, %v4422_v34 }
 0x475   :  { %v12526_v0 = vpack.c.bf16 %v4425_v35, %v4422_v34  ;;  %v4431_v52 = vand.u32 4294901760, %v15495_v45  ;;  %v4539_v18 = vsub.f32 %v15489_v28, %v4425_v35  ;;  %v18288_v34 = vld [vmem:[#allocation6_spill] sm:$0xff]  ;;  %v18289_v35 = vld [vmem:[#allocation9_spill] sm:$0xff] }
 0x476   :  { %v4533_v55 = vand.u32 4294901760, %v4532_v4  ;;  %v4546_v32 = vsub.f32 %v15492_v29, %v4428_v33 }
 0x477   :  { %12527 = vmatprep.subr.bf16.mxu0 %v12526_v0  ;;  %v12530_v10 = vpack.c.bf16 %v4431_v52, %v4428_v33  ;;  %v4540_v58 = vand.u32 4294901760, %v4539_v18  ;;  %v4553_v40 = vsub.f32 %v15495_v45, %v4431_v52  ;;  %v12542_v30 = vpack.c.bf16 %v4539_v18, %v4532_v4  ;;  %v18293_v52 = vld [vmem:[#allocation7_spill] sm:$0xff] }
 0x478   :  { %12529 = vmatpush3.bf16.msra.mxu0 %v12526_v0  ;;  %v4534_v13 = vsub.f32 %v4532_v4, %v4533_v55  ;;  %v4547_v46 = vand.u32 4294901760, %v4546_v32  ;;  %v18290_v33 = vsub.f32 %v18288_v34, %v18289_v35  ;;  %v15572_v4 = vand.u32 4294901760, %v5064_v31 }
 0x479   :  { %12531 = vmatprep.subr.bf16.mxu0 %v12530_v10  ;;  %v4541_v3 = vsub.f32 %v4539_v18, %v4540_v58  ;;  %v4554_v62 = vand.u32 4294901760, %v4553_v40  ;;  %v12546_v39 = vpack.c.bf16 %v4553_v40, %v4546_v32  ;;  %v12558_v49 = vpack.c.bf16 %v4540_v58, %v4533_v55  ;;  %v18294_v18 = vld [vmem:[#allocation31_spill] sm:$0xff]  ;;  %v18297_v58 = vld [vmem:[#allocation33_spill] sm:$0xff] }
 0x47a   :  { %v4535_v57 = vand.u32 4294901760, %v4534_v13  ;;  %v4548_v48 = vsub.f32 %v4546_v32, %v4547_v46  ;;  %13650 = vtanh.f32 %v18290_v33  ;;  %18291 = vst [vmem:[#allocation11_spill] sm:$0xff] %v15572_v4  ;;  %v18295_v55 = vsub.f32 %v18293_v52, %v18294_v18  ;;  %v2953_v32 = vld [vmem:[%s17684_s4 + $0x18] sm:$0xff] }
 0x47b   :  { %v4542_v27 = vand.u32 4294901760, %v4541_v3  ;;  %v4555_v42 = vsub.f32 %v4553_v40, %v4554_v62  ;;  %v12562_v26 = vpack.c.bf16 %v4554_v62, %v4547_v46  ;;  %v5067_v46 = vsel %vm2986_vm1, %v2952_v1, 0  ;;  %v2961_v18 = vld [vmem:[%s17684_s4 + $0x58] sm:$0xff] }
 0x47c   :  { %12533 = vmatpush3.bf16.msra.mxu0 %v12530_v10  ;;  %v4549_v11 = vand.u32 4294901760, %v4548_v48  ;;  %13652 = vtanh.f32 %v18295_v55  ;;  %v5079_v3 = vsel %vm2986_vm1, %v2956_v17, 0  ;;  %v2960_v17 = vld [vmem:[%s17684_s4 + $0x50] sm:$0xff] }
 0x47d   :  { %v12534_v36 = vpack.c.bf16 %v4542_v27, %v4535_v57  ;;  %v4556_v53 = vand.u32 4294901760, %v4555_v42  ;;  %v15588_v57 = vsub.f32 %v5064_v31, %v15572_v4  ;;  %v5070_v27 = vsel %vm2986_vm1, %v2953_v32, 0  ;;  %v2957_v42 = vld [vmem:[%s17684_s4 + $0x38] sm:$0xff] }
 0x47f   :  { %11119 = vmatmul.mubr.f32.vlgmr.msra.gmra.mrb[76].mxu0 %v14984_v50  ;;  %12535 = vmatprep.subr.bf16.mxu0 %v12534_v36  ;;  %v12538_v20 = vpack.c.bf16 %v4556_v53, %v4549_v11  ;;  %v18274_v50 = vld [vmem:[#allocation16_spill] sm:$0xff]  ;;  %v15597_v11 = vand.u32 4294901760, %v5067_v46 }
 0x480   :  { %12537 = vmatpush3.bf16.msra.mxu0 %v12534_v36  ;;  %11121 = vmatprep.mubr.f32.mxu0 %v14990_v54  ;;  %v18276_v54 = vld [vmem:[#allocation15_spill] sm:$0xff]  ;;  %v15599_v36 = vand.u32 4294901760, %v5079_v3 }
 0x481   :  { %12539 = vmatprep.subr.bf16.mxu0 %v12538_v20  ;;  %18299 = vst [vmem:[#allocation38_spill] sm:$0xff] %v15597_v11 }
 0x482   :  { %18300 = vst [vmem:[#allocation22_spill] sm:$0xff] %v15599_v36 }
 0x483   :  { %11122 = vmatmul.mubr.f32.gmra.mrb[78].mxu0 %v14993_v56  ;;  %v18277_v56 = vld [vmem:[#allocation29_spill] sm:$0xff] }
 0x484   :  { %12541 = vmatpush3.bf16.msra.mxu0 %v12538_v20  ;;  %11132 = vmatprep.mubr.f32.mxu0 %v14892_v14 }
 0x485   :  { %12543 = vmatprep.subr.bf16.mxu0 %v12542_v30 }
 0x487   :  { %11133 = vmatmul.mubr.f32.vlgmr.msra.gmra.mrb[76].mxu0 %v14941_v25 }
 0x488   :  { %12545 = vmatpush3.bf16.msra.mxu0 %v12542_v30  ;;  %11135 = vmatprep.mubr.f32.mxu0 %v14944_v44  ;;  %v15601_v30 = vand.u32 4294901760, %v5070_v27 }
 0x489   :  { %12547 = vmatprep.subr.bf16.mxu0 %v12546_v39 }
 0x48a   :  { %18301 = vst [vmem:[#allocation17_spill] sm:$0xff] %v15601_v30  ;;  %v15621_v61 = vsub.f32 %v5070_v27, %v15601_v30 }
 0x48b   :  { %11136 = vmatmul.mubr.f32.gmra.mrb[78].mxu0 %v18274_v50 }
 0x48c   :  { %12549 = vmatpush3.bf16.msra.mxu0 %v12546_v39  ;;  %11146 = vmatprep.mubr.f32.mxu0 %v18275_v38  ;;  %v5082_v39 = vsel %vm2986_vm1, %v2957_v42, 0  ;;  %v17876_v33 = vand.u32 4294901760, %v15621_v61  ;;  %v2946_v42 = vld [vmem:[%s17683_s3 + $0x20] sm:$0xff] }
 0x48d   :  { %12551 = vmatprep.subr.bf16.mxu0 %v12526_v0 }
 0x48f   :  { %11147 = vmatmul.mubr.f32.vlgmr.msra.gmra.mrb[76].mxu0 %v18276_v54  ;;  %v13649_v54 = vpop.eup %13648 }
 0x490   :  { %12553 = vmatpush3.bf16.msra.mxu0 %v12526_v0  ;;  %11149 = vmatprep.mubr.f32.mxu0 %v18277_v56  ;;  %v3621_v56 = vstv %s35_s0 }
 0x491   :  { %12555 = vmatprep.subr.bf16.mxu0 %v12530_v10 }
 0x493   :  { %11150 = vmatmul.mubr.f32.gmra.mrb[78].mxu0 %v18278_v12  ;;  %v15607_v12 = vsub.f32 %v5067_v46, %v15597_v11 }
 0x494   :  { %12557 = vmatpush3.bf16.msra.mxu0 %v12530_v10  ;;  %11160 = vmatprep.mubr.f32.mxu0 %v18279_v24  ;;  %v2958_v24 = vld [vmem:[%s17684_s4 + $0x40] sm:$0xff] }
 0x495   :  { %12559 = vmatprep.subr.bf16.mxu0 %v12558_v49  ;;  %v17877_v59 = vand.u32 4294901760, %v15607_v12 }
 0x497   :  { %11161 = vmatmul.mubr.f32.vlgmr.msra.gmra.mrb[76].mxu0 %v18280_v7  ;;  %v13651_v7 = vpop.eup %13650 }
 0x498   :  { %12561 = vmatpush3.bf16.msra.mxu0 %v12558_v49  ;;  %11163 = vmatprep.mubr.f32.mxu0 %v18281_v21  ;;  %v15610_v49 = vsub.f32 %v5079_v3, %v15599_v36  ;;  %v2959_v21 = vld [vmem:[%s17684_s4 + $0x48] sm:$0xff]  ;;  %v3622_v8 = vmul.f32 %v13651_v7, %v3621_v56  ;;  %v5091_v3 = vsel %vm2986_vm1, %v2960_v17, 0 }
 0x499   :  { %12563 = vmatprep.subr.bf16.mxu0 %v12562_v26  ;;  %v5088_v31 = vsel %vm2986_vm1, %v2959_v21, 0 }
 0x49a   :  { %v17872_v6 = vand.u32 4294901760, %v15610_v49 }
 0x49b   :  { %11164 = vmatmul.mubr.f32.gmra.mrb[78].mxu0 %v18282_v23  ;;  %v13653_v23 = vpop.eup %13652 }
 0x49c   :  { %12565 = vmatpush3.bf16.msra.mxu0 %v12562_v26  ;;  %11174 = vmatprep.mubr.f32.mxu0 %v14892_v14  ;;  %v15615_v26 = vand.u32 4294901760, %v5082_v39  ;;  %v3625_v16 = vmul.f32 %v13653_v23, %v3621_v56  ;;  %v15666_v46 = vsub.f32 %v15610_v49, %v17872_v6 }
 0x49d   :  { %12567 = vmatprep.subr.bf16.mxu0 %v12526_v0 }
 0x49e   :  { %18302 = vst [vmem:[#allocation40_spill] sm:$0xff] %v15615_v26  ;;  %v15639_v1 = vsub.f32 %v5082_v39, %v15615_v26  ;;  %v5094_v39 = vsel %vm2986_vm1, %v2961_v18, 0 }
 0x49f   :  { %11175 = vmatmul.mubr.f32.vlgmr.msra.gmra.mrb[76].mxu0 %v14941_v25 }
 0x4a0   :  { %12569 = vmatpush3.bf16.msra.mxu0 %v12526_v0  ;;  %11177 = vmatprep.mubr.f32.mxu0 %v14944_v44  ;;  %v15574_v0 = vand.u32 4294901760, %v5076_v51 }
 0x4a1   :  { %12571 = vmatprep.subr.bf16.mxu0 %v12530_v10 }
 0x4a2   :  { %18292 = vst [vmem:[#allocation36_spill] sm:$0xff] %v15574_v0  ;;  %v15591_v48 = vsub.f32 %v5076_v51, %v15574_v0 }
 0x4a3   :  { %11178 = vmatmul.mubr.f32.gmra.mrb[78].mxu0 %v18274_v50 }
 0x4a4   :  { %12573 = vmatpush3.bf16.msra.mxu0 %v12530_v10  ;;  %11188 = vmatprep.mubr.f32.mxu0 %v14892_v14  ;;  %v15536_v14 = vand.u32 4294901760, %v5073_v9  ;;  %v18296_v10 = vld [vmem:[#allocation20_spill] sm:$0xff]  ;;  %v17873_v38 = vand.u32 4294901760, %v15591_v48 }
 0x4a5   :  { %v18298_v40 = vsub.f32 %v18296_v10, %v18297_v58  ;;  %v15653_v10 = vand.u32 4294901760, %v5088_v31 }
 0x4a6   :  { %18284 = vst [vmem:[#allocation10_spill] sm:$0xff] %v15536_v14 }
 0x4a7   :  { %11189 = vmatmul.mubr.f32.vlgmr.msra.gmra.mrb[76].mxu0 %v14941_v25  ;;  %v15539_v25 = vsub.f32 %v5061_v15, %v15534_v2  ;;  %13654 = vtanh.f32 %v18298_v40  ;;  %v3623_v15 = vmul.f32 %v13649_v54, %v3621_v56  ;;  %18304 = vst [vmem:[#allocation32_spill] sm:$0xff] %v15653_v10  ;;  %v15688_v23 = vsub.f32 %v5088_v31, %v15653_v10  ;;  %v2948_v31 = vld [vmem:[%s17683_s3 + $0x70] sm:$0xff] }
 0x4a8   :  { %11191 = vmatprep.mubr.f32.mxu0 %v14944_v44  ;;  %v15542_v44 = vsub.f32 %v5073_v9, %v15536_v14 }
 0x4a9   :  { %v17879_v63 = vand.u32 4294901760, %v15539_v25 }
 0x4aa   :  { %v17875_v43 = vand.u32 4294901760, %v15542_v44 }
 0x4ab   :  { %11192 = vmatmul.mubr.f32.gmra.mrb[78].mxu0 %v18274_v50  ;;  %v5180_v19 = vsub.f32 %v15539_v25, %v17879_v63  ;;  %v17878_v50 = vand.u32 4294901760, %v15588_v57 }
 0x4ac   :  { %v5220_v37 = vsub.f32 %v15542_v44, %v17875_v43 }
 0x4ad   :  { %v5181_v41 = vand.u32 4294901760, %v5180_v19  ;;  %v15626_v9 = vsub.f32 %v15588_v57, %v17878_v50  ;;  %v15631_v19 = vsub.f32 %v15591_v48, %v17873_v38 }
 0x4ae   :  { %v5221_v60 = vand.u32 4294901760, %v5220_v37  ;;  %v5085_v37 = vsel %vm2986_vm1, %v2958_v24, 0  ;;  %v15679_v24 = vsub.f32 %v15621_v61, %v17876_v33 }
 0x4af   :  { %11202 = vmatprep.mubr.f32.mxu0 %v5181_v41  ;;  %v15646_v52 = vand.u32 4294901760, %v5085_v37  ;;  %v5231_v32 = vand.u32 4294901760, %v15631_v19 }
 0x4b0   :  { %11208 = vmatprep.mubr.f32.mxu1 %v5221_v60  ;;  %v5043_v60 = vstv %s9843_s8 }
 0x4b1   :  { %v13655_v47 = vpop.eup %13654  ;;  %18303 = vst [vmem:[#allocation44_spill] sm:$0xff] %v15646_v52  ;;  %v15682_v7 = vsub.f32 %v5085_v37, %v15646_v52 }
 0x4b2   :  { %v3624_v34 = vmul.f32 %v13655_v47, %v3621_v56  ;;  %v15690_v47 = vand.u32 4294901760, %v5091_v3 }
 0x4b4   :  { %18305 = vst [vmem:[#allocation48_spill] sm:$0xff] %v15690_v47 }
 0x57a   :  { %v11190_v13 = vpop.f32.mrb[76].mxu0 }
 0x57b   :  { %13656 = vrcp.f32 %v11190_v13  ;;  %v5013_v62 = vpop.f32.mrb[77].mxu0  ;;  %v15661_v13 = vsub.f32 %v15607_v12, %v17877_v59 }
 0x57c   :  { %13658 = vrcp.f32 %v5013_v62 }
 0x57e   :  { %v11193_v53 = vpop.f32.mrb[78].mxu0 }
 0x57f   :  { %13660 = vrcp.f32 %v11193_v53  ;;  %v5025_v20 = vpop.f32.mrb[79].mxu0 }
 0x580   :  { %13662 = vrcp.f32 %v5025_v20  ;;  %v17871_v20 = vand.u32 4294901760, %v15639_v1 }
 0x582   :  { %v15706_v17 = vsub.f32 %v15639_v1, %v17871_v20 }
 0x585   :  { %v13657_v41 = vpop.eup %13656 }
 0x586   :  { %v13659_v51 = vpop.eup %13658  ;;  %v5040_v5 = vmul.f32 %v13657_v41, %v15489_v28  ;;  %v5191_v28 = vand.u32 4294901760, %v15626_v9 }
 0x587   :  { %v5039_v35 = vmul.f32 %v13659_v51, %v15487_v22  ;;  %v2947_v22 = vld [vmem:[%s17683_s3 + $0x48] sm:$0xff] }
 0x588   :  { %v5045_v55 = vmul.f32 %v5043_v60, %v5040_v5 }
 0x589   :  { %v13661_v58 = vpop.eup %13660  ;;  %v5044_v40 = vmul.f32 %v5043_v60, %v5039_v35  ;;  %v15708_v35 = vand.u32 4294901760, %v5094_v39 }
 0x58a   :  { %v13663_v62 = vpop.eup %13662  ;;  %v5049_v27 = vadd.f32 %v5045_v55, %v3623_v15  ;;  %v5042_v53 = vmul.f32 %v13661_v58, %v15495_v45  ;;  %v2949_v15 = vld [vmem:[%s17683_s3 + $0x98] sm:$0xff] }
 0x58b   :  { %v5048_v54 = vadd.f32 %v5044_v40, %v3622_v8  ;;  %v5041_v56 = vmul.f32 %v13663_v62, %v15492_v29 }
 0x58c   :  { %5053 = vst [vmem:[%s17686_s6 + $0x8] sm:$0xff] %v5049_v27  ;;  %v5057_v45 = vadd.f32 %v5049_v27, %v2947_v22  ;;  %v5047_v21 = vmul.f32 %v5043_v60, %v5042_v53  ;;  %v2963_v22 = vld [vmem:[%s17684_s4 + $0x68] sm:$0xff]  ;;  %v17883_v27 = vand.u32 4294901760, %v15688_v23 }
 0x58d   :  { %5052 = vst [vmem:[%s17686_s6] sm:$0xff] %v5048_v54  ;;  %v5056_v29 = vadd.f32 %v5048_v54, %v2946_v42  ;;  %v5046_v37 = vmul.f32 %v5043_v60, %v5041_v56  ;;  %v2962_v60 = vld [vmem:[%s17684_s4 + $0x60] sm:$0xff]  ;;  %v15723_v42 = vsub.f32 %v5091_v3, %v15690_v47  ;;  %v5100_v3 = vsel %vm2986_vm1, %v2963_v22, 0  ;;  %v2965_v22 = vld [vmem:[%s17684_s4 + $0x78] sm:$0xff] }
 0x58e   :  { %v5112_v8 = vand.u32 4294901760, %v5057_v45  ;;  %v5051_v5 = vadd.f32 %v5047_v21, %v3625_v16  ;;  %v17874_v16 = vand.u32 4294901760, %v15682_v7  ;;  %v5097_v56 = vsel %vm2986_vm1, %v2962_v60, 0  ;;  %v2964_v21 = vld [vmem:[%s17684_s4 + $0x70] sm:$0xff] }
 0x58f   :  { %v5109_v18 = vand.u32 4294901760, %v5056_v29  ;;  %v5050_v55 = vadd.f32 %v5046_v37, %v3624_v34  ;;  %v15735_v37 = vsub.f32 %v5094_v39, %v15708_v35  ;;  %v17881_v59 = vand.u32 4294901760, %v15723_v42 }
 0x590   :  { %5055 = vst [vmem:[%s17686_s6 + $0x18] sm:$0xff] %v5051_v5  ;;  %v5059_v40 = vadd.f32 %v5051_v5, %v2949_v15  ;;  %v5346_v62 = vsub.f32 %v5057_v45, %v5112_v8 }
 0x591   :  { %v15725_v34 = vpack.c.bf16 %v5112_v8, %v5109_v18  ;;  %5054 = vst [vmem:[%s17686_s6 + $0x10] sm:$0xff] %v5050_v55  ;;  %v5058_v53 = vadd.f32 %v5050_v55, %v2948_v31  ;;  %v5339_v54 = vsub.f32 %v5056_v29, %v5109_v18  ;;  %v15745_v31 = vsub.f32 %v15682_v7, %v17874_v16 }
 0x592   :  { %v5118_v45 = vand.u32 4294901760, %v5059_v40  ;;  %v5347_v15 = vand.u32 4294901760, %v5346_v62  ;;  %v15749_v18 = vand.u32 4294901760, %v5097_v56  ;;  %v5103_v55 = vsel %vm2986_vm1, %v2964_v21, 0 }
 0x593   :  { %v5115_v8 = vand.u32 4294901760, %v5058_v53  ;;  %12575 = vmatprep.subr.bf16.mxu0 %v15725_v34  ;;  %13246 = vmatprep.subr.bf16.mxu1 %v15725_v34  ;;  %v5340_v5 = vand.u32 4294901760, %v5339_v54  ;;  %v15740_v29 = vpack.c.bf16 %v5346_v62, %v5339_v54 }
 0x594   :  { %12577 = vmatpush3.bf16.msra.mxu0 %v15725_v34  ;;  %13248 = vmatpush3.bf16.msra.mxu1 %v15725_v34  ;;  %v5348_v39 = vsub.f32 %v5346_v62, %v5347_v15  ;;  %v5360_v60 = vsub.f32 %v5059_v40, %v5118_v45  ;;  %v15760_v62 = vand.u32 4294901760, %v5100_v3  ;;  %v2966_v40 = vld [vmem:[%s17684_s4 + $0x80] sm:$0xff] }
 0x595   :  { %v15755_v20 = vpack.c.bf16 %v5118_v45, %v5115_v8  ;;  %v5341_v6 = vsub.f32 %v5339_v54, %v5340_v5  ;;  %v5353_v38 = vsub.f32 %v5058_v53, %v5115_v8  ;;  %v15757_v16 = vpack.c.bf16 %v5347_v15, %v5340_v5 }
 0x596   :  { %v5349_v43 = vand.u32 4294901760, %v5348_v39  ;;  %v5361_v33 = vand.u32 4294901760, %v5360_v60  ;;  %v5106_v53 = vsel %vm2986_vm1, %v2965_v22, 0  ;;  %v17880_v8 = vand.u32 4294901760, %v15735_v37 }
 0x597   :  { %12579 = vmatprep.subr.bf16.mxu0 %v15755_v20  ;;  %13247 = vmatprep.subr.bf16.mxu1 %v15755_v20  ;;  %v5342_v21 = vand.u32 4294901760, %v5341_v6  ;;  %v5354_v45 = vand.u32 4294901760, %v5353_v38  ;;  %v15767_v54 = vpack.c.bf16 %v5360_v60, %v5353_v38  ;;  %v15774_v5 = vsub.f32 %v5097_v56, %v15749_v18  ;;  %v2967_v6 = vld [vmem:[%s17684_s4 + $0x88] sm:$0xff] }
 0x598   :  { %12581 = vmatpush3.bf16.msra.mxu0 %v15755_v20  ;;  %13249 = vmatpush3.bf16.msra.mxu1 %v15755_v20  ;;  %v5362_v15 = vsub.f32 %v5360_v60, %v5361_v33  ;;  %v15776_v39 = vand.u32 4294901760, %v5103_v55  ;;  %v6255_v63 = vsel %vm2986_vm1, %v2966_v40, 0  ;;  %v5251_v60 = vand.u32 4294901760, %v15706_v17 }
 0x599   :  { %12623 = vmatprep.subr.bf16.mxu1 %v15725_v34  ;;  %v15782_v50 = vpack.c.bf16 %v5349_v43, %v5342_v21  ;;  %v5355_v22 = vsub.f32 %v5353_v38, %v5354_v45  ;;  %v15785_v58 = vpack.c.bf16 %v5361_v33, %v5354_v45  ;;  %v15789_v56 = vsub.f32 %v5100_v3, %v15760_v62  ;;  %v2968_v3 = vld [vmem:[%s17684_s4 + $0x90] sm:$0xff]  ;;  %v2969_v45 = vld [vmem:[%s17684_s4 + $0x98] sm:$0xff] }
 0x59a   :  { %v5363_v51 = vand.u32 4294901760, %v5362_v15  ;;  %v15791_v41 = vand.u32 4294901760, %v5106_v53  ;;  %v5270_v38 = vsub.f32 %v15688_v23, %v17883_v27  ;;  %v5280_v33 = vsub.f32 %v15723_v42, %v17881_v59 }
 0x59b   :  { %18306 = vst [vmem:[#allocation50_spill] sm:$0xff] %v15785_v58  ;;  %11203 = vmatmul.mubr.f32.vlgmr.msra.gmra.mrb[80].mxu0 %v5191_v28  ;;  %11209 = vmatmul.mubr.f32.vlgmr.msra.gmra.mrb[80].mxu1 %v5231_v32  ;;  %v5356_v43 = vand.u32 4294901760, %v5355_v22  ;;  %v6258_v17 = vsel %vm2986_vm1, %v2967_v6, 0  ;;  %v17882_v9 = vand.u32 4294901760, %v15774_v5  ;;  %v15811_v19 = vsub.f32 %v5103_v55, %v15776_v39 }
 0x59c   :  { %12583 = vmatprep.subr.bf16.mxu0 %v15782_v50  ;;  %12625 = vmatpush3.bf16.msra.mxu1 %v15725_v34  ;;  %v15813_v28 = vand.u32 4294901760, %v6255_v63  ;;  %v5261_v40 = vand.u32 4294901760, %v15745_v31  ;;  %v5290_v21 = vsub.f32 %v15735_v37, %v17880_v8  ;;  %v18307_v55 = vand.u32 4294901760, %v15661_v13 }
 0x59d   :  { %12585 = vmatpush3.bf16.msra.mxu0 %v15782_v50  ;;  %12627 = vmatprep.subr.bf16.mxu1 %v15755_v20  ;;  %v15817_v32 = vpack.c.bf16 %v5363_v51, %v5356_v43  ;;  %v18308_v15 = vand.u32 4294901760, %v15666_v46  ;;  %v17884_v6 = vand.u32 4294901760, %v15789_v56  ;;  %v15832_v51 = vsub.f32 %v5106_v53, %v15791_v41 }
 0x59e   :  { %11205 = vmatprep.mubr.f32.mxu0 %v18307_v55  ;;  %v15834_v31 = vand.u32 4294901760, %v6258_v17  ;;  %v6261_v22 = vsel %vm2986_vm1, %v2968_v3, 0  ;;  %v18309_v43 = vand.u32 4294901760, %v15679_v24  ;;  %v5271_v8 = vand.u32 4294901760, %v5270_v38  ;;  %v2970_v24 = vld [vmem:[%s17684_s4 + $0xa0] sm:$0xff]  ;;  %v2972_v38 = vld [vmem:[%s17684_s4 + $0xb0] sm:$0xff] }
 0x59f   :  { %11211 = vmatprep.mubr.f32.mxu1 %v18308_v15  ;;  %v5281_v59 = vand.u32 4294901760, %v5280_v33  ;;  %12587 = vmatprep.subr.bf16.mxu0 %v15817_v32  ;;  %v5300_v13 = vsub.f32 %v15774_v5, %v17882_v9  ;;  %v17885_v46 = vand.u32 4294901760, %v15811_v19  ;;  %v15846_v53 = vsub.f32 %v6255_v63, %v15813_v28 }
 0x5a0   :  { %11206 = vmatmul.mubr.f32.gmra.mrb[82].mxu0 %v18309_v43  ;;  %11212 = vmatmul.mubr.f32.gmra.mrb[82].mxu1 %v5251_v60  ;;  %v6264_v3 = vsel %vm2986_vm1, %v2969_v45, 0  ;;  %v2971_v60 = vld [vmem:[%s17684_s4 + $0xa8] sm:$0xff]  ;;  %v15860_v63 = vand.u32 4294901760, %v6261_v22  ;;  %v5291_v33 = vand.u32 4294901760, %v5290_v21  ;;  %v5310_v45 = vsub.f32 %v15789_v56, %v17884_v6 }
 0x5a1   :  { %12629 = vmatpush3.bf16.msra.mxu1 %v15755_v20  ;;  %18310 = vst [vmem:[#allocation37_spill] sm:$0xff] %v15846_v53  ;;  %12589 = vmatpush3.bf16.msra.mxu0 %v15817_v32  ;;  %v17893_v55 = vand.u32 4294901760, %v15832_v51  ;;  %v15868_v15 = vsub.f32 %v6258_v17, %v15834_v31  ;;  %v15871_v43 = vand.u32 4294901760, %v6264_v3  ;;  %v6267_v9 = vsel %vm2986_vm1, %v2970_v24, 0 }
 0x5a2   :  { %12631 = vmatprep.subr.bf16.mxu1 %v15782_v50  ;;  %12591 = vmatprep.subr.bf16.mxu0 %v15740_v29  ;;  %v6270_v27 = vsel %vm2986_vm1, %v2971_v60, 0  ;;  %v5301_v21 = vand.u32 4294901760, %v5300_v13  ;;  %v5320_v17 = vsub.f32 %v15811_v19, %v17885_v46  ;;  %v15887_v24 = vsub.f32 %v6261_v22, %v15860_v63 }
 0x5a3   :  { %11214 = vmatprep.mubr.f32.mxu1 %v5261_v40  ;;  %18311 = vst [vmem:[#allocation54_spill] sm:$0xff] %v15868_v15  ;;  %11234 = vmatprep.mubr.f32.mxu0 %v15534_v2  ;;  %v6273_v40 = vsel %vm2986_vm1, %v2972_v38, 0  ;;  %v5311_v13 = vand.u32 4294901760, %v5310_v45  ;;  %v15893_v60 = vand.u32 4294901760, %v6267_v9  ;;  %v15895_v38 = vand.u32 4294901760, %v6270_v27 }
 0x5a4   :  { %11215 = vmatmul.mubr.f32.gmra.mrb[84].mxu1 %v5271_v8  ;;  %11235 = vmatmul.mubr.f32.vlgmr.msra.gmra.mrb[80].mxu0 %v15572_v4  ;;  %v2973_v8 = vld [vmem:[%s17684_s4 + $0xb8] sm:$0xff]  ;;  %18312 = vst [vmem:[#allocation43_spill] sm:$0xff] %v15887_v24  ;;  %v15897_v46 = vand.u32 4294901760, %v6273_v40  ;;  %v5330_v6 = vsub.f32 %v15832_v51, %v17893_v55  ;;  %v17900_v22 = vand.u32 4294901760, %v15868_v15  ;;  %v5321_v45 = vand.u32 4294901760, %v5320_v17 }
 0x5a5   :  { %11217 = vmatprep.mubr.f32.mxu1 %v5281_v59  ;;  %12593 = vmatpush3.bf16.msra.mxu0 %v15740_v29  ;;  %v2974_v59 = vld [vmem:[%s17684_s4 + $0xc0] sm:$0xff]  ;;  %v6276_v4 = vsel %vm2986_vm1, %v2973_v8, 0  ;;  %v18314_v2 = vand.u32 4294901760, %v15846_v53  ;;  %v15923_v17 = vsub.f32 %v6270_v27, %v15895_v38 }
 0x5a6   :  { %11237 = vmatprep.mubr.f32.mxu0 %v15597_v11  ;;  %12595 = vmatprep.subr.bf16.mxu0 %v15767_v54  ;;  %v15904_v11 = vsub.f32 %v6264_v3, %v15871_v43  ;;  %v2975_v3 = vld [vmem:[%s17684_s4 + $0xc8] sm:$0xff]  ;;  %v15928_v8 = vand.u32 4294901760, %v6276_v4  ;;  %v5331_v55 = vand.u32 4294901760, %v5330_v6 }
 0x5a7   :  { %v6374_v58 = vsub.f32 %v15846_v53, %v18314_v2  ;;  %18316 = vst [vmem:[#allocation24_spill] sm:$0xff] %v15923_v17  ;;  %v15926_v2 = vsub.f32 %v6273_v40, %v15897_v46  ;;  %v6282_v40 = vsel %vm2986_vm1, %v2975_v3, 0  ;;  %v18318_v53 = vand.u32 4294901760, %v15887_v24  ;;  %v2978_v3 = vld [vmem:[%s17684_s4 + $0xe0] sm:$0xff] }
 0x5a8   :  { %11218 = vmatmul.mubr.f32.gmra.mrb[86].mxu1 %v5291_v33  ;;  %18313 = vst [vmem:[#allocation49_spill] sm:$0xff] %v15904_v11  ;;  %11238 = vmatmul.mubr.f32.gmra.mrb[82].mxu0 %v15601_v30  ;;  %v6279_v33 = vsel %vm2986_vm1, %v2974_v59, 0  ;;  %v2976_v59 = vld [vmem:[%s17684_s4 + $0xd0] sm:$0xff] }
 0x5a9   :  { %11220 = vmatprep.mubr.f32.mxu1 %v5301_v21  ;;  %12597 = vmatpush3.bf16.msra.mxu0 %v15767_v54  ;;  %v15920_v21 = vsub.f32 %v6267_v9, %v15893_v60  ;;  %18317 = vst [vmem:[#allocation26_spill] sm:$0xff] %v15926_v2  ;;  %v15937_v30 = vand.u32 4294901760, %v6279_v33  ;;  %v6375_v27 = vand.u32 4294901760, %v6374_v58  ;;  %v6394_v6 = vsub.f32 %v15887_v24, %v18318_v53 }
 0x5aa   :  { %11240 = vmatprep.mubr.f32.mxu0 %v15536_v14  ;;  %12599 = vmatprep.subr.bf16.mxu0 %v15725_v34  ;;  %v6384_v14 = vsub.f32 %v15868_v15, %v17900_v22  ;;  %v2977_v22 = vld [vmem:[%s17684_s4 + $0xd8] sm:$0xff]  ;;  %v15964_v9 = vand.u32 4294901760, %v6282_v40 }
 0x5ab   :  { %18315 = vst [vmem:[#allocation23_spill] sm:$0xff] %v15920_v21  ;;  %v15962_v24 = vsub.f32 %v6279_v33, %v15937_v30  ;;  %v6288_v58 = vsel %vm2986_vm1, %v2977_v22, 0  ;;  %v18320_v33 = vand.u32 4294901760, %v15920_v21 }
 0x5ac   :  { %11221 = vmatmul.mubr.f32.gmra.mrb[88].mxu1 %v5311_v13  ;;  %11241 = vmatmul.mubr.f32.gmra.mrb[84].mxu0 %v15574_v0  ;;  %v6285_v13 = vsel %vm2986_vm1, %v2976_v59, 0  ;;  %v6385_v53 = vand.u32 4294901760, %v6384_v14  ;;  %v18319_v59 = vand.u32 4294901760, %v15904_v11  ;;  %v6291_v14 = vsel %vm2986_vm1, %v2978_v3, 0  ;;  %v2980_v3 = vld [vmem:[%s17684_s4 + $0xf0] sm:$0xff] }
 0x5ad   :  { %11223 = vmatprep.mubr.f32.mxu1 %v5321_v45  ;;  %11243 = vmatprep.mubr.f32.mxu0 %v15599_v36  ;;  %v15953_v45 = vsub.f32 %v6276_v4, %v15928_v8  ;;  %v15967_v4 = vand.u32 4294901760, %v6285_v13  ;;  %v6414_v0 = vsub.f32 %v15920_v21, %v18320_v33  ;;  %v15990_v33 = vsub.f32 %v6282_v40, %v15964_v9  ;;  %v2981_v40 = vld [vmem:[%s17684_s4 + $0xf8] sm:$0xff] }
 0x5ae   :  { %v6404_v36 = vsub.f32 %v15904_v11, %v18319_v59  ;;  %v2979_v59 = vld [vmem:[%s17684_s4 + $0xe8] sm:$0xff]  ;;  %v18322_v11 = vand.u32 4294901760, %v15926_v2  ;;  %v15992_v21 = vand.u32 4294901760, %v6288_v58 }
 0x5b0   :  { %11224 = vmatmul.mubr.f32.gmra.mrb[90].mxu1 %v5331_v55  ;;  %11244 = vmatmul.mubr.f32.gmra.mrb[86].mxu0 %v15615_v26  ;;  %v6395_v55 = vand.u32 4294901760, %v6394_v6  ;;  %v18321_v26 = vand.u32 4294901760, %v15923_v17  ;;  %v6434_v22 = vsub.f32 %v15926_v2, %v18322_v11  ;;  %v15997_v11 = vsub.f32 %v6285_v13, %v15967_v4 }
 0x5b1   :  { %11394 = vmatprep.mubr.f32.mxu1 %v6375_v27  ;;  %11246 = vmatprep.mubr.f32.mxu0 %v15646_v52  ;;  %v6405_v52 = vand.u32 4294901760, %v6404_v36  ;;  %v6294_v6 = vsel %vm2986_vm1, %v2979_v59, 0  ;;  %v6297_v36 = vsel %vm2986_vm1, %v2980_v3, 0  ;;  %v18323_v13 = vand.u32 4294901760, %v15953_v45 }
 0x5b2   :  { %v6424_v27 = vsub.f32 %v15923_v17, %v18321_v26  ;;  %v15999_v26 = vand.u32 4294901760, %v6291_v14  ;;  %v6435_v15 = vand.u32 4294901760, %v6434_v22  ;;  %v18324_v59 = vand.u32 4294901760, %v15962_v24 }
 0x5b3   :  { %v16016_v3 = vsub.f32 %v6288_v58, %v15992_v21  ;;  %v16018_v17 = vand.u32 4294901760, %v6294_v6 }
 0x5b4   :  { %11395 = vmatmul.mubr.f32.vlgmr.msra.gmra.mrb[92].mxu1 %v6385_v53  ;;  %11247 = vmatmul.mubr.f32.gmra.mrb[88].mxu0 %v15653_v10  ;;  %v6415_v53 = vand.u32 4294901760, %v6414_v0  ;;  %v6444_v10 = vsub.f32 %v15953_v45, %v18323_v13  ;;  %v6454_v2 = vsub.f32 %v15962_v24, %v18324_v59  ;;  %v17925_v0 = vand.u32 4294901760, %v15997_v11 }
 0x5b5   :  { %12633 = vmatpush3.bf16.msra.mxu1 %v15782_v50  ;;  %11249 = vmatprep.mubr.f32.mxu0 %v15690_v47  ;;  %v6425_v50 = vand.u32 4294901760, %v6424_v27  ;;  %v6463_v47 = vand.u32 4294901760, %v15990_v33  ;;  %v6300_v27 = vsel %vm2986_vm1, %v2981_v40, 0  ;;  %v17926_v22 = vand.u32 4294901760, %v16016_v3 }
 0x5b6   :  { %12635 = vmatprep.subr.bf16.mxu1 %v15817_v32  ;;  %11397 = vmatprep.mubr.f32.mxu1 %v6395_v55  ;;  %v16024_v55 = vsub.f32 %v6291_v14, %v15999_v26  ;;  %v6445_v58 = vand.u32 4294901760, %v6444_v10  ;;  %v16036_v14 = vsub.f32 %v6294_v6, %v16018_v17  ;;  %v16038_v13 = vand.u32 4294901760, %v6300_v27 }
 0x5b7   :  { %v6455_v40 = vand.u32 4294901760, %v6454_v2  ;;  %v6474_v10 = vsub.f32 %v15997_v11, %v17925_v0  ;;  %v6484_v59 = vsub.f32 %v16016_v3, %v17926_v22 }
 0x5b8   :  { %11398 = vmatmul.mubr.f32.gmra.mrb[94].mxu1 %v6405_v52  ;;  %11250 = vmatmul.mubr.f32.gmra.mrb[90].mxu0 %v15708_v35  ;;  %v16026_v52 = vand.u32 4294901760, %v6297_v36  ;;  %v16054_v2 = vsub.f32 %v6300_v27, %v16038_v13 }
 0x5b9   :  { %12637 = vmatpush3.bf16.msra.mxu1 %v15817_v32  ;;  %11252 = vmatprep.mubr.f32.mxu0 %v15749_v18  ;;  %v6464_v32 = vsub.f32 %v15990_v33, %v6463_v47  ;;  %v6475_v0 = vand.u32 4294901760, %v6474_v10 }
 0x5ba   :  { %12639 = vmatprep.subr.bf16.mxu1 %v15740_v29  ;;  %11400 = vmatprep.mubr.f32.mxu1 %v6415_v53  ;;  %v6493_v53 = vand.u32 4294901760, %v16024_v55  ;;  %v6523_v27 = vand.u32 4294901760, %v16054_v2 }
 0x5bb   :  { %v6465_v6 = vand.u32 4294901760, %v6464_v32  ;;  %v6485_v32 = vand.u32 4294901760, %v6484_v59 }
 0x5bc   :  { %11401 = vmatmul.mubr.f32.gmra.mrb[96].mxu1 %v6425_v50  ;;  %11253 = vmatmul.mubr.f32.gmra.mrb[92].mxu0 %v15760_v62  ;;  %v16046_v50 = vsub.f32 %v6297_v36, %v16026_v52  ;;  %v6494_v36 = vsub.f32 %v16024_v55, %v6493_v53  ;;  %v6524_v59 = vsub.f32 %v16054_v2, %v6523_v27 }
 0x5bd   :  { %11403 = vmatprep.mubr.f32.mxu1 %v6435_v15  ;;  %11255 = vmatprep.mubr.f32.mxu0 %v15776_v39  ;;  %v6503_v15 = vand.u32 4294901760, %v16036_v14 }
 0x5bf   :  { %v6504_v22 = vsub.f32 %v16036_v14, %v6503_v15 }
 0x5c0   :  { %11404 = vmatmul.mubr.f32.gmra.mrb[98].mxu1 %v6445_v58  ;;  %11256 = vmatmul.mubr.f32.gmra.mrb[94].mxu0 %v15791_v41  ;;  %v6513_v58 = vand.u32 4294901760, %v16046_v50 }
 0x5c1   :  { %11406 = vmatprep.mubr.f32.mxu1 %v6455_v40  ;;  %11266 = vmatprep.mubr.f32.mxu0 %v15539_v25  ;;  %v6495_v40 = vand.u32 4294901760, %v6494_v36  ;;  %v6525_v36 = vand.u32 4294901760, %v6524_v59  ;;  %v18339_v59 = vld [vmem:[#allocation43_spill] sm:$0xff] }
 0x5c2   :  { %v6514_v10 = vsub.f32 %v16046_v50, %v6513_v58 }
 0x5c4   :  { %11407 = vmatmul.mubr.f32.gmra.mrb[100].mxu1 %v6465_v6  ;;  %11267 = vmatmul.mubr.f32.vlgmr.msra.gmra.mrb[80].mxu0 %v15588_v57  ;;  %v6505_v6 = vand.u32 4294901760, %v6504_v22  ;;  %v18327_v22 = vand.u32 4294901760, %v15607_v12 }
 0x5c5   :  { %11409 = vmatprep.mubr.f32.mxu1 %v6475_v0  ;;  %12601 = vmatpush3.bf16.msra.mxu0 %v15725_v34  ;;  %v6515_v0 = vand.u32 4294901760, %v6514_v10  ;;  %v18334_v10 = vld [vmem:[#allocation37_spill] sm:$0xff] }
 0x5c6   :  { %11269 = vmatprep.mubr.f32.mxu0 %v15607_v12  ;;  %12603 = vmatprep.subr.bf16.mxu0 %v15755_v20  ;;  %v18332_v12 = vand.u32 4294901760, %v15610_v49 }
 0x5c8   :  { %11410 = vmatmul.mubr.f32.gmra.mrb[102].mxu1 %v6485_v32  ;;  %11270 = vmatmul.mubr.f32.gmra.mrb[82].mxu0 %v15621_v61  ;;  %v18328_v32 = vld [vmem:[#allocation50_spill] sm:$0xff] }
 0x5c9   :  { %11412 = vmatprep.mubr.f32.mxu1 %v6495_v40  ;;  %12605 = vmatpush3.bf16.msra.mxu0 %v15755_v20  ;;  %v18329_v40 = vand.u32 4294901760, %v15621_v61  ;;  %v18333_v61 = vand.u32 4294901760, %v15639_v1 }
 0x5ca   :  { %11272 = vmatprep.mubr.f32.mxu0 %v15542_v44  ;;  %12607 = vmatprep.subr.bf16.mxu0 %v15757_v16 }
 0x5cc   :  { %11413 = vmatmul.mubr.f32.gmra.mrb[104].mxu1 %v6505_v6  ;;  %11273 = vmatmul.mubr.f32.gmra.mrb[84].mxu0 %v15591_v48  ;;  %v18336_v6 = vld [vmem:[#allocation54_spill] sm:$0xff] }
 0x5cd   :  { %11415 = vmatprep.mubr.f32.mxu1 %v6515_v0  ;;  %11275 = vmatprep.mubr.f32.mxu0 %v15610_v49  ;;  %v18338_v49 = vand.u32 4294901760, %v15723_v42  ;;  %v18341_v0 = vand.u32 4294901760, %v15735_v37 }
 0x5d0   :  { %11416 = vmatmul.mubr.f32.gmra.mrb[106].mxu1 %v6525_v36  ;;  %11276 = vmatmul.mubr.f32.gmra.mrb[86].mxu0 %v15639_v1  ;;  %v18340_v1 = vld [vmem:[#allocation49_spill] sm:$0xff]  ;;  %v18344_v36 = vld [vmem:[#allocation24_spill] sm:$0xff] }
 0x5d1   :  { %11426 = vmatprep.mubr.f32.mxu1 %v15813_v28  ;;  %11278 = vmatprep.mubr.f32.mxu0 %v15682_v7 }
 0x5d4   :  { %11427 = vmatmul.mubr.f32.vlgmr.msra.gmra.mrb[92].mxu1 %v15834_v31  ;;  %11279 = vmatmul.mubr.f32.gmra.mrb[88].mxu0 %v15688_v23 }
 0x5d5   :  { %12641 = vmatpush3.bf16.msra.mxu1 %v15740_v29  ;;  %11281 = vmatprep.mubr.f32.mxu0 %v15723_v42  ;;  %v18325_v29 = vand.u32 4294901760, %v15539_v25  ;;  %v18330_v25 = vand.u32 4294901760, %v15542_v44  ;;  %v18335_v44 = vand.u32 4294901760, %v15682_v7  ;;  %v18342_v7 = vand.u32 4294901760, %v15774_v5 }
 0x5d6   :  { %12643 = vmatprep.subr.bf16.mxu1 %v15767_v54  ;;  %11429 = vmatprep.mubr.f32.mxu1 %v15860_v63  ;;  %v18345_v42 = vand.u32 4294901760, %v15789_v56 }
 0x5d8   :  { %11430 = vmatmul.mubr.f32.gmra.mrb[94].mxu1 %v15871_v43  ;;  %11282 = vmatmul.mubr.f32.gmra.mrb[90].mxu0 %v15735_v37  ;;  %v18348_v37 = vand.u32 4294901760, %v15832_v51 }
 0x5d9   :  { %12645 = vmatpush3.bf16.msra.mxu1 %v15767_v54  ;;  %11284 = vmatprep.mubr.f32.mxu0 %v15774_v5  ;;  %v18326_v54 = vand.u32 4294901760, %v15588_v57  ;;  %v18331_v57 = vand.u32 4294901760, %v15591_v48  ;;  %v18337_v48 = vand.u32 4294901760, %v15688_v23  ;;  %v18343_v23 = vld [vmem:[#allocation23_spill] sm:$0xff]  ;;  %v18349_v5 = vld [vmem:[#allocation21_spill] sm:$0xff] }
 0x5da   :  { %12647 = vmatprep.subr.bf16.mxu1 %v15725_v34  ;;  %11432 = vmatprep.mubr.f32.mxu1 %v15893_v60 }
 0x5dc   :  { %11433 = vmatmul.mubr.f32.gmra.mrb[96].mxu1 %v15895_v38  ;;  %11285 = vmatmul.mubr.f32.gmra.mrb[92].mxu0 %v15789_v56  ;;  %v18351_v56 = vld [vmem:[#allocation38_spill] sm:$0xff] }
 0x5dd   :  { %11435 = vmatprep.mubr.f32.mxu1 %v15897_v46  ;;  %11287 = vmatprep.mubr.f32.mxu0 %v15811_v19 }
 0x5e0   :  { %11436 = vmatmul.mubr.f32.gmra.mrb[98].mxu1 %v15928_v8  ;;  %11288 = vmatmul.mubr.f32.gmra.mrb[94].mxu0 %v15832_v51  ;;  %v18353_v51 = vld [vmem:[#allocation10_spill] sm:$0xff] }
 0x5e1   :  { %11438 = vmatprep.mubr.f32.mxu1 %v15937_v30  ;;  %11298 = vmatprep.mubr.f32.mxu0 %v18325_v29  ;;  %v18346_v29 = vld [vmem:[#allocation26_spill] sm:$0xff] }
 0x5e4   :  { %11439 = vmatmul.mubr.f32.gmra.mrb[100].mxu1 %v15964_v9  ;;  %11299 = vmatmul.mubr.f32.vlgmr.msra.gmra.mrb[80].mxu0 %v18326_v54  ;;  %v18347_v54 = vand.u32 4294901760, %v15811_v19  ;;  %v18352_v19 = vld [vmem:[#allocation17_spill] sm:$0xff] }
 0x5e5   :  { %11441 = vmatprep.mubr.f32.mxu1 %v15967_v4  ;;  %12609 = vmatpush3.bf16.msra.mxu0 %v15757_v16 }
 0x5e6   :  { %11301 = vmatprep.mubr.f32.mxu0 %v18327_v22  ;;  %12611 = vmatprep.subr.bf16.mxu0 %v18328_v32  ;;  %v18350_v22 = vld [vmem:[#allocation11_spill] sm:$0xff] }
 0x5e8   :  { %11442 = vmatmul.mubr.f32.gmra.mrb[102].mxu1 %v15992_v21  ;;  %11302 = vmatmul.mubr.f32.gmra.mrb[82].mxu0 %v18329_v40  ;;  %v18354_v40 = vld [vmem:[#allocation36_spill] sm:$0xff] }
 0x5e9   :  { %11444 = vmatprep.mubr.f32.mxu1 %v15999_v26  ;;  %12613 = vmatpush3.bf16.msra.mxu0 %v18328_v32 }
 0x5ea   :  { %11304 = vmatprep.mubr.f32.mxu0 %v18330_v25  ;;  %12615 = vmatprep.subr.bf16.mxu0 %v15725_v34  ;;  %v18355_v25 = vld [vmem:[#allocation22_spill] sm:$0xff] }
 0x5ec   :  { %11445 = vmatmul.mubr.f32.gmra.mrb[104].mxu1 %v16018_v17  ;;  %11305 = vmatmul.mubr.f32.gmra.mrb[84].mxu0 %v18331_v57  ;;  %v18356_v57 = vld [vmem:[#allocation40_spill] sm:$0xff] }
 0x5ed   :  { %11447 = vmatprep.mubr.f32.mxu1 %v16026_v52  ;;  %11307 = vmatprep.mubr.f32.mxu0 %v18332_v12  ;;  %v18357_v12 = vand.u32 4294901760, %v18334_v10 }
 0x5f0   :  { %11448 = vmatmul.mubr.f32.gmra.mrb[106].mxu1 %v16038_v13  ;;  %11308 = vmatmul.mubr.f32.gmra.mrb[86].mxu0 %v18333_v61  ;;  %v18358_v61 = vld [vmem:[#allocation44_spill] sm:$0xff] }
 0x5f1   :  { %11458 = vmatprep.mubr.f32.mxu1 %v18334_v10  ;;  %11310 = vmatprep.mubr.f32.mxu0 %v18335_v44  ;;  %v18359_v44 = vand.u32 4294901760, %v18336_v6  ;;  %v18365_v10 = vand.u32 4294901760, %v18344_v36 }
 0x5f4   :  { %11459 = vmatmul.mubr.f32.vlgmr.msra.gmra.mrb[92].mxu1 %v18336_v6  ;;  %11311 = vmatmul.mubr.f32.gmra.mrb[88].mxu0 %v18337_v48  ;;  %v18360_v48 = vld [vmem:[#allocation32_spill] sm:$0xff]  ;;  %v18366_v6 = vand.u32 4294901760, %v18346_v29 }
 0x5f5   :  { %12649 = vmatpush3.bf16.msra.mxu1 %v15725_v34  ;;  %11313 = vmatprep.mubr.f32.mxu0 %v18338_v49  ;;  %v18361_v49 = vld [vmem:[#allocation48_spill] sm:$0xff] }
 0x5f6   :  { %12651 = vmatprep.subr.bf16.mxu1 %v15755_v20  ;;  %11461 = vmatprep.mubr.f32.mxu1 %v18339_v59 }
 0x5f8   :  { %11462 = vmatmul.mubr.f32.gmra.mrb[94].mxu1 %v18340_v1  ;;  %11314 = vmatmul.mubr.f32.gmra.mrb[90].mxu0 %v18341_v0  ;;  %v18362_v0 = vand.u32 4294901760, %v18339_v59  ;;  %v18367_v59 = vand.u32 4294901760, %v15953_v45 }
 0x5f9   :  { %12653 = vmatpush3.bf16.msra.mxu1 %v15755_v20  ;;  %11316 = vmatprep.mubr.f32.mxu0 %v18342_v7  ;;  %v18363_v7 = vand.u32 4294901760, %v18340_v1  ;;  %v18369_v1 = vand.u32 4294901760, %v15997_v11 }
 0x5fa   :  { %12655 = vmatprep.subr.bf16.mxu1 %v15757_v16  ;;  %11464 = vmatprep.mubr.f32.mxu1 %v18343_v23 }
 0x5fc   :  { %11465 = vmatmul.mubr.f32.gmra.mrb[96].mxu1 %v18344_v36  ;;  %11317 = vmatmul.mubr.f32.gmra.mrb[92].mxu0 %v18345_v42 }
 0x5fd   :  { %11467 = vmatprep.mubr.f32.mxu1 %v18346_v29  ;;  %11319 = vmatprep.mubr.f32.mxu0 %v18347_v54 }
 0x600   :  { %11468 = vmatmul.mubr.f32.gmra.mrb[98].mxu1 %v15953_v45  ;;  %11320 = vmatmul.mubr.f32.gmra.mrb[94].mxu0 %v18348_v37  ;;  %v18370_v45 = vand.u32 4294901760, %v16016_v3 }
 0x601   :  { %11470 = vmatprep.mubr.f32.mxu1 %v15962_v24  ;;  %11330 = vmatprep.mubr.f32.mxu0 %v18349_v5 }
 0x604   :  { %11471 = vmatmul.mubr.f32.gmra.mrb[100].mxu1 %v15990_v33  ;;  %11331 = vmatmul.mubr.f32.vlgmr.msra.gmra.mrb[80].mxu0 %v18350_v22 }
 0x605   :  { %11473 = vmatprep.mubr.f32.mxu1 %v15997_v11  ;;  %12617 = vmatpush3.bf16.msra.mxu0 %v15725_v34 }
 0x606   :  { %11333 = vmatprep.mubr.f32.mxu0 %v18351_v56  ;;  %12619 = vmatprep.subr.bf16.mxu0 %v15755_v20 }
 0x608   :  { %11474 = vmatmul.mubr.f32.gmra.mrb[102].mxu1 %v16016_v3  ;;  %11334 = vmatmul.mubr.f32.gmra.mrb[82].mxu0 %v18352_v19 }
 0x609   :  { %11476 = vmatprep.mubr.f32.mxu1 %v16024_v55  ;;  %12621 = vmatpush3.bf16.msra.mxu0 %v15755_v20  ;;  %v16314_v55 = vld [vmem:[%s17683_s3 + $0x30] sm:$0xff] }
 0x60a   :  { %11336 = vmatprep.mubr.f32.mxu0 %v18353_v51 }
 0x60c   :  { %11477 = vmatmul.mubr.f32.gmra.mrb[104].mxu1 %v16036_v14  ;;  %11337 = vmatmul.mubr.f32.gmra.mrb[84].mxu0 %v18354_v40 }
 0x60d   :  { %11479 = vmatprep.mubr.f32.mxu1 %v16046_v50  ;;  %11339 = vmatprep.mubr.f32.mxu0 %v18355_v25 }
 0x610   :  { %11480 = vmatmul.mubr.f32.gmra.mrb[106].mxu1 %v16054_v2  ;;  %11340 = vmatmul.mubr.f32.gmra.mrb[86].mxu0 %v18356_v57 }
 0x611   :  { %11490 = vmatprep.mubr.f32.mxu1 %v18357_v12  ;;  %11342 = vmatprep.mubr.f32.mxu0 %v18358_v61  ;;  %v16343_v12 = vld [vmem:[%s17683_s3 + $0xd0] sm:$0xff] }
 0x614   :  { %11491 = vmatmul.mubr.f32.vlgmr.msra.gmra.mrb[92].mxu1 %v18359_v44  ;;  %11343 = vmatmul.mubr.f32.gmra.mrb[88].mxu0 %v18360_v48 }
 0x615   :  { %12657 = vmatpush3.bf16.msra.mxu1 %v15757_v16  ;;  %11345 = vmatprep.mubr.f32.mxu0 %v18361_v49  ;;  %v18364_v16 = vand.u32 4294901760, %v18343_v23  ;;  %v16332_v23 = vld [vmem:[%s17683_s3 + $0x58] sm:$0xff] }
 0x616   :  { %12659 = vmatprep.subr.bf16.mxu1 %v18328_v32  ;;  %11493 = vmatprep.mubr.f32.mxu1 %v18362_v0 }
 0x618   :  { %11494 = vmatmul.mubr.f32.gmra.mrb[94].mxu1 %v18363_v7  ;;  %11346 = vmatmul.mubr.f32.gmra.mrb[90].mxu0 %v15708_v35  ;;  %v16354_v7 = vld [vmem:[%s17683_s3 + $0xa8] sm:$0xff] }
 0x619   :  { %12661 = vmatpush3.bf16.msra.mxu1 %v18328_v32  ;;  %11348 = vmatprep.mubr.f32.mxu0 %v15749_v18  ;;  %v18368_v32 = vand.u32 4294901760, %v15962_v24  ;;  %v18371_v24 = vld [vmem:[#allocation13_spill] sm:$0xff] }
 0x61a   :  { %12663 = vmatprep.subr.bf16.mxu1 %v15725_v34  ;;  %11496 = vmatprep.mubr.f32.mxu1 %v18364_v16  ;;  %v2878_v33 = vmax.f32 %v18371_v24, 0.0 }
 0x61c   :  { %11497 = vmatmul.mubr.f32.gmra.mrb[96].mxu1 %v18365_v10  ;;  %11349 = vmatmul.mubr.f32.gmra.mrb[92].mxu0 %v15760_v62 }
 0x61d   :  { %11499 = vmatprep.mubr.f32.mxu1 %v18366_v6  ;;  %11351 = vmatprep.mubr.f32.mxu0 %v15776_v39 }
 0x620   :  { %11500 = vmatmul.mubr.f32.gmra.mrb[98].mxu1 %v18367_v59  ;;  %11352 = vmatmul.mubr.f32.gmra.mrb[94].mxu0 %v15791_v41 }
 0x621   :  { %11502 = vmatprep.mubr.f32.mxu1 %v18368_v32  ;;  %11362 = vmatprep.mubr.f32.mxu0 %v18349_v5 }
 0x624   :  { %11503 = vmatmul.mubr.f32.gmra.mrb[100].mxu1 %v6463_v47  ;;  %11363 = vmatmul.mubr.f32.vlgmr.msra.gmra.mrb[80].mxu0 %v18350_v22  ;;  %v16228_v47 = vand.u32 4294901760, %v2878_v33 }
 0x625   :  { %11505 = vmatprep.mubr.f32.mxu1 %v18369_v1  ;;  %11365 = vmatprep.mubr.f32.mxu0 %v18351_v56 }
 0x626   :  { %v16236_v11 = vsub.f32 %v2878_v33, %v16228_v47 }
 0x628   :  { %11506 = vmatmul.mubr.f32.gmra.mrb[102].mxu1 %v18370_v45  ;;  %11366 = vmatmul.mubr.f32.gmra.mrb[82].mxu0 %v18352_v19  ;;  %v17929_v3 = vand.u32 4294901760, %v16236_v11 }
 0x629   :  { %11508 = vmatprep.mubr.f32.mxu1 %v6493_v53  ;;  %11368 = vmatprep.mubr.f32.mxu0 %v18353_v51 }
 0x62c   :  { %11509 = vmatmul.mubr.f32.gmra.mrb[104].mxu1 %v6503_v15  ;;  %11369 = vmatmul.mubr.f32.gmra.mrb[84].mxu0 %v18354_v40 }
 0x62d   :  { %11511 = vmatprep.mubr.f32.mxu1 %v6513_v58  ;;  %11371 = vmatprep.mubr.f32.mxu0 %v18355_v25  ;;  %v16327_v58 = vld [vmem:[%s17683_s3 + $0x80] sm:$0xff] }
 0x630   :  { %11512 = vmatmul.mubr.f32.gmra.mrb[106].mxu1 %v6523_v27  ;;  %11372 = vmatmul.mubr.f32.gmra.mrb[86].mxu0 %v18356_v57 }
 0x631   :  { %11522 = vmatprep.mubr.f32.mxu1 %v15813_v28  ;;  %11374 = vmatprep.mubr.f32.mxu0 %v18358_v61 }
 0x634   :  { %11523 = vmatmul.mubr.f32.vlgmr.msra.gmra.mrb[92].mxu1 %v15834_v31  ;;  %11375 = vmatmul.mubr.f32.gmra.mrb[88].mxu0 %v18360_v48 }
 0x635   :  { %12665 = vmatpush3.bf16.msra.mxu1 %v15725_v34  ;;  %11377 = vmatprep.mubr.f32.mxu0 %v18361_v49  ;;  %v7532_v34 = vsub.f32 %v16236_v11, %v17929_v3 }
 0x636   :  { %12667 = vmatprep.subr.bf16.mxu1 %v15755_v20  ;;  %11525 = vmatprep.mubr.f32.mxu1 %v15860_v63 }
 0x638   :  { %11526 = vmatmul.mubr.f32.gmra.mrb[94].mxu1 %v15871_v43  ;;  %11378 = vmatmul.mubr.f32.gmra.mrb[90].mxu0 %v15708_v35  ;;  %v7533_v35 = vand.u32 4294901760, %v7532_v34 }
 0x639   :  { %12669 = vmatpush3.bf16.msra.mxu1 %v15755_v20  ;;  %11380 = vmatprep.mubr.f32.mxu0 %v15749_v18  ;;  %v18372_v20 = vld [vmem:[#allocation5_spill] sm:$0xff] }
 0x63a   :  { %11528 = vmatprep.mubr.f32.mxu1 %v15893_v60 }
 0x63c   :  { %11529 = vmatmul.mubr.f32.gmra.mrb[96].mxu1 %v15895_v38  ;;  %11381 = vmatmul.mubr.f32.gmra.mrb[92].mxu0 %v15760_v62 }
 0x63d   :  { %11531 = vmatprep.mubr.f32.mxu1 %v15897_v46  ;;  %11383 = vmatprep.mubr.f32.mxu0 %v15776_v39 }
 0x640   :  { %11532 = vmatmul.mubr.f32.gmra.mrb[98].mxu1 %v15928_v8  ;;  %11384 = vmatmul.mubr.f32.gmra.mrb[94].mxu0 %v15791_v41  ;;  %v2880_v41 = vmax.f32 %v18372_v20, 0.0 }
 0x641   :  { %11534 = vmatprep.mubr.f32.mxu1 %v15937_v30  ;;  %11610 = vmatprep.mubr.f32.mxu0 %v7533_v35 }
 0x642   :  { %v16275_v18 = vand.u32 4294901760, %v2880_v41 }
 0x644   :  { %11535 = vmatmul.mubr.f32.gmra.mrb[100].mxu1 %v15964_v9  ;;  %v16280_v62 = vsub.f32 %v2880_v41, %v16275_v18  ;;  %v16366_v41 = vld [vmem:[%s17683_s3 + $0x120] sm:$0xff] }
 0x645   :  { %11537 = vmatprep.mubr.f32.mxu1 %v15967_v4 }
 0x646   :  { %18373 = vst [vmem:[#allocation27_spill] sm:$0xff] %v16280_v62  ;;  %v17927_v39 = vand.u32 4294901760, %v16280_v62 }
 0x648   :  { %11538 = vmatmul.mubr.f32.gmra.mrb[102].mxu1 %v15992_v21 }
 0x649   :  { %11540 = vmatprep.mubr.f32.mxu1 %v15999_v26 }
 0x64c   :  { %11541 = vmatmul.mubr.f32.gmra.mrb[104].mxu1 %v16018_v17 }
 0x64d   :  { %11543 = vmatprep.mubr.f32.mxu1 %v16026_v52 }
 0x650   :  { %11544 = vmatmul.mubr.f32.gmra.mrb[106].mxu1 %v16038_v13 }
 0x651   :  { %11554 = vmatprep.mubr.f32.mxu1 %v15813_v28  ;;  %v8216_v28 = vsub.f32 %v16280_v62, %v17927_v39 }
 0x654   :  { %11555 = vmatmul.mubr.f32.vlgmr.msra.gmra.mrb[92].mxu1 %v15834_v31 }
 0x655   :  { %11557 = vmatprep.mubr.f32.mxu1 %v15860_v63 }
 0x658   :  { %11558 = vmatmul.mubr.f32.gmra.mrb[94].mxu1 %v15871_v43 }
 0x659   :  { %11560 = vmatprep.mubr.f32.mxu1 %v15893_v60 }
 0x65c   :  { %11561 = vmatmul.mubr.f32.gmra.mrb[96].mxu1 %v15895_v38 }
 0x65d   :  { %11563 = vmatprep.mubr.f32.mxu1 %v15897_v46 }
 0x660   :  { %11564 = vmatmul.mubr.f32.gmra.mrb[98].mxu1 %v15928_v8 }
 0x661   :  { %11566 = vmatprep.mubr.f32.mxu1 %v15937_v30  ;;  %v8217_v30 = vand.u32 4294901760, %v8216_v28 }
 0x664   :  { %11567 = vmatmul.mubr.f32.gmra.mrb[100].mxu1 %v15964_v9 }
 0x665   :  { %11569 = vmatprep.mubr.f32.mxu1 %v15967_v4 }
 0x668   :  { %11570 = vmatmul.mubr.f32.gmra.mrb[102].mxu1 %v15992_v21 }
 0x669   :  { %11572 = vmatprep.mubr.f32.mxu1 %v15999_v26 }
 0x66c   :  { %11573 = vmatmul.mubr.f32.gmra.mrb[104].mxu1 %v16018_v17 }
 0x66d   :  { %11575 = vmatprep.mubr.f32.mxu1 %v16026_v52  ;;  %v16319_v52 = vld [vmem:[%s17683_s3 + $0x8] sm:$0xff] }
 0x66e   :  { %v11210_v31 = vpop.f32.mrb[80].mxu1 }
 0x66f   :  { %v5223_v46 = vpop.f32.mrb[81].mxu1 }
 0x670   :  { %11576 = vmatmul.mubr.f32.gmra.mrb[106].mxu1 %v16038_v13  ;;  %v18374_v13 = vld [vmem:[#allocation14_spill] sm:$0xff] }
 0x671   :  { %11820 = vmatprep.mubr.f32.mxu1 %v8217_v30  ;;  %v2879_v53 = vmax.f32 %v18374_v13, 0.0 }
 0x673   :  { %v11213_v63 = vpop.f32.mrb[82].mxu1  ;;  %v16334_v29 = vand.u32 4294901760, %v2879_v53 }
 0x674   :  { %v16293_v43 = vpop.f32.mrb[83].mxu1 }
 0x675   :  { %18375 = vst [vmem:[#allocation34_spill] sm:$0xff] %v16334_v29  ;;  %v16349_v48 = vsub.f32 %v2879_v53, %v16334_v29  ;;  %v16375_v53 = vld [vmem:[%s17683_s3 + $0xf8] sm:$0xff] }
 0x677   :  { %v16295_v60 = vpop.f32.mrb[84].mxu1  ;;  %18377 = vst [vmem:[#allocation47_spill] sm:$0xff] %v16349_v48 }
 0x678   :  { %v16297_v38 = vpop.f32.mrb[85].mxu1 }
 0x67b   :  { %v16299_v21 = vpop.f32.mrb[86].mxu1 }
 0x67c   :  { %v16301_v8 = vpop.f32.mrb[87].mxu1 }
 0x67f   :  { %v16303_v17 = vpop.f32.mrb[88].mxu1 }
 0x680   :  { %v16305_v9 = vpop.f32.mrb[89].mxu1 }
 0x683   :  { %v16307_v4 = vpop.f32.mrb[90].mxu1 }
 0x684   :  { %v16309_v26 = vpop.f32.mrb[91].mxu1 }
 0x6f7   :  { %v11364_v14 = vpop.f32.mrb[80].mxu0 }
 0x6f8   :  { %v6239_v50 = vmul.f32 %v11364_v14, %v16314_v55  ;;  %v6144_v15 = vpop.f32.mrb[81].mxu0 }
 0x6f9   :  { %v6238_v2 = vmul.f32 %v6144_v15, %v16319_v52 }
 0x6fa   :  { %v7452_v27 = vand.u32 4294901760, %v6239_v50 }
 0x6fb   :  { %v7449_v36 = vand.u32 4294901760, %v6238_v2  ;;  %v11367_v42 = vpop.f32.mrb[82].mxu0 }
 0x6fc   :  { %v7558_v54 = vsub.f32 %v6239_v50, %v7452_v27  ;;  %v6241_v37 = vmul.f32 %v11367_v42, %v16327_v58  ;;  %v6156_v5 = vpop.f32.mrb[83].mxu0 }
 0x6fd   :  { %v16337_v22 = vpack.c.bf16 %v7452_v27, %v7449_v36  ;;  %v7551_v56 = vsub.f32 %v6238_v2, %v7449_v36  ;;  %v6240_v19 = vmul.f32 %v6156_v5, %v16332_v23 }
 0x6fe   :  { %v7559_v51 = vand.u32 4294901760, %v7558_v54  ;;  %v7458_v40 = vand.u32 4294901760, %v6241_v37 }
 0x6ff   :  { %18376 = vst [vmem:[#allocation39_spill] sm:$0xff] %v16337_v22  ;;  %v7552_v25 = vand.u32 4294901760, %v7551_v56  ;;  %v7455_v57 = vand.u32 4294901760, %v6240_v19  ;;  %v11370_v61 = vpop.f32.mrb[84].mxu0  ;;  %12671 = vmatprep.subr.bf16.mxu0 %v16337_v22  ;;  %v16346_v44 = vpack.c.bf16 %v7558_v54, %v7551_v56 }
 0x700   :  { %v7572_v49 = vsub.f32 %v6241_v37, %v7458_v40  ;;  %v13258_v0 = vadd.f32 %v11370_v61, %v11210_v31  ;;  %v6168_v16 = vpop.f32.mrb[85].mxu0  ;;  %12673 = vmatpush3.bf16.msra.mxu0 %v16337_v22  ;;  %v7560_v10 = vsub.f32 %v7558_v54, %v7559_v51 }
 0x701   :  { %v16357_v6 = vpack.c.bf16 %v7458_v40, %v7455_v57  ;;  %v7565_v59 = vsub.f32 %v6240_v19, %v7455_v57  ;;  %v13259_v32 = vadd.f32 %v6168_v16, %v5223_v46  ;;  %v7553_v1 = vsub.f32 %v7551_v56, %v7552_v25 }
 0x702   :  { %v7573_v45 = vand.u32 4294901760, %v7572_v49  ;;  %v6243_v24 = vmul.f32 %v13258_v0, %v16343_v12  ;;  %v7561_v33 = vand.u32 4294901760, %v7560_v10  ;;  %v16360_v34 = vpack.c.bf16 %v7559_v51, %v7552_v25  ;;  %v16405_v0 = vld [vmem:[%s17683_s3 + $0x148] sm:$0xff] }
 0x703   :  { %18378 = vst [vmem:[#allocation56_spill] sm:$0xff] %v16357_v6  ;;  %v7566_v35 = vand.u32 4294901760, %v7565_v59  ;;  %v6242_v20 = vmul.f32 %v13259_v32, %v16354_v7  ;;  %v11373_v28 = vpop.f32.mrb[86].mxu0  ;;  %12675 = vmatprep.subr.bf16.mxu0 %v16357_v6  ;;  %v7554_v30 = vand.u32 4294901760, %v7553_v1  ;;  %v16369_v31 = vpack.c.bf16 %v7572_v49, %v7565_v59 }
 0x704   :  { %18379 = vst [vmem:[#allocation30_spill] sm:$0xff] %v16360_v34  ;;  %v17928_v46 = vand.u32 4294901760, %v16349_v48  ;;  %v7464_v14 = vand.u32 4294901760, %v6243_v24  ;;  %v13260_v13 = vadd.f32 %v11373_v28, %v11213_v63  ;;  %v6180_v50 = vpop.f32.mrb[87].mxu0  ;;  %12677 = vmatpush3.bf16.msra.mxu0 %v16357_v6  ;;  %v7574_v15 = vsub.f32 %v7572_v49, %v7573_v45 }
 0x705   :  { %v7461_v2 = vand.u32 4294901760, %v6242_v20  ;;  %v13261_v27 = vadd.f32 %v6180_v50, %v16293_v43  ;;  %v16379_v36 = vpack.c.bf16 %v7561_v33, %v7554_v30  ;;  %v7567_v42 = vsub.f32 %v7565_v59, %v7566_v35  ;;  %v16394_v43 = vld [vmem:[%s17683_s3 + $0x170] sm:$0xff]  ;;  %v16432_v30 = vld [vmem:[%s17683_s3 + $0x1c0] sm:$0xff] }
 0x706   :  { %v16381_v54 = vsub.f32 %v6243_v24, %v7464_v14  ;;  %v6245_v37 = vmul.f32 %v13260_v13, %v16366_v41  ;;  %v7575_v63 = vand.u32 4294901760, %v7574_v15  ;;  %v16384_v5 = vpack.c.bf16 %v7573_v45, %v7566_v35 }
 0x707   :  { %v16386_v56 = vpack.c.bf16 %v7464_v14, %v7461_v2  ;;  %v16388_v19 = vsub.f32 %v6242_v20, %v7461_v2  ;;  %v6244_v51 = vmul.f32 %v13261_v27, %v16375_v53  ;;  %v11376_v40 = vpop.f32.mrb[88].mxu0  ;;  %v7568_v25 = vand.u32 4294901760, %v7567_v42  ;;  %v16441_v2 = vld [vmem:[%s17683_s3 + $0x198] sm:$0xff] }
 0x708   :  { %18380 = vst [vmem:[#allocation16_spill] sm:$0xff] %v16384_v5  ;;  %v16399_v57 = vsub.f32 %v16349_v48, %v17928_v46  ;;  %v7470_v61 = vand.u32 4294901760, %v6245_v37  ;;  %v13262_v49 = vadd.f32 %v11376_v40, %v16295_v60  ;;  %v6192_v16 = vpop.f32.mrb[89].mxu0  ;;  %v17932_v10 = vand.u32 4294901760, %v16381_v54 }
 0x709   :  { %18381 = vst [vmem:[#allocation52_spill] sm:$0xff] %v16386_v56  ;;  %v7467_v59 = vand.u32 4294901760, %v6244_v51  ;;  %v13263_v32 = vadd.f32 %v6192_v16, %v16297_v38  ;;  %12679 = vmatprep.subr.bf16.mxu0 %v16386_v56  ;;  %v16410_v1 = vpack.c.bf16 %v7575_v63, %v7568_v25  ;;  %v17933_v45 = vand.u32 4294901760, %v16388_v19 }
 0x70a   :  { %v16413_v24 = vsub.f32 %v6245_v37, %v7470_v61  ;;  %v6247_v60 = vmul.f32 %v13262_v49, %v16394_v43  ;;  %12681 = vmatpush3.bf16.msra.mxu0 %v16386_v56  ;;  %v7588_v33 = vsub.f32 %v16381_v54, %v17932_v10  ;;  %v16422_v35 = vpack.c.bf16 %v16381_v54, %v16388_v19  ;;  %v16502_v10 = vld [vmem:[%s17683_s3 + $0x238] sm:$0xff] }
 0x70b   :  { %v16424_v38 = vpack.c.bf16 %v7470_v61, %v7467_v59  ;;  %v16426_v20 = vsub.f32 %v6244_v51, %v7467_v59  ;;  %v6246_v28 = vmul.f32 %v13263_v32, %v16405_v0  ;;  %v11379_v14 = vpop.f32.mrb[90].mxu0  ;;  %v7581_v13 = vsub.f32 %v16388_v19, %v17933_v45 }
 0x70c   :  { %v7476_v50 = vand.u32 4294901760, %v6247_v60  ;;  %v13264_v15 = vadd.f32 %v11379_v14, %v16299_v21  ;;  %v6204_v27 = vpop.f32.mrb[91].mxu0  ;;  %v7589_v42 = vand.u32 4294901760, %v7588_v33  ;;  %v17930_v37 = vand.u32 4294901760, %v16413_v24 }
 0x70d   :  { %18382 = vst [vmem:[#allocation15_spill] sm:$0xff] %v16424_v38  ;;  %v7473_v63 = vand.u32 4294901760, %v6246_v28  ;;  %v13265_v51 = vadd.f32 %v6204_v27, %v16301_v8  ;;  %12683 = vmatprep.subr.bf16.mxu0 %v16424_v38  ;;  %v7582_v40 = vand.u32 4294901760, %v7581_v13  ;;  %v17931_v25 = vand.u32 4294901760, %v16426_v20 }
 0x70e   :  { %v16447_v61 = vsub.f32 %v6247_v60, %v7476_v50  ;;  %v6249_v21 = vmul.f32 %v13264_v15, %v16432_v30  ;;  %12685 = vmatpush3.bf16.msra.mxu0 %v16424_v38  ;;  %v7602_v49 = vsub.f32 %v16413_v24, %v17930_v37  ;;  %v16456_v16 = vpack.c.bf16 %v16413_v24, %v16426_v20  ;;  %v16466_v60 = vld [vmem:[%s17683_s3 + $0x210] sm:$0xff] }
 0x70f   :  { %v16458_v8 = vpack.c.bf16 %v7476_v50, %v7473_v63  ;;  %v16460_v59 = vsub.f32 %v6246_v28, %v7473_v63  ;;  %v6248_v32 = vmul.f32 %v13265_v51, %v16441_v2  ;;  %v11382_v33 = vpop.f32.mrb[92].mxu0  ;;  %v16468_v14 = vpack.c.bf16 %v7589_v42, %v7582_v40  ;;  %v16474_v50 = vld [vmem:[%s17683_s3 + $0x1e8] sm:$0xff] }
 0x710   :  { %v7482_v13 = vand.u32 4294901760, %v6249_v21  ;;  %v13266_v15 = vadd.f32 %v11382_v33, %v16303_v17  ;;  %v6216_v28 = vpop.f32.mrb[93].mxu0  ;;  %v7595_v27 = vsub.f32 %v16426_v20, %v17931_v25  ;;  %v7603_v63 = vand.u32 4294901760, %v7602_v49 }
 0x711   :  { %18383 = vst [vmem:[#allocation29_spill] sm:$0xff] %v16458_v8  ;;  %v7479_v51 = vand.u32 4294901760, %v6248_v32  ;;  %v13267_v39 = vadd.f32 %v6216_v28, %v16305_v9  ;;  %12687 = vmatprep.subr.bf16.mxu0 %v16458_v8  ;;  %v7608_v42 = vand.u32 4294901760, %v16460_v59  ;;  %v7615_v17 = vand.u32 4294901760, %v16447_v61  ;;  %v16495_v28 = vld [vmem:[%s17683_s3 + $0x260] sm:$0xff] }
 0x712   :  { %v7628_v40 = vsub.f32 %v6249_v21, %v7482_v13  ;;  %v6251_v33 = vmul.f32 %v13266_v15, %v16466_v60  ;;  %12689 = vmatpush3.bf16.msra.mxu0 %v16458_v8  ;;  %v7596_v46 = vand.u32 4294901760, %v7595_v27  ;;  %v16487_v3 = vpack.c.bf16 %v16447_v61, %v16460_v59 }
 0x713   :  { %v16489_v49 = vpack.c.bf16 %v7482_v13, %v7479_v51  ;;  %v7621_v37 = vsub.f32 %v6248_v32, %v7479_v51  ;;  %v6250_v9 = vmul.f32 %v13267_v39, %v16474_v50  ;;  %v11385_v21 = vpop.f32.mrb[94].mxu0  ;;  %v7609_v15 = vsub.f32 %v16460_v59, %v7608_v42 }
 0x714   :  { %v7488_v25 = vand.u32 4294901760, %v6251_v33  ;;  %v13268_v27 = vadd.f32 %v11385_v21, %v16307_v4  ;;  %v6228_v13 = vpop.f32.mrb[95].mxu0  ;;  %v16504_v32 = vpack.c.bf16 %v7603_v63, %v7596_v46  ;;  %v7616_v39 = vsub.f32 %v16447_v61, %v7615_v17 }
 0x715   :  { %18384 = vst [vmem:[#allocation57_spill] sm:$0xff] %v16489_v49  ;;  %v7485_v51 = vand.u32 4294901760, %v6250_v9  ;;  %v13269_v45 = vadd.f32 %v6228_v13, %v16309_v26  ;;  %12691 = vmatprep.subr.bf16.mxu0 %v16489_v49  ;;  %v7610_v5 = vand.u32 4294901760, %v7609_v15  ;;  %v7622_v59 = vand.u32 4294901760, %v7621_v37 }
 0x716   :  { %v7642_v34 = vsub.f32 %v6251_v33, %v7488_v25  ;;  %v6253_v4 = vmul.f32 %v13268_v27, %v16495_v28  ;;  %12693 = vmatpush3.bf16.msra.mxu0 %v16489_v49  ;;  %v7617_v21 = vand.u32 4294901760, %v7616_v39  ;;  %v7629_v62 = vand.u32 4294901760, %v7628_v40 }
 0x717   :  { %v16511_v8 = vpack.c.bf16 %v7488_v25, %v7485_v51  ;;  %v7635_v46 = vsub.f32 %v6250_v9, %v7485_v51  ;;  %v6252_v63 = vmul.f32 %v13269_v45, %v16502_v10  ;;  %v7623_v61 = vsub.f32 %v7621_v37, %v7622_v59 }
 0x718   :  { %v7494_v38 = vand.u32 4294901760, %v6253_v4  ;;  %v16514_v56 = vpack.c.bf16 %v7617_v21, %v7610_v5  ;;  %v7630_v26 = vsub.f32 %v7628_v40, %v7629_v62  ;;  %v7643_v13 = vand.u32 4294901760, %v7642_v34 }
 0x719   :  { %v7491_v15 = vand.u32 4294901760, %v6252_v63  ;;  %12695 = vmatprep.subr.bf16.mxu0 %v16511_v8  ;;  %v7624_v33 = vand.u32 4294901760, %v7623_v61  ;;  %v7636_v27 = vand.u32 4294901760, %v7635_v46  ;;  %v16517_v6 = vpack.c.bf16 %v7628_v40, %v7621_v37 }
 0x71a   :  { %v7656_v39 = vsub.f32 %v6253_v4, %v7494_v38  ;;  %12697 = vmatpush3.bf16.msra.mxu0 %v16511_v8  ;;  %v7631_v25 = vand.u32 4294901760, %v7630_v26  ;;  %v7644_v9 = vsub.f32 %v7642_v34, %v7643_v13  ;;  %v16520_v51 = vpack.c.bf16 %v7642_v34, %v7635_v46 }
 0x71b   :  { %v16522_v45 = vpack.c.bf16 %v7494_v38, %v7491_v15  ;;  %v7649_v5 = vsub.f32 %v6252_v63, %v7491_v15  ;;  %v7637_v21 = vsub.f32 %v7635_v46, %v7636_v27  ;;  %v18385_v49 = vand.u32 4294901760, %v16388_v19 }
 0x71c   :  { %v18386_v48 = vand.u32 4294901760, %v16381_v54  ;;  %v16530_v61 = vpack.c.bf16 %v7631_v25, %v7624_v33  ;;  %v7645_v37 = vand.u32 4294901760, %v7644_v9  ;;  %v7657_v40 = vand.u32 4294901760, %v7656_v39 }
 0x71d   :  { %v18387_v4 = vand.u32 4294901760, %v16426_v20  ;;  %v18388_v26 = vand.u32 4294901760, %v16413_v24  ;;  %12699 = vmatprep.subr.bf16.mxu0 %v16522_v45  ;;  %v7638_v38 = vand.u32 4294901760, %v7637_v21  ;;  %v7650_v46 = vand.u32 4294901760, %v7649_v5 }
 0x71e   :  { %v16528_v22 = vpack.c.bf16 %v18386_v48, %v18385_v49  ;;  %v16539_v63 = vpack.c.bf16 %v7656_v39, %v7649_v5  ;;  %v16541_v19 = vpack.c.bf16 %v7615_v17, %v7608_v42  ;;  %v18389_v48 = vld [vmem:[#allocation41_spill] sm:$0xff]  ;;  %12701 = vmatpush3.bf16.msra.mxu0 %v16522_v45  ;;  %v7658_v49 = vsub.f32 %v7656_v39, %v7657_v40 }
 0x71f   :  { %v16536_v34 = vpack.c.bf16 %v18388_v26, %v18387_v4  ;;  %v2881_v54 = vmax.f32 %v18389_v48, 0.0  ;;  %v16545_v15 = vpack.c.bf16 %v7629_v62, %v7622_v59  ;;  %v16547_v20 = vpack.c.bf16 %v7643_v13, %v7636_v27  ;;  %12703 = vmatprep.subr.bf16.mxu0 %v16379_v36 }
 0x720   :  { %v7543_v24 = vand.u32 4294901760, %v16399_v57  ;;  %v16551_v33 = vpack.c.bf16 %v7645_v37, %v7638_v38  ;;  %v7651_v25 = vsub.f32 %v7649_v5, %v7650_v46  ;;  %v16553_v9 = vpack.c.bf16 %v7657_v40, %v7650_v46 }
 0x721   :  { %v7659_v42 = vand.u32 4294901760, %v7658_v49  ;;  %v16555_v21 = vand.u32 4294901760, %v2881_v54 }
 0x722   :  { %18390 = vst [vmem:[#allocation58_spill] sm:$0xff] %v16553_v9  ;;  %11611 = vmatmul.mubr.f32.vlgmr.msra.gmra.mrb[96].mxu0 %v7543_v24  ;;  %v7652_v17 = vand.u32 4294901760, %v7651_v25 }
 0x723   :  { %12705 = vmatpush3.bf16.msra.mxu0 %v16379_v36  ;;  %11645 = vmatprep.mubr.f32.mxu0 %v16228_v47  ;;  %v16563_v57 = vsub.f32 %v2881_v54, %v16555_v21 }
 0x724   :  { %12707 = vmatprep.subr.bf16.mxu0 %v16410_v1  ;;  %v16560_v62 = vpack.c.bf16 %v7659_v42, %v7652_v17 }
 0x725   :  { %v17952_v5 = vand.u32 4294901760, %v16563_v57 }
 0x727   :  { %12709 = vmatpush3.bf16.msra.mxu0 %v16410_v1  ;;  %v11556_v59 = vpop.f32.mrb[92].mxu1  ;;  %v16579_v54 = vsub.f32 %v16563_v57, %v17952_v5 }
 0x728   :  { %v7433_v13 = vmul.f32 %v11556_v59, %v16314_v55  ;;  %12711 = vmatprep.subr.bf16.mxu0 %v16468_v14  ;;  %v7338_v27 = vpop.f32.mrb[93].mxu1 }
 0x729   :  { %v7432_v39 = vmul.f32 %v7338_v27, %v16319_v52 }
 0x72a   :  { %v8136_v36 = vand.u32 4294901760, %v7433_v13 }
 0x72b   :  { %v8133_v37 = vand.u32 4294901760, %v7432_v39  ;;  %12713 = vmatpush3.bf16.msra.mxu0 %v16468_v14  ;;  %v11559_v40 = vpop.f32.mrb[94].mxu1 }
 0x72c   :  { %v8242_v4 = vsub.f32 %v7433_v13, %v8136_v36  ;;  %v7435_v26 = vmul.f32 %v11559_v40, %v16327_v58  ;;  %12715 = vmatprep.subr.bf16.mxu0 %v16504_v32  ;;  %v7350_v1 = vpop.f32.mrb[95].mxu1 }
 0x72d   :  { %v16573_v38 = vpack.c.bf16 %v8136_v36, %v8133_v37  ;;  %v8235_v55 = vsub.f32 %v7432_v39, %v8133_v37  ;;  %v7434_v46 = vmul.f32 %v7350_v1, %v16332_v23 }
 0x72e   :  { %v8243_v48 = vand.u32 4294901760, %v8242_v4  ;;  %v8142_v52 = vand.u32 4294901760, %v7435_v26 }
 0x72f   :  { %v8236_v14 = vand.u32 4294901760, %v8235_v55  ;;  %v8139_v49 = vand.u32 4294901760, %v7434_v46  ;;  %12717 = vmatpush3.bf16.msra.mxu0 %v16504_v32  ;;  %v11562_v58 = vpop.f32.mrb[96].mxu1  ;;  %12863 = vmatprep.subr.bf16.mxu1 %v16573_v38  ;;  %v16583_v24 = vpack.c.bf16 %v8242_v4, %v8235_v55 }
 0x730   :  { %v8256_v25 = vsub.f32 %v7435_v26, %v8142_v52  ;;  %v7437_v42 = vmul.f32 %v11562_v58, %v16343_v12  ;;  %12719 = vmatprep.subr.bf16.mxu0 %v16514_v56  ;;  %v7362_v23 = vpop.f32.mrb[97].mxu1  ;;  %12865 = vmatpush3.bf16.msra.mxu1 %v16573_v38  ;;  %v8244_v17 = vsub.f32 %v8242_v4, %v8243_v48 }
 0x731   :  { %v16588_v59 = vpack.c.bf16 %v8142_v52, %v8139_v49  ;;  %v8249_v13 = vsub.f32 %v7434_v46, %v8139_v49  ;;  %v7436_v27 = vmul.f32 %v7362_v23, %v16354_v7  ;;  %v8237_v32 = vsub.f32 %v8235_v55, %v8236_v14 }
 0x732   :  { %v8257_v39 = vand.u32 4294901760, %v8256_v25  ;;  %v8148_v36 = vand.u32 4294901760, %v7437_v42  ;;  %v8245_v37 = vand.u32 4294901760, %v8244_v17  ;;  %v16591_v40 = vpack.c.bf16 %v8243_v48, %v8236_v14 }
 0x733   :  { %v8250_v26 = vand.u32 4294901760, %v8249_v13  ;;  %v8145_v1 = vand.u32 4294901760, %v7436_v27  ;;  %12721 = vmatpush3.bf16.msra.mxu0 %v16514_v56  ;;  %v11565_v12 = vpop.f32.mrb[98].mxu1  ;;  %12867 = vmatprep.subr.bf16.mxu1 %v16588_v59  ;;  %v8238_v58 = vand.u32 4294901760, %v8237_v32  ;;  %v16595_v4 = vpack.c.bf16 %v8256_v25, %v8249_v13 }
 0x734   :  { %18391 = vst [vmem:[#allocation35_spill] sm:$0xff] %v16591_v40  ;;  %v16597_v52 = vsub.f32 %v7437_v42, %v8148_v36  ;;  %v7439_v7 = vmul.f32 %v11565_v12, %v16366_v41  ;;  %12723 = vmatprep.subr.bf16.mxu0 %v16530_v61  ;;  %v7374_v55 = vpop.f32.mrb[99].mxu1  ;;  %12869 = vmatpush3.bf16.msra.mxu1 %v16588_v59 }
 0x735   :  { %v8258_v46 = vsub.f32 %v8256_v25, %v8257_v39  ;;  %v16602_v48 = vpack.c.bf16 %v8148_v36, %v8145_v1  ;;  %v8263_v14 = vsub.f32 %v7436_v27, %v8145_v1  ;;  %v7438_v56 = vmul.f32 %v7374_v55, %v16375_v53 }
 0x736   :  { %v16605_v49 = vpack.c.bf16 %v8245_v37, %v8238_v58  ;;  %v8271_v23 = vand.u32 4294901760, %v16597_v52  ;;  %v8154_v17 = vand.u32 4294901760, %v7439_v7  ;;  %v8251_v42 = vsub.f32 %v8249_v13, %v8250_v26 }
 0x737   :  { %v8259_v32 = vand.u32 4294901760, %v8258_v46  ;;  %v8264_v5 = vand.u32 4294901760, %v8263_v14  ;;  %v8151_v41 = vand.u32 4294901760, %v7438_v56  ;;  %12725 = vmatpush3.bf16.msra.mxu0 %v16530_v61  ;;  %v11568_v12 = vpop.f32.mrb[100].mxu1  ;;  %12871 = vmatprep.subr.bf16.mxu1 %v16602_v48  ;;  %v16611_v25 = vpack.c.bf16 %v16597_v52, %v8263_v14 }
 0x738   :  { %v16613_v27 = vpack.c.bf16 %v8257_v39, %v8250_v26  ;;  %v16615_v53 = vsub.f32 %v7439_v7, %v8154_v17  ;;  %v7441_v36 = vmul.f32 %v11568_v12, %v16394_v43  ;;  %12727 = vmatprep.subr.bf16.mxu0 %v16551_v33  ;;  %v7386_v13 = vpop.f32.mrb[101].mxu1  ;;  %12873 = vmatpush3.bf16.msra.mxu1 %v16602_v48  ;;  %v8252_v37 = vand.u32 4294901760, %v8251_v42 }
 0x739   :  { %v8272_v61 = vsub.f32 %v16597_v52, %v8271_v23  ;;  %v16621_v1 = vpack.c.bf16 %v8154_v17, %v8151_v41  ;;  %v16623_v58 = vsub.f32 %v7438_v56, %v8151_v41  ;;  %v7440_v55 = vmul.f32 %v7386_v13, %v16405_v0 }
 0x73a   :  { %18392 = vst [vmem:[#allocation28_spill] sm:$0xff] %v16613_v27  ;;  %v8265_v39 = vsub.f32 %v8263_v14, %v8264_v5  ;;  %v17955_v26 = vand.u32 4294901760, %v16615_v53  ;;  %v8160_v7 = vand.u32 4294901760, %v7441_v36  ;;  %v16627_v46 = vpack.c.bf16 %v8259_v32, %v8252_v37 }
 0x73b   :  { %v8273_v43 = vand.u32 4294901760, %v8272_v61  ;;  %v17956_v12 = vand.u32 4294901760, %v16623_v58  ;;  %v8157_v27 = vand.u32 4294901760, %v7440_v55  ;;  %12729 = vmatpush3.bf16.msra.mxu0 %v16551_v33  ;;  %v11571_v42 = vpop.f32.mrb[102].mxu1  ;;  %12875 = vmatprep.subr.bf16.mxu1 %v16621_v1  ;;  %v16634_v56 = vpack.c.bf16 %v16615_v53, %v16623_v58 }
 0x73c   :  { %v8266_v52 = vand.u32 4294901760, %v8265_v39  ;;  %v16636_v0 = vsub.f32 %v7441_v36, %v8160_v7  ;;  %v7443_v14 = vmul.f32 %v11571_v42, %v16432_v30  ;;  %12731 = vmatprep.subr.bf16.mxu0 %v16560_v62  ;;  %v7398_v17 = vpop.f32.mrb[103].mxu1  ;;  %12877 = vmatpush3.bf16.msra.mxu1 %v16621_v1  ;;  %v8286_v33 = vsub.f32 %v16615_v53, %v17955_v26 }
 0x73d   :  { %v16644_v32 = vpack.c.bf16 %v8160_v7, %v8157_v27  ;;  %v16646_v41 = vsub.f32 %v7440_v55, %v8157_v27  ;;  %v7442_v13 = vmul.f32 %v7398_v17, %v16441_v2  ;;  %v8279_v61 = vsub.f32 %v16623_v58, %v17956_v12 }
 0x73e   :  { %v16649_v37 = vpack.c.bf16 %v8273_v43, %v8266_v52  ;;  %v8299_v36 = vand.u32 4294901760, %v16636_v0  ;;  %v8166_v30 = vand.u32 4294901760, %v7443_v14  ;;  %v8287_v39 = vand.u32 4294901760, %v8286_v33 }
 0x73f   :  { %18393 = vst [vmem:[#allocation46_spill] sm:$0xff] %v16644_v32  ;;  %v8292_v42 = vand.u32 4294901760, %v16646_v41  ;;  %v8163_v40 = vand.u32 4294901760, %v7442_v13  ;;  %12733 = vmatpush3.bf16.msra.mxu0 %v16560_v62  ;;  %v11574_v7 = vpop.f32.mrb[104].mxu1  ;;  %12879 = vmatprep.subr.bf16.mxu1 %v16644_v32  ;;  %v16660_v2 = vpack.c.bf16 %v16636_v0, %v16646_v41  ;;  %v16662_v27 = vpack.c.bf16 %v8271_v23, %v8264_v5 }
 0x740   :  { %v8312_v55 = vsub.f32 %v7443_v14, %v8166_v30  ;;  %v7445_v43 = vmul.f32 %v11574_v7, %v16466_v60  ;;  %12735 = vmatprep.subr.bf16.mxu0 %v16346_v44  ;;  %v7410_v52 = vpop.f32.mrb[105].mxu1  ;;  %12881 = vmatpush3.bf16.msra.mxu1 %v16644_v32  ;;  %v8280_v17 = vand.u32 4294901760, %v8279_v61  ;;  %v8300_v62 = vsub.f32 %v16636_v0, %v8299_v36 }
 0x741   :  { %18394 = vst [vmem:[#allocation19_spill] sm:$0xff] %v16662_v27  ;;  %v16668_v33 = vpack.c.bf16 %v8166_v30, %v8163_v40  ;;  %v8305_v26 = vsub.f32 %v7442_v13, %v8163_v40  ;;  %v7444_v12 = vmul.f32 %v7410_v52, %v16474_v50  ;;  %v8293_v9 = vsub.f32 %v16646_v41, %v8292_v42 }
 0x742   :  { %v8313_v5 = vand.u32 4294901760, %v8312_v55  ;;  %v8172_v23 = vand.u32 4294901760, %v7445_v43  ;;  %11646 = vmatmul.mubr.f32.vlgmr.msra.gmra.mrb[96].mxu0 %v16334_v29  ;;  %v16673_v60 = vpack.c.bf16 %v8287_v39, %v8280_v17  ;;  %v8301_v14 = vand.u32 4294901760, %v8300_v62 }
 0x743   :  { %18395 = vst [vmem:[#allocation8_spill] sm:$0xff] %v16668_v33  ;;  %v8306_v7 = vand.u32 4294901760, %v8305_v26  ;;  %v8169_v27 = vand.u32 4294901760, %v7444_v12  ;;  %12737 = vmatpush3.bf16.msra.mxu0 %v16346_v44  ;;  %11680 = vmatprep.mubr.f32.mxu0 %v16236_v11  ;;  %v11577_v0 = vpop.f32.mrb[106].mxu1  ;;  %v8294_v30 = vand.u32 4294901760, %v8293_v9  ;;  %v16677_v40 = vpack.c.bf16 %v8312_v55, %v8305_v26 }
 0x744   :  { %v8326_v50 = vsub.f32 %v7445_v43, %v8172_v23  ;;  %v7447_v41 = vmul.f32 %v11577_v0, %v16495_v28  ;;  %12739 = vmatprep.subr.bf16.mxu0 %v16369_v31  ;;  %12883 = vmatprep.subr.bf16.mxu1 %v16668_v33  ;;  %v7422_v13 = vpop.f32.mrb[107].mxu1  ;;  %v8314_v61 = vsub.f32 %v8312_v55, %v8313_v5  ;;  %v18396_v55 = vand.u32 4294901760, %v16623_v58 }
 0x745   :  { %v16682_v39 = vpack.c.bf16 %v8172_v23, %v8169_v27  ;;  %v8319_v52 = vsub.f32 %v7444_v12, %v8169_v27  ;;  %v7446_v44 = vmul.f32 %v7422_v13, %v16502_v10  ;;  %12885 = vmatpush3.bf16.msra.mxu1 %v16668_v33  ;;  %v12910_v17 = vpack.c.bf16 %v8301_v14, %v8294_v30 }
 0x746   :  { %v8327_v9 = vand.u32 4294901760, %v8326_v50  ;;  %v8178_v62 = vand.u32 4294901760, %v7447_v41  ;;  %v8307_v29 = vsub.f32 %v8305_v26, %v8306_v7  ;;  %v8315_v43 = vand.u32 4294901760, %v8314_v61 }
 0x747   :  { %v8320_v32 = vand.u32 4294901760, %v8319_v52  ;;  %v8175_v28 = vand.u32 4294901760, %v7446_v44  ;;  %12741 = vmatpush3.bf16.msra.mxu0 %v16369_v31  ;;  %12887 = vmatprep.subr.bf16.mxu1 %v16682_v39  ;;  %v16688_v0 = vpack.c.bf16 %v8326_v50, %v8319_v52  ;;  %v18397_v12 = vand.u32 4294901760, %v16615_v53 }
 0x748   :  { %v8340_v27 = vsub.f32 %v7447_v41, %v8178_v62  ;;  %12743 = vmatprep.subr.bf16.mxu0 %v16422_v35  ;;  %v8308_v23 = vand.u32 4294901760, %v8307_v29  ;;  %v8328_v26 = vsub.f32 %v8326_v50, %v8327_v9  ;;  %v16697_v14 = vpack.c.bf16 %v8299_v36, %v8292_v42 }
 0x749   :  { %v16694_v10 = vpack.c.bf16 %v18397_v12, %v18396_v55  ;;  %v16699_v30 = vpack.c.bf16 %v8178_v62, %v8175_v28  ;;  %v8333_v31 = vsub.f32 %v7446_v44, %v8175_v28  ;;  %12889 = vmatpush3.bf16.msra.mxu1 %v16682_v39  ;;  %v8321_v13 = vsub.f32 %v8319_v52, %v8320_v32 }
 0x74a   :  { %v16702_v61 = vpack.c.bf16 %v8313_v5, %v8306_v7  ;;  %v8341_v58 = vand.u32 4294901760, %v8340_v27  ;;  %v12914_v33 = vpack.c.bf16 %v8315_v43, %v8308_v23  ;;  %v8329_v53 = vand.u32 4294901760, %v8328_v26  ;;  %v16775_v43 = vld [vmem:[%s17683_s3 + $0x68] sm:$0xff]  ;;  %v16798_v26 = vld [vmem:[%s17683_s3 + $0xb8] sm:$0xff] }
 0x74b   :  { %v16704_v55 = vpack.c.bf16 %v8327_v9, %v8320_v32  ;;  %v8334_v41 = vand.u32 4294901760, %v8333_v31  ;;  %12745 = vmatpush3.bf16.msra.mxu0 %v16422_v35  ;;  %12891 = vmatprep.subr.bf16.mxu1 %v16699_v30  ;;  %v8322_v29 = vand.u32 4294901760, %v8321_v13  ;;  %v16708_v36 = vpack.c.bf16 %v8340_v27, %v8333_v31  ;;  %v16769_v9 = vld [vmem:[%s17683_s3 + $0x38] sm:$0xff]  ;;  %v16793_v23 = vld [vmem:[%s17683_s3 + $0x88] sm:$0xff] }
 0x74c   :  { %12747 = vmatprep.subr.bf16.mxu0 %v16456_v16  ;;  %v8342_v42 = vsub.f32 %v8340_v27, %v8341_v58  ;;  %v8227_v32 = vand.u32 4294901760, %v16579_v54  ;;  %v18401_v54 = vld [vmem:[#allocation56_spill] sm:$0xff]  ;;  %v17965_v28 = vand.u32 4294901760, %v16769_v9  ;;  %v17966_v12 = vand.u32 4294901760, %v16775_v43  ;;  %v16788_v27 = vld [vmem:[%s17683_s3 + $0x60] sm:$0xff] }
 0x74d   :  { %12893 = vmatpush3.bf16.msra.mxu1 %v16699_v30  ;;  %v12918_v5 = vpack.c.bf16 %v8329_v53, %v8322_v29  ;;  %v8335_v7 = vsub.f32 %v8333_v31, %v8334_v41  ;;  %v16712_v50 = vpack.c.bf16 %v8341_v58, %v8334_v41  ;;  %v16820_v41 = vld [vmem:[%s17683_s3 + $0xe0] sm:$0xff]  ;;  %v16825_v29 = vld [vmem:[%s17683_s3 + $0xb0] sm:$0xff] }
 0x74e   :  { %12895 = vmatprep.subr.bf16.mxu1 %v16605_v49  ;;  %v8343_v52 = vand.u32 4294901760, %v8342_v42  ;;  %v16830_v42 = vld [vmem:[%s17683_s3 + $0xd8] sm:$0xff] }
 0x74f   :  { %12749 = vmatpush3.bf16.msra.mxu0 %v16456_v16  ;;  %v8336_v35 = vand.u32 4294901760, %v8335_v7  ;;  %v18399_v16 = vld [vmem:[#allocation47_spill] sm:$0xff]  ;;  %v16836_v7 = vsub.f32 %v16769_v9, %v17965_v28  ;;  %v17974_v28 = vand.u32 4294901760, %v16798_v26 }
 0x750   :  { %12751 = vmatprep.subr.bf16.mxu0 %v16487_v3  ;;  %11821 = vmatmul.mubr.f32.vlgmr.msra.gmra.mrb[108].mxu1 %v8227_v32  ;;  %v16841_v32 = vsub.f32 %v16775_v43, %v17966_v12 }
 0x751   :  { %12897 = vmatpush3.bf16.msra.mxu1 %v16605_v49  ;;  %11855 = vmatprep.mubr.f32.mxu1 %v16275_v18  ;;  %v12922_v44 = vpack.c.bf16 %v8343_v52, %v8336_v35  ;;  %v16750_v49 = vld [vmem:[%s17683_s3 + $0x18] sm:$0xff]  ;;  %18410 = vst [vmem:[#allocation31_spill] sm:$0xff] %v16836_v7  ;;  %v16846_v52 = vld [vmem:[%s17683_s3 + $0x108] sm:$0xff] }
 0x752   :  { %12899 = vmatprep.subr.bf16.mxu1 %v16627_v46  ;;  %18411 = vst [vmem:[#allocation20_spill] sm:$0xff] %v16841_v32  ;;  %v16922_v32 = vld [vmem:[%s17683_s3 + $0x178] sm:$0xff] }
 0x753   :  { %12753 = vmatpush3.bf16.msra.mxu0 %v16487_v3  ;;  %v18398_v3 = vld [vmem:[#allocation39_spill] sm:$0xff] }
 0x754   :  { %12755 = vmatprep.subr.bf16.mxu0 %v16517_v6 }
 0x755   :  { %12901 = vmatpush3.bf16.msra.mxu1 %v16627_v46  ;;  %v16755_v46 = vld [vmem:[%s17683_s3 + $0x40] sm:$0xff] }
 0x756   :  { %12903 = vmatprep.subr.bf16.mxu1 %v16649_v37 }
 0x757   :  { %12757 = vmatpush3.bf16.msra.mxu0 %v16517_v6  ;;  %v18400_v6 = vand.u32 4294901760, %v16236_v11  ;;  %v18404_v11 = vld [vmem:[#allocation29_spill] sm:$0xff] }
 0x758   :  { %12759 = vmatprep.subr.bf16.mxu0 %v16520_v51 }
 0x759   :  { %12905 = vmatpush3.bf16.msra.mxu1 %v16649_v37  ;;  %v16760_v37 = vld [vmem:[%s17683_s3 + $0x10] sm:$0xff] }
 0x75a   :  { %12907 = vmatprep.subr.bf16.mxu1 %v16673_v60  ;;  %v17967_v62 = vand.u32 4294901760, %v16760_v37 }
 0x75b   :  { %12761 = vmatpush3.bf16.msra.mxu0 %v16520_v51  ;;  %v18402_v51 = vld [vmem:[#allocation52_spill] sm:$0xff] }
 0x75c   :  { %12763 = vmatprep.subr.bf16.mxu0 %v16539_v63  ;;  %v16814_v58 = vsub.f32 %v16760_v37, %v17967_v62  ;;  %v16885_v62 = vsub.f32 %v16798_v26, %v17974_v28  ;;  %v18416_v28 = vand.u32 4294901760, %v16820_v41 }
 0x75d   :  { %12909 = vmatpush3.bf16.msra.mxu1 %v16673_v60  ;;  %v17970_v60 = vand.u32 4294901760, %v16750_v49 }
 0x75e   :  { %12911 = vmatprep.subr.bf16.mxu1 %v12910_v17  ;;  %18408 = vst [vmem:[#allocation7_spill] sm:$0xff] %v16814_v58  ;;  %18415 = vst [vmem:[#allocation54_spill] sm:$0xff] %v16885_v62  ;;  %v16907_v12 = vsub.f32 %v16820_v41, %v18416_v28  ;;  %v18418_v62 = vand.u32 4294901760, %v16825_v29  ;;  %v18420_v28 = vand.u32 4294901760, %v16830_v42 }
 0x75f   :  { %12765 = vmatpush3.bf16.msra.mxu0 %v16539_v63  ;;  %v18403_v63 = vld [vmem:[#allocation15_spill] sm:$0xff]  ;;  %v16804_v31 = vsub.f32 %v16750_v49, %v17970_v60 }
 0x760   :  { %12767 = vmatprep.subr.bf16.mxu0 %v18398_v3  ;;  %18417 = vst [vmem:[#allocation43_spill] sm:$0xff] %v16907_v12  ;;  %v16928_v12 = vsub.f32 %v16830_v42, %v18420_v28 }
 0x761   :  { %12913 = vmatpush3.bf16.msra.mxu1 %v12910_v17  ;;  %v17968_v17 = vand.u32 4294901760, %v16755_v46  ;;  %18406 = vst [vmem:[#allocation6_spill] sm:$0xff] %v16804_v31 }
 0x762   :  { %11681 = vmatmul.mubr.f32.vlgmr.msra.gmra.mrb[96].mxu0 %v18399_v16  ;;  %12915 = vmatprep.subr.bf16.mxu1 %v12914_v33  ;;  %18421 = vst [vmem:[#allocation23_spill] sm:$0xff] %v16928_v12 }
 0x763   :  { %12769 = vmatpush3.bf16.msra.mxu0 %v18398_v3  ;;  %11715 = vmatprep.mubr.f32.mxu0 %v18400_v6  ;;  %v16809_v13 = vsub.f32 %v16755_v46, %v17968_v17  ;;  %v17973_v6 = vand.u32 4294901760, %v16793_v23 }
 0x764   :  { %12771 = vmatprep.subr.bf16.mxu0 %v18401_v54 }
 0x765   :  { %12917 = vmatpush3.bf16.msra.mxu1 %v12914_v33  ;;  %v18405_v33 = vld [vmem:[#allocation27_spill] sm:$0xff]  ;;  %18407 = vst [vmem:[#allocation9_spill] sm:$0xff] %v16809_v13  ;;  %v16880_v17 = vsub.f32 %v16793_v23, %v17973_v6  ;;  %v16901_v6 = vld [vmem:[%s17683_s3 + $0x180] sm:$0xff] }
 0x766   :  { %12919 = vmatprep.subr.bf16.mxu1 %v12918_v5 }
 0x767   :  { %12773 = vmatpush3.bf16.msra.mxu0 %v18401_v54  ;;  %18414 = vst [vmem:[#allocation37_spill] sm:$0xff] %v16880_v17  ;;  %v16912_v17 = vsub.f32 %v16825_v29, %v18418_v62 }
 0x768   :  { %12775 = vmatprep.subr.bf16.mxu0 %v18402_v51 }
 0x769   :  { %12921 = vmatpush3.bf16.msra.mxu1 %v12918_v5  ;;  %v18409_v5 = vld [vmem:[#allocation57_spill] sm:$0xff]  ;;  %18419 = vst [vmem:[#allocation49_spill] sm:$0xff] %v16912_v17  ;;  %v18422_v17 = vand.u32 4294901760, %v16846_v52 }
 0x76a   :  { %12923 = vmatprep.subr.bf16.mxu1 %v12922_v44 }
 0x76b   :  { %12777 = vmatpush3.bf16.msra.mxu0 %v18402_v51  ;;  %v16934_v7 = vsub.f32 %v16846_v52, %v18422_v17 }
 0x76c   :  { %12779 = vmatprep.subr.bf16.mxu0 %v18403_v63 }
 0x76d   :  { %12925 = vmatpush3.bf16.msra.mxu1 %v12922_v44  ;;  %v17972_v44 = vand.u32 4294901760, %v16788_v27  ;;  %18423 = vst [vmem:[#allocation24_spill] sm:$0xff] %v16934_v7 }
 0x76e   :  { %12927 = vmatprep.subr.bf16.mxu1 %v16583_v24 }
 0x76f   :  { %12781 = vmatpush3.bf16.msra.mxu0 %v18403_v63  ;;  %v16875_v60 = vsub.f32 %v16788_v27, %v17972_v44  ;;  %v16896_v44 = vld [vmem:[%s17683_s3 + $0x158] sm:$0xff] }
 0x770   :  { %12783 = vmatprep.subr.bf16.mxu0 %v18404_v11  ;;  %11856 = vmatmul.mubr.f32.vlgmr.msra.gmra.mrb[108].mxu1 %v16555_v21  ;;  %v18427_v12 = vand.u32 4294901760, %v16896_v44 }
 0x771   :  { %12929 = vmatpush3.bf16.msra.mxu1 %v16583_v24  ;;  %11890 = vmatprep.mubr.f32.mxu1 %v18405_v33  ;;  %v16780_v24 = vld [vmem:[%s17683_s3 + $0x90] sm:$0xff]  ;;  %18413 = vst [vmem:[#allocation50_spill] sm:$0xff] %v16875_v60 }
 0x772   :  { %12931 = vmatprep.subr.bf16.mxu1 %v16595_v4  ;;  %v17969_v53 = vand.u32 4294901760, %v16780_v24  ;;  %v16917_v60 = vld [vmem:[%s17683_s3 + $0x150] sm:$0xff] }
 0x773   :  { %12785 = vmatpush3.bf16.msra.mxu0 %v18404_v11  ;;  %v18429_v13 = vand.u32 4294901760, %v16917_v60 }
 0x774   :  { %12787 = vmatprep.subr.bf16.mxu0 %v18409_v5  ;;  %v16852_v35 = vsub.f32 %v16780_v24, %v17969_v53  ;;  %v16869_v53 = vld [vmem:[%s17683_s3 + $0x100] sm:$0xff] }
 0x775   :  { %12933 = vmatpush3.bf16.msra.mxu1 %v16595_v4  ;;  %v16864_v4 = vld [vmem:[%s17683_s3 + $0x130] sm:$0xff]  ;;  %v17988_v58 = vand.u32 4294901760, %v16869_v53 }
 0x776   :  { %18412 = vst [vmem:[#allocation33_spill] sm:$0xff] %v16852_v35  ;;  %12935 = vmatprep.subr.bf16.mxu1 %v16611_v25  ;;  %v16891_v35 = vld [vmem:[%s17683_s3 + $0x128] sm:$0xff]  ;;  %v17987_v62 = vand.u32 4294901760, %v16864_v4 }
 0x777   :  { %12789 = vmatpush3.bf16.msra.mxu0 %v18409_v5  ;;  %v16950_v17 = vsub.f32 %v16869_v53, %v17988_v58  ;;  %v18425_v31 = vand.u32 4294901760, %v16891_v35  ;;  %v18428_v58 = vand.u32 4294901760, %v16901_v6 }
 0x778   :  { %12791 = vmatprep.subr.bf16.mxu0 %v16511_v8  ;;  %v16945_v28 = vsub.f32 %v16864_v4, %v17987_v62  ;;  %v16963_v62 = vsub.f32 %v16896_v44, %v18427_v12  ;;  %v18432_v12 = vand.u32 4294901760, %v18399_v16  ;;  %v18445_v16 = vand.u32 4294901760, %v16760_v37 }
 0x779   :  { %12937 = vmatpush3.bf16.msra.mxu1 %v16611_v25  ;;  %18424 = vst [vmem:[#allocation26_spill] sm:$0xff] %v16950_v17  ;;  %v16958_v25 = vsub.f32 %v16891_v35, %v18425_v31  ;;  %v16969_v7 = vsub.f32 %v16901_v6, %v18428_v58  ;;  %v16974_v17 = vsub.f32 %v16917_v60, %v18429_v13  ;;  %v18430_v31 = vand.u32 4294901760, %v16922_v32  ;;  %v18433_v13 = vld [vmem:[#allocation16_spill] sm:$0xff] }
 0x77a   :  { %12939 = vmatprep.subr.bf16.mxu1 %v16634_v56  ;;  %v18455_v37 = vand.u32 4294901760, %v16798_v26  ;;  %v18465_v58 = vand.u32 4294901760, %v16891_v35 }
 0x77b   :  { %12793 = vmatpush3.bf16.msra.mxu0 %v16511_v8  ;;  %18426 = vst [vmem:[#allocation21_spill] sm:$0xff] %v16958_v25  ;;  %v16979_v25 = vsub.f32 %v16922_v32, %v18430_v31 }
 0x77c   :  { %12795 = vmatprep.subr.bf16.mxu0 %v16522_v45 }
 0x77d   :  { %12941 = vmatpush3.bf16.msra.mxu1 %v16634_v56  ;;  %v18431_v56 = vld [vmem:[#allocation30_spill] sm:$0xff] }
 0x77e   :  { %12943 = vmatprep.subr.bf16.mxu1 %v16660_v2 }
 0x77f   :  { %12797 = vmatpush3.bf16.msra.mxu0 %v16522_v45 }
 0x780   :  { %12799 = vmatprep.subr.bf16.mxu0 %v18431_v56 }
 0x781   :  { %12945 = vmatpush3.bf16.msra.mxu1 %v16660_v2  ;;  %v18434_v2 = vand.u32 4294901760, %v18405_v33 }
 0x782   :  { %11716 = vmatmul.mubr.f32.vlgmr.msra.gmra.mrb[96].mxu0 %v18432_v12  ;;  %12947 = vmatprep.subr.bf16.mxu1 %v16677_v40 }
 0x783   :  { %12801 = vmatpush3.bf16.msra.mxu0 %v18431_v56  ;;  %11750 = vmatprep.mubr.f32.mxu0 %v16228_v47 }
 0x784   :  { %12803 = vmatprep.subr.bf16.mxu0 %v18433_v13 }
 0x785   :  { %12949 = vmatpush3.bf16.msra.mxu1 %v16677_v40  ;;  %v18441_v40 = vld [vmem:[#allocation28_spill] sm:$0xff] }
 0x786   :  { %12951 = vmatprep.subr.bf16.mxu1 %v16688_v0 }
 0x787   :  { %12805 = vmatpush3.bf16.msra.mxu0 %v18433_v13 }
 0x788   :  { %12807 = vmatprep.subr.bf16.mxu0 %v16528_v22 }
 0x789   :  { %12953 = vmatpush3.bf16.msra.mxu1 %v16688_v0  ;;  %v18442_v0 = vld [vmem:[#allocation19_spill] sm:$0xff] }
 0x78a   :  { %12955 = vmatprep.subr.bf16.mxu1 %v16708_v36 }
 0x78b   :  { %12809 = vmatpush3.bf16.msra.mxu0 %v16528_v22  ;;  %v18435_v22 = vld [vmem:[#allocation58_spill] sm:$0xff] }
 0x78c   :  { %12811 = vmatprep.subr.bf16.mxu0 %v16536_v34 }
 0x78d   :  { %12957 = vmatpush3.bf16.msra.mxu1 %v16708_v36  ;;  %v18444_v36 = vand.u32 4294901760, %v16755_v46  ;;  %v18454_v46 = vmov 0.0  }
 0x78e   :  { %12959 = vmatprep.subr.bf16.mxu1 %v16573_v38 }
 0x78f   :  { %12813 = vmatpush3.bf16.msra.mxu0 %v16536_v34  ;;  %v18436_v34 = vld [vmem:[#allocation46_spill] sm:$0xff] }
 0x790   :  { %12815 = vmatprep.subr.bf16.mxu0 %v16541_v19  ;;  %11891 = vmatmul.mubr.f32.vlgmr.msra.gmra.mrb[108].mxu1 %v16563_v57 }
 0x791   :  { %12961 = vmatpush3.bf16.msra.mxu1 %v16573_v38  ;;  %11925 = vmatprep.mubr.f32.mxu1 %v18434_v2  ;;  %v2943_v2 = vld [vmem:[%s17683_s3 + $0x248] sm:$0xff] }
 0x792   :  { %12963 = vmatprep.subr.bf16.mxu1 %v16588_v59 }
 0x793   :  { %12817 = vmatpush3.bf16.msra.mxu0 %v16541_v19  ;;  %v18437_v19 = vld [vmem:[#allocation34_spill] sm:$0xff] }
 0x794   :  { %12819 = vmatprep.subr.bf16.mxu0 %v16545_v15 }
 0x795   :  { %12965 = vmatpush3.bf16.msra.mxu1 %v16588_v59 }
 0x796   :  { %12967 = vmatprep.subr.bf16.mxu1 %v16602_v48 }
 0x797   :  { %12821 = vmatpush3.bf16.msra.mxu0 %v16545_v15  ;;  %v18438_v15 = vld [vmem:[#allocation8_spill] sm:$0xff] }
 0x798   :  { %12823 = vmatprep.subr.bf16.mxu0 %v16547_v20 }
 0x799   :  { %12969 = vmatpush3.bf16.msra.mxu1 %v16602_v48 }
 0x79a   :  { %12971 = vmatprep.subr.bf16.mxu1 %v16621_v1 }
 0x79b   :  { %12825 = vmatpush3.bf16.msra.mxu0 %v16547_v20  ;;  %v18440_v20 = vand.u32 4294901760, %v16563_v57  ;;  %v18443_v57 = vand.u32 4294901760, %v16750_v49 }
 0x79c   :  { %12827 = vmatprep.subr.bf16.mxu0 %v18435_v22 }
 0x79d   :  { %12973 = vmatpush3.bf16.msra.mxu1 %v16621_v1 }
 0x79e   :  { %12975 = vmatprep.subr.bf16.mxu1 %v18436_v34 }
 0x79f   :  { %12829 = vmatpush3.bf16.msra.mxu0 %v18435_v22  ;;  %v2945_v22 = vld [vmem:[%s17683_s3 + $0x270] sm:$0xff] }
 0x7a0   :  { %12831 = vmatprep.subr.bf16.mxu0 %v18398_v3 }
 0x7a1   :  { %12977 = vmatpush3.bf16.msra.mxu1 %v18436_v34 }
 0x7a2   :  { %11751 = vmatmul.mubr.f32.vlgmr.msra.gmra.mrb[96].mxu0 %v18437_v19  ;;  %12979 = vmatprep.subr.bf16.mxu1 %v18438_v15 }
 0x7a3   :  { %12833 = vmatpush3.bf16.msra.mxu0 %v18398_v3  ;;  %11785 = vmatprep.mubr.f32.mxu0 %v16228_v47  ;;  %v18439_v47 = vld [vmem:[#allocation35_spill] sm:$0xff]  ;;  %v17059_v3 = vpack.c.bf16 %v18444_v36, %v18443_v57 }
 0x7a4   :  { %12835 = vmatprep.subr.bf16.mxu0 %v18401_v54 }
 0x7a5   :  { %12981 = vmatpush3.bf16.msra.mxu1 %v18438_v15 }
 0x7a6   :  { %12983 = vmatprep.subr.bf16.mxu1 %v16682_v39 }
 0x7a7   :  { %12837 = vmatpush3.bf16.msra.mxu0 %v18401_v54  ;;  %v18446_v54 = vand.u32 4294901760, %v16769_v9  ;;  %v18458_v9 = vand.u32 4294901760, %v16825_v29  ;;  %v18467_v29 = vand.u32 4294901760, %v16896_v44  ;;  %v2941_v44 = vld [vmem:[%s17683_s3 + $0x220] sm:$0xff] }
 0x7a8   :  { %12839 = vmatprep.subr.bf16.mxu0 %v18402_v51  ;;  %v8868_v56 = vand.u32 4294901760, %v2941_v44 }
 0x7a9   :  { %12985 = vmatpush3.bf16.msra.mxu1 %v16682_v39 }
 0x7aa   :  { %12987 = vmatprep.subr.bf16.mxu1 %v16699_v30  ;;  %v17209_v57 = vsub.f32 %v2941_v44, %v8868_v56 }
 0x7ab   :  { %12841 = vmatpush3.bf16.msra.mxu0 %v18402_v51  ;;  %v17068_v51 = vpack.c.bf16 %v18446_v54, %v18445_v16 }
 0x7ac   :  { %12843 = vmatprep.subr.bf16.mxu0 %v18403_v63 }
 0x7ad   :  { %12989 = vmatpush3.bf16.msra.mxu1 %v16699_v30  ;;  %18447 = vst [vmem:[#allocation11_spill] sm:$0xff] %v17068_v51 }
 0x7ae   :  { %12991 = vmatprep.subr.bf16.mxu1 %v18439_v47 }
 0x7af   :  { %12845 = vmatpush3.bf16.msra.mxu0 %v18403_v63  ;;  %v18449_v63 = vand.u32 4294901760, %v16780_v24 }
 0x7b0   :  { %12847 = vmatprep.subr.bf16.mxu0 %v18404_v11  ;;  %11926 = vmatmul.mubr.f32.vlgmr.msra.gmra.mrb[108].mxu1 %v18440_v20 }
 0x7b1   :  { %12993 = vmatpush3.bf16.msra.mxu1 %v18439_v47  ;;  %11960 = vmatprep.mubr.f32.mxu1 %v16275_v18 }
 0x7b2   :  { %12995 = vmatprep.subr.bf16.mxu1 %v18441_v40 }
 0x7b3   :  { %12849 = vmatpush3.bf16.msra.mxu0 %v18404_v11 }
 0x7b4   :  { %12851 = vmatprep.subr.bf16.mxu0 %v18409_v5 }
 0x7b5   :  { %12997 = vmatpush3.bf16.msra.mxu1 %v18441_v40  ;;  %v2944_v40 = vld [vmem:[%s17683_s3 + $0x268] sm:$0xff] }
 0x7b6   :  { %12999 = vmatprep.subr.bf16.mxu1 %v18442_v0 }
 0x7b7   :  { %12853 = vmatpush3.bf16.msra.mxu0 %v18409_v5 }
 0x7b8   :  { %12855 = vmatprep.subr.bf16.mxu0 %v16511_v8 }
 0x7b9   :  { %13001 = vmatpush3.bf16.msra.mxu1 %v18442_v0 }
 0x7ba   :  { %13003 = vmatprep.subr.bf16.mxu1 %v16694_v10 }
 0x7bb   :  { %12857 = vmatpush3.bf16.msra.mxu0 %v16511_v8  ;;  %v18448_v8 = vand.u32 4294901760, %v16775_v43  ;;  %v18459_v43 = vand.u32 4294901760, %v16830_v42  ;;  %v18468_v42 = vand.u32 4294901760, %v16901_v6 }
 0x7bc   :  { %12859 = vmatprep.subr.bf16.mxu0 %v16522_v45 }
 0x7bd   :  { %13005 = vmatpush3.bf16.msra.mxu1 %v16694_v10  ;;  %v17075_v11 = vpack.c.bf16 %v18449_v63, %v18448_v8  ;;  %v18452_v10 = vand.u32 4294901760, %v16793_v23  ;;  %v17102_v24 = vpack.c.bf16 %v18459_v43, %v18458_v9  ;;  %v18462_v23 = vand.u32 4294901760, %v16864_v4  ;;  %v2938_v4 = vld [vmem:[%s17683_s3 + $0x1f0] sm:$0xff]  ;;  %v18478_v9 = vld [vmem:[#allocation9_spill] sm:$0xff] }
 0x7be   :  { %13007 = vmatprep.subr.bf16.mxu1 %v16697_v14  ;;  %v17125_v5 = vpack.c.bf16 %v18468_v42, %v18467_v29  ;;  %v8866_v12 = vand.u32 4294901760, %v2938_v4  ;;  %v8872_v8 = vand.u32 4294901760, %v2943_v2  ;;  %v8876_v63 = vand.u32 4294901760, %v2945_v22 }
 0x7bf   :  { %12861 = vmatpush3.bf16.msra.mxu0 %v16522_v45  ;;  %18450 = vst [vmem:[#allocation38_spill] sm:$0xff] %v17075_v11  ;;  %v18451_v45 = vand.u32 4294901760, %v16788_v27  ;;  %18460 = vst [vmem:[#allocation36_spill] sm:$0xff] %v17102_v24  ;;  %v18461_v27 = vand.u32 4294901760, %v16846_v52  ;;  %v17996_v43 = vand.u32 4294901760, %v18478_v9 }
 0x7c0   :  { %13055 = vmatprep.subr.bf16.mxu0 %v17059_v3  ;;  %18469 = vst [vmem:[#allocation44_spill] sm:$0xff] %v17125_v5  ;;  %v17213_v16 = vsub.f32 %v2938_v4, %v8866_v12  ;;  %v17226_v29 = vsub.f32 %v2945_v22, %v8876_v63  ;;  %v18485_v4 = vld [vmem:[#allocation50_spill] sm:$0xff] }
 0x7c1   :  { %13009 = vmatpush3.bf16.msra.mxu1 %v16697_v14  ;;  %v17085_v49 = vpack.c.bf16 %v18452_v10, %v18451_v45  ;;  %v18456_v14 = vand.u32 4294901760, %v16820_v41  ;;  %v17109_v26 = vpack.c.bf16 %v18462_v23, %v18461_v27  ;;  %v8878_v10 = vand.u32 4294901760, %v2944_v40  ;;  %v18479_v27 = vld [vmem:[#allocation7_spill] sm:$0xff] }
 0x7c2   :  { %11786 = vmatmul.mubr.f32.vlgmr.msra.gmra.mrb[96].mxu0 %v18437_v19  ;;  %13011 = vmatprep.subr.bf16.mxu1 %v16702_v61  ;;  %v17995_v23 = vand.u32 4294901760, %v18479_v27 }
 0x7c3   :  { %13057 = vmatpush1.bf16.msra.mxu0 %v17068_v51  ;;  %18453 = vst [vmem:[#allocation17_spill] sm:$0xff] %v17085_v49  ;;  %8912 = vmatprep.mubr.f32.mxu0 %v18454_v46  ;;  %v17093_v33 = vpack.c.bf16 %v18456_v14, %v18455_v37  ;;  %18463 = vst [vmem:[#allocation22_spill] sm:$0xff] %v17109_v26  ;;  %v18477_v37 = vld [vmem:[#allocation6_spill] sm:$0xff] }
 0x7c4   :  { %13059 = vmatprep.subr.bf16.mxu0 %v17075_v11  ;;  %v17998_v14 = vand.u32 4294901760, %v18477_v37 }
 0x7c5   :  { %18457 = vst [vmem:[#allocation10_spill] sm:$0xff] %v17093_v33  ;;  %13013 = vmatpush3.bf16.msra.mxu1 %v16702_v61  ;;  %v18464_v61 = vand.u32 4294901760, %v16869_v53  ;;  %v18471_v53 = vmov %v18430_v31  ;;  %v2940_v31 = vld [vmem:[%s17683_s3 + $0x218] sm:$0xff] }
 0x7c6   :  { %13015 = vmatprep.subr.bf16.mxu1 %v16704_v55  ;;  %v8870_v13 = vand.u32 4294901760, %v2940_v31 }
 0x7c7   :  { %13061 = vmatpush1.bf16.msra.mxu0 %v17085_v49  ;;  %v17118_v41 = vpack.c.bf16 %v18465_v58, %v18464_v61  ;;  %v17222_v61 = vpack.c.bf16 %v8876_v63, %v8872_v8  ;;  %v17224_v58 = vsub.f32 %v2943_v2, %v8872_v8 }
 0x7c8   :  { %13063 = vmatprep.subr.bf16.mxu0 %v17093_v33  ;;  %v17211_v36 = vpack.c.bf16 %v8870_v13, %v8866_v12  ;;  %v17216_v54 = vsub.f32 %v2940_v31, %v8870_v13  ;;  %v17994_v31 = vand.u32 4294901760, %v18485_v4 }
 0x7c9   :  { %13017 = vmatpush3.bf16.msra.mxu1 %v16704_v55  ;;  %18466 = vst [vmem:[#allocation40_spill] sm:$0xff] %v17118_v41  ;;  %v18470_v55 = vand.u32 4294901760, %v16917_v60  ;;  %v2939_v60 = vld [vmem:[%s17683_s3 + $0x1f8] sm:$0xff]  ;;  %18480 = vst [vmem:[#allocation41_spill] sm:$0xff] %v17222_v61 }
 0x7ca   :  { %13019 = vmatprep.subr.bf16.mxu1 %v16712_v50  ;;  %v8864_v6 = vand.u32 4294901760, %v2939_v60  ;;  %18476 = vst [vmem:[#allocation14_spill] sm:$0xff] %v17211_v36  ;;  %v8990_v8 = vsub.f32 %v18485_v4, %v17994_v31  ;;  %v18489_v31 = vld [vmem:[#allocation49_spill] sm:$0xff] }
 0x7cb   :  { %13065 = vmatpush1.bf16.msra.mxu0 %v17102_v24  ;;  %v17134_v52 = vpack.c.bf16 %v18471_v53, %v18470_v55  ;;  %v17232_v53 = vsub.f32 %v2944_v40, %v8878_v10 }
 0x7cc   :  { %13067 = vmatprep.subr.bf16.mxu0 %v17109_v26  ;;  %v17202_v20 = vsub.f32 %v2939_v60, %v8864_v6  ;;  %v17207_v0 = vpack.c.bf16 %v8868_v56, %v8864_v6  ;;  %v18486_v56 = vld [vmem:[#allocation37_spill] sm:$0xff] }
 0x7cd   :  { %13021 = vmatpush3.bf16.msra.mxu1 %v16712_v50  ;;  %18472 = vst [vmem:[#allocation32_spill] sm:$0xff] %v17134_v52  ;;  %v17997_v12 = vand.u32 4294901760, %v18486_v56 }
 0x7ce   :  { %13023 = vmatprep.subr.bf16.mxu1 %v16573_v38  ;;  %18475 = vst [vmem:[#allocation5_spill] sm:$0xff] %v17207_v0  ;;  %v18038_v33 = vand.u32 4294901760, %v17202_v20 }
 0x7cf   :  { %13069 = vmatpush1.bf16.msra.mxu0 %v17118_v41  ;;  %v9002_v63 = vsub.f32 %v18486_v56, %v17997_v12 }
 0x7d0   :  { %11961 = vmatmul.mubr.f32.vlgmr.msra.gmra.mrb[108].mxu1 %v16555_v21  ;;  %13071 = vmatprep.subr.bf16.mxu0 %v17125_v5 }
 0x7d1   :  { %13025 = vmatpush3.bf16.msra.mxu1 %v16573_v38  ;;  %11995 = vmatprep.mubr.f32.mxu1 %v16275_v18  ;;  %v2935_v18 = vld [vmem:[%s17683_s3 + $0x1a8] sm:$0xff]  ;;  %v2937_v38 = vld [vmem:[%s17683_s3 + $0x1d0] sm:$0xff] }
 0x7d2   :  { %13027 = vmatprep.subr.bf16.mxu1 %v16588_v59 }
 0x7d3   :  { %13073 = vmatpush1.bf16.msra.mxu0 %v17134_v52 }
 0x7d5   :  { %13029 = vmatpush3.bf16.msra.mxu1 %v16588_v59  ;;  %v8856_v59 = vand.u32 4294901760, %v2935_v18 }
 0x7d6   :  { %13031 = vmatprep.subr.bf16.mxu1 %v16602_v48 }
 0x7d7   :  { %v17164_v50 = vsub.f32 %v2935_v18, %v8856_v59  ;;  %v8960_v18 = vsub.f32 %v18477_v37, %v17998_v14 }
 0x7d9   :  { %13033 = vmatpush3.bf16.msra.mxu1 %v16602_v48  ;;  %v8860_v48 = vand.u32 4294901760, %v2937_v38  ;;  %v8961_v44 = vand.u32 4294901760, %v8960_v18 }
 0x7da   :  { %13035 = vmatprep.subr.bf16.mxu1 %v16621_v1 }
 0x7dd   :  { %13037 = vmatpush3.bf16.msra.mxu1 %v16621_v1  ;;  %v17162_v1 = vpack.c.bf16 %v8860_v48, %v8856_v59  ;;  %v8966_v59 = vsub.f32 %v18479_v27, %v17995_v23  ;;  %v18002_v23 = vand.u32 4294901760, %v18489_v31 }
 0x7de   :  { %13039 = vmatprep.subr.bf16.mxu1 %v18436_v34 }
 0x7df   :  { %18473 = vst [vmem:[#allocation48_spill] sm:$0xff] %v17162_v1  ;;  %13075 = vmatprep.subr.bf16.mxu0 %v17162_v1  ;;  %v8967_v13 = vand.u32 4294901760, %v8966_v59 }
 0x7e1   :  { %13041 = vmatpush3.bf16.msra.mxu1 %v18436_v34  ;;  %v2942_v34 = vld [vmem:[%s17683_s3 + $0x240] sm:$0xff] }
 0x7e2   :  { %13043 = vmatprep.subr.bf16.mxu1 %v18438_v15  ;;  %v8874_v45 = vand.u32 4294901760, %v2942_v34 }
 0x7e4   :  { %v17228_v42 = vsub.f32 %v2942_v34, %v8874_v45  ;;  %v17230_v55 = vpack.c.bf16 %v8878_v10, %v8874_v45  ;;  %v18487_v45 = vld [vmem:[#allocation54_spill] sm:$0xff] }
 0x7e5   :  { %13045 = vmatpush3.bf16.msra.mxu1 %v18438_v15  ;;  %v17999_v10 = vand.u32 4294901760, %v18487_v45 }
 0x7e6   :  { %13047 = vmatprep.subr.bf16.mxu1 %v16682_v39  ;;  %18481 = vst [vmem:[#allocation39_spill] sm:$0xff] %v17230_v55 }
 0x7e9   :  { %13049 = vmatpush3.bf16.msra.mxu1 %v16682_v39  ;;  %v17166_v39 = vsub.f32 %v2937_v38, %v8860_v48  ;;  %v8972_v38 = vsub.f32 %v18478_v9, %v17996_v43  ;;  %v18482_v48 = vld [vmem:[#allocation31_spill] sm:$0xff] }
 0x7ea   :  { %13051 = vmatprep.subr.bf16.mxu1 %v16699_v30 }
 0x7eb   :  { %v8973_v6 = vand.u32 4294901760, %v8972_v38 }
 0x7ed   :  { %13053 = vmatpush3.bf16.msra.mxu1 %v16699_v30  ;;  %v2936_v30 = vld [vmem:[%s17683_s3 + $0x1c8] sm:$0xff]  ;;  %v13086_v40 = vpack.c.bf16 %v8973_v6, %v8961_v44  ;;  %v9003_v44 = vand.u32 4294901760, %v9002_v63  ;;  %v9008_v6 = vsub.f32 %v18487_v45, %v17999_v10  ;;  %v18491_v63 = vld [vmem:[#allocation24_spill] sm:$0xff] }
 0x7ee   :  { %v8862_v35 = vand.u32 4294901760, %v2936_v30  ;;  %v18016_v10 = vand.u32 4294901760, %v18491_v63 }
 0x7f0   :  { %11996 = vmatmul.mubr.f32.vlgmr.msra.gmra.mrb[108].mxu1 %v16555_v21  ;;  %v2934_v21 = vld [vmem:[%s17683_s3 + $0x1a0] sm:$0xff]  ;;  %v17200_v47 = vsub.f32 %v2936_v30, %v8862_v35  ;;  %v18483_v30 = vld [vmem:[#allocation20_spill] sm:$0xff] }
 0x7f1   :  { %v8858_v32 = vand.u32 4294901760, %v2934_v21  ;;  %v17991_v60 = vand.u32 4294901760, %v18483_v30 }
 0x7f3   :  { %v17196_v19 = vpack.c.bf16 %v8862_v35, %v8858_v32  ;;  %v17198_v15 = vsub.f32 %v2934_v21, %v8858_v32  ;;  %v17992_v21 = vand.u32 4294901760, %v18482_v48  ;;  %v18484_v32 = vld [vmem:[#allocation33_spill] sm:$0xff]  ;;  %v8984_v22 = vsub.f32 %v18483_v30, %v17991_v60  ;;  %v18488_v60 = vld [vmem:[#allocation43_spill] sm:$0xff] }
 0x7f4   :  { %v17993_v35 = vand.u32 4294901760, %v18484_v32 }
 0x7f5   :  { %18474 = vst [vmem:[#allocation13_spill] sm:$0xff] %v17196_v19  ;;  %13077 = vmatpush1.bf16.msra.mxu0 %v17196_v19  ;;  %v8978_v2 = vsub.f32 %v18482_v48, %v17992_v21  ;;  %v8985_v38 = vand.u32 4294901760, %v8984_v22  ;;  %v18003_v21 = vand.u32 4294901760, %v18488_v60  ;;  %v18490_v22 = vld [vmem:[#allocation23_spill] sm:$0xff]  ;;  %v18017_v19 = vand.u32 4294901760, %v16963_v62 }
 0x7f6   :  { %13079 = vmatprep.subr.bf16.mxu0 %v17207_v0  ;;  %v8996_v34 = vsub.f32 %v18484_v32, %v17993_v35  ;;  %v8991_v35 = vand.u32 4294901760, %v8990_v8  ;;  %v9014_v8 = vsub.f32 %v18489_v31, %v18002_v23 }
 0x7f7   :  { %v8979_v18 = vand.u32 4294901760, %v8978_v2  ;;  %v9020_v2 = vsub.f32 %v18488_v60, %v18003_v21 }
 0x7f8   :  { %v8997_v59 = vand.u32 4294901760, %v8996_v34  ;;  %v18006_v34 = vand.u32 4294901760, %v18490_v22  ;;  %v17280_v14 = vpack.c.bf16 %v9003_v44, %v8991_v35  ;;  %v9032_v35 = vsub.f32 %v18491_v63, %v18016_v10 }
 0x7f9   :  { %13081 = vmatpush1.bf16.msra.mxu0 %v17211_v36  ;;  %v17272_v43 = vpack.c.bf16 %v8979_v18, %v8967_v13  ;;  %v18015_v18 = vand.u32 4294901760, %v16945_v28 }
 0x7fa   :  { %13083 = vmatprep.subr.bf16.mxu0 %v17222_v61  ;;  %v17274_v12 = vpack.c.bf16 %v8997_v59, %v8985_v38  ;;  %v9026_v13 = vsub.f32 %v18490_v22, %v18006_v34  ;;  %v9015_v38 = vand.u32 4294901760, %v9014_v8  ;;  %v9033_v23 = vand.u32 4294901760, %v9032_v35  ;;  %v18492_v34 = vld [vmem:[#allocation26_spill] sm:$0xff]  ;;  %v18493_v8 = vld [vmem:[#allocation21_spill] sm:$0xff] }
 0x7fb   :  { %v18013_v36 = vand.u32 4294901760, %v18492_v34  ;;  %v18014_v0 = vand.u32 4294901760, %v18493_v8 }
 0x7fc   :  { %v9027_v44 = vand.u32 4294901760, %v9026_v13  ;;  %v18032_v13 = vand.u32 4294901760, %v16979_v25 }
 0x7fd   :  { %13085 = vmatpush1.bf16.msra.mxu0 %v17230_v55  ;;  %v9021_v55 = vand.u32 4294901760, %v9020_v2 }
 0x7fe   :  { %13087 = vmatprep.subr.bf16.mxu0 %v13086_v40  ;;  %v9009_v40 = vand.u32 4294901760, %v9008_v6  ;;  %v9044_v6 = vsub.f32 %v16945_v28, %v18015_v18  ;;  %v17298_v2 = vpack.c.bf16 %v9027_v44, %v9015_v38  ;;  %v9038_v38 = vsub.f32 %v18492_v34, %v18013_v36 }
 0x7ff   :  { %v9056_v44 = vsub.f32 %v16963_v62, %v18017_v19  ;;  %v18494_v19 = vand.u32 4294901760, %v17166_v39 }
 0x800   :  { %v17293_v59 = vpack.c.bf16 %v9021_v55, %v9009_v40  ;;  %v9045_v21 = vand.u32 4294901760, %v9044_v6  ;;  %v18022_v55 = vand.u32 4294901760, %v16969_v7  ;;  %v18029_v40 = vand.u32 4294901760, %v16974_v17 }
 0x801   :  { %v9039_v18 = vand.u32 4294901760, %v9038_v38  ;;  %v9092_v1 = vsub.f32 %v17166_v39, %v18494_v19  ;;  %v9057_v52 = vand.u32 4294901760, %v9056_v44 }
 0x802   :  { %v17300_v61 = vpack.c.bf16 %v9045_v21, %v9033_v23  ;;  %v9050_v23 = vsub.f32 %v18493_v8, %v18014_v0  ;;  %v18033_v21 = vand.u32 4294901760, %v17164_v50  ;;  %v9068_v6 = vsub.f32 %v16969_v7, %v18022_v55 }
 0x803   :  { %v9062_v36 = vsub.f32 %v16974_v17, %v18029_v40  ;;  %v9074_v0 = vsub.f32 %v16979_v25, %v18032_v13  ;;  %v9093_v24 = vand.u32 4294901760, %v9092_v1  ;;  %v18042_v13 = vand.u32 4294901760, %v17198_v15 }
 0x804   :  { %v9051_v10 = vand.u32 4294901760, %v9050_v23  ;;  %v9080_v35 = vsub.f32 %v17164_v50, %v18033_v21  ;;  %v9069_v55 = vand.u32 4294901760, %v9068_v6  ;;  %v18041_v21 = vand.u32 4294901760, %v17200_v47 }
 0x805   :  { %v9063_v5 = vand.u32 4294901760, %v9062_v36  ;;  %v9075_v41 = vand.u32 4294901760, %v9074_v0  ;;  %v9086_v19 = vsub.f32 %v17198_v15, %v18042_v13  ;;  %v18039_v0 = vand.u32 4294901760, %v17209_v57 }
 0x806   :  { %v17334_v26 = vpack.c.bf16 %v9051_v10, %v9039_v18  ;;  %v9081_v40 = vand.u32 4294901760, %v9080_v35  ;;  %v17337_v38 = vpack.c.bf16 %v9069_v55, %v9057_v52  ;;  %v18040_v1 = vand.u32 4294901760, %v17213_v16 }
 0x807   :  { %v17339_v23 = vpack.c.bf16 %v9075_v41, %v9063_v5  ;;  %v9098_v52 = vsub.f32 %v17200_v47, %v18041_v21  ;;  %v9104_v41 = vsub.f32 %v17202_v20, %v18038_v33  ;;  %v18047_v5 = vand.u32 4294901760, %v17216_v54 }
 0x808   :  { %v17343_v49 = vpack.c.bf16 %v9093_v24, %v9081_v40  ;;  %v18051_v24 = vand.u32 4294901760, %v17224_v58  ;;  %v9087_v36 = vand.u32 4294901760, %v9086_v19  ;;  %v9116_v10 = vsub.f32 %v17209_v57, %v18039_v0 }
 0x809   :  { %v9110_v18 = vsub.f32 %v17213_v16, %v18040_v1  ;;  %v18048_v55 = vand.u32 4294901760, %v17226_v29  ;;  %v9099_v40 = vand.u32 4294901760, %v9098_v52  ;;  %v9105_v35 = vand.u32 4294901760, %v9104_v41 }
 0x80a   :  { %v9122_v44 = vsub.f32 %v17216_v54, %v18047_v5  ;;  %v9128_v6 = vsub.f32 %v17224_v58, %v18051_v24  ;;  %v9117_v19 = vand.u32 4294901760, %v9116_v10  ;;  %v18050_v1 = vand.u32 4294901760, %v17228_v42 }
 0x80b   :  { %v9111_v33 = vand.u32 4294901760, %v9110_v18  ;;  %v9140_v0 = vsub.f32 %v17226_v29, %v18048_v55  ;;  %v13108_v21 = vpack.c.bf16 %v9099_v40, %v9087_v36  ;;  %v18049_v41 = vand.u32 4294901760, %v17232_v53 }
 0x80c   :  { %v9123_v13 = vand.u32 4294901760, %v9122_v44  ;;  %v9129_v52 = vand.u32 4294901760, %v9128_v6  ;;  %v13110_v11 = vpack.c.bf16 %v9117_v19, %v9105_v35  ;;  %v9134_v5 = vsub.f32 %v17228_v42, %v18050_v1 }
 0x80d   :  { %v9141_v51 = vand.u32 4294901760, %v9140_v0  ;;  %v13118_v10 = vpack.c.bf16 %v18478_v9, %v18477_v37  ;;  %v9146_v55 = vsub.f32 %v17232_v53, %v18049_v41  ;;  %v13120_v36 = vpack.c.bf16 %v18482_v48, %v18479_v27 }
 0x80e   :  { %v13112_v18 = vpack.c.bf16 %v9123_v13, %v9111_v33  ;;  %v9135_v44 = vand.u32 4294901760, %v9134_v5  ;;  %v13122_v0 = vpack.c.bf16 %v18484_v32, %v18483_v30  ;;  %v13124_v19 = vpack.c.bf16 %v18486_v56, %v18485_v4 }
 0x80f   :  { %v13114_v40 = vpack.c.bf16 %v9141_v51, %v9129_v52  ;;  %v9147_v35 = vand.u32 4294901760, %v9146_v55 }
 0x811   :  { %v13116_v6 = vpack.c.bf16 %v9147_v35, %v9135_v44 }
 0x895   :  { %v11787_v51 = vpop.f32.mrb[96].mxu0 }
 0x896   :  { %v17414_v55 = vand.u32 4294901760, %v11787_v51  ;;  %v8122_v41 = vpop.f32.mrb[97].mxu0 }
 0x897   :  { %v17416_v52 = vand.u32 4294901760, %v8122_v41 }
 0x898   :  { %v17419_v44 = vsub.f32 %v11787_v51, %v17414_v55  ;;  %v18504_v51 = vpack.c.bf16 %v17216_v54, %v17213_v16 }
 0x899   :  { %v17422_v35 = vsub.f32 %v8122_v41, %v17416_v52 }
 0x89a   :  { %v18054_v1 = vand.u32 4294901760, %v17419_v44 }
 0x89b   :  { %v18055_v13 = vand.u32 4294901760, %v17422_v35 }
 0x89c   :  { %v8927_v33 = vsub.f32 %v17419_v44, %v18054_v1 }
 0x89d   :  { %v8916_v5 = vsub.f32 %v17422_v35, %v18055_v13  ;;  %v18526_v13 = vand.u32 4294901760, %v18483_v30 }
 0x89e   :  { %v8928_v41 = vand.u32 4294901760, %v8927_v33  ;;  %v18503_v33 = vpack.c.bf16 %v17209_v57, %v17202_v20 }
 0x89f   :  { %v8917_v24 = vand.u32 4294901760, %v8916_v5  ;;  %v18505_v5 = vpack.c.bf16 %v17226_v29, %v17224_v58 }
 0x8a1   :  { %8918 = vmatmul.mubr.f32.vlgmr.msra.gmra.mrb[0].mxu0 %v8917_v24  ;;  %v18495_v24 = vpack.c.bf16 %v18488_v60, %v18487_v45 }
 0x8a2   :  { %8923 = vmatprep.mubr.f32.mxu0 %v18454_v46  ;;  %13089 = vmatpush1.bf16.msra.mxu0 %v17272_v43 }
 0x8a3   :  { %13091 = vmatprep.subr.bf16.mxu0 %v17274_v12 }
 0x8a5   :  { %8929 = vmatmul.mubr.f32.gmra.mrb[2].mxu0 %v8928_v41  ;;  %v18506_v41 = vpack.c.bf16 %v17232_v53, %v17228_v42 }
 0x8a6   :  { %13093 = vmatpush1.bf16.msra.mxu0 %v17280_v14  ;;  %8934 = vmatprep.mubr.f32.mxu0 %v18454_v46 }
 0x8a7   :  { %13095 = vmatprep.subr.bf16.mxu0 %v17293_v59 }
 0x8aa   :  { %13097 = vmatpush1.bf16.msra.mxu0 %v17298_v2 }
 0x8ab   :  { %13099 = vmatprep.subr.bf16.mxu0 %v17300_v61 }
 0x8ae   :  { %13101 = vmatpush1.bf16.msra.mxu0 %v17334_v26 }
 0x8af   :  { %13103 = vmatprep.subr.bf16.mxu0 %v17337_v38 }
 0x8b2   :  { %13105 = vmatpush1.bf16.msra.mxu0 %v17339_v23 }
 0x8b3   :  { %13107 = vmatprep.subr.bf16.mxu0 %v17343_v49 }
 0x8b6   :  { %13109 = vmatpush1.bf16.msra.mxu0 %v13108_v21 }
 0x8b7   :  { %13111 = vmatprep.subr.bf16.mxu0 %v13110_v11 }
 0x8ba   :  { %13113 = vmatpush1.bf16.msra.mxu0 %v13112_v18  ;;  %v18497_v18 = vpack.c.bf16 %v16945_v28, %v18491_v63 }
 0x8bb   :  { %13115 = vmatprep.subr.bf16.mxu0 %v13114_v40  ;;  %v18499_v40 = vpack.c.bf16 %v16969_v7, %v16963_v62 }
 0x8be   :  { %13117 = vmatpush1.bf16.msra.mxu0 %v13116_v6  ;;  %v18501_v6 = vpack.c.bf16 %v17166_v39, %v17164_v50 }
 0x8bf   :  { %13119 = vmatprep.subr.bf16.mxu0 %v13118_v10  ;;  %v18496_v10 = vpack.c.bf16 %v18490_v22, %v18489_v31 }
 0x8c3   :  { %v11997_v14 = vpop.f32.mrb[108].mxu1 }
 0x8c4   :  { %v17444_v43 = vand.u32 4294901760, %v11997_v14  ;;  %v8806_v12 = vpop.f32.mrb[109].mxu1 }
 0x8c5   :  { %v17446_v59 = vand.u32 4294901760, %v8806_v12 }
 0x8c6   :  { %v17449_v26 = vsub.f32 %v11997_v14, %v17444_v43  ;;  %v18507_v14 = vld [vmem:[#allocation11_spill] sm:$0xff] }
 0x8c7   :  { %v17452_v61 = vsub.f32 %v8806_v12, %v17446_v59  ;;  %v18508_v12 = vld [vmem:[#allocation38_spill] sm:$0xff] }
 0x8c8   :  { %v18052_v49 = vand.u32 4294901760, %v17449_v26 }
 0x8c9   :  { %v18053_v11 = vand.u32 4294901760, %v17452_v61 }
 0x8ca   :  { %v8949_v38 = vsub.f32 %v17449_v26, %v18052_v49  ;;  %v18524_v49 = vand.u32 4294901760, %v18479_v27 }
 0x8cb   :  { %v8938_v2 = vsub.f32 %v17452_v61, %v18053_v11  ;;  %v18525_v11 = vand.u32 4294901760, %v18482_v48  ;;  %v18531_v48 = vand.u32 4294901760, %v18487_v45 }
 0x8cc   :  { %v8950_v23 = vand.u32 4294901760, %v8949_v38  ;;  %v18511_v38 = vld [vmem:[#allocation36_spill] sm:$0xff] }
 0x8cd   :  { %v8939_v21 = vand.u32 4294901760, %v8938_v2  ;;  %v18509_v2 = vld [vmem:[#allocation17_spill] sm:$0xff]  ;;  %v13184_v1 = vpack.c.bf16 %v18525_v11, %v18524_v49  ;;  %v18532_v49 = vand.u32 4294901760, %v18488_v60  ;;  %v18538_v60 = vand.u32 4294901760, %v17452_v61 }
 0x8ce   :  { %v18540_v11 = vand.u32 4294901760, %v18493_v8 }
 0x8cf   :  { %8940 = vmatmul.mubr.f32.gmra.mrb[4].mxu0 %v8939_v21  ;;  %v18510_v21 = vld [vmem:[#allocation10_spill] sm:$0xff]  ;;  %v13190_v30 = vpack.c.bf16 %v18532_v49, %v18531_v48 }
 0x8d0   :  { %8945 = vmatprep.mubr.f32.mxu0 %v18454_v46 }
 0x8d3   :  { %8951 = vmatmul.mubr.f32.gmra.mrb[6].mxu0 %v8950_v23  ;;  %v18512_v23 = vld [vmem:[#allocation22_spill] sm:$0xff] }
 0x8d4   :  { %9181 = vmatprep.mubr.f32.mxu0 %v18454_v46 }
 0x8d7   :  { %9183 = vmatmul.mubr.f32.vlgmr.msra.gmra.mrb[0].mxu0 %v17416_v52 }
 0x8d8   :  { %13121 = vmatpush1.bf16.msra.mxu0 %v13120_v36  ;;  %9188 = vmatprep.mubr.f32.mxu0 %v18454_v46  ;;  %v18498_v36 = vpack.c.bf16 %v18493_v8, %v18492_v34  ;;  %v18547_v8 = vand.u32 4294901760, %v17166_v39  ;;  %v18554_v39 = vand.u32 4294901760, %v17224_v58  ;;  %v18561_v58 = vld [vmem:[#allocation12_spill] sm:$0xff] }
 0x8d9   :  { %13123 = vmatprep.subr.bf16.mxu0 %v13122_v0  ;;  %v18500_v0 = vpack.c.bf16 %v16979_v25, %v16974_v17 }
 0x8db   :  { %9190 = vmatmul.mubr.f32.gmra.mrb[2].mxu0 %v17414_v55 }
 0x8dc   :  { %13125 = vmatpush1.bf16.msra.mxu0 %v13124_v19  ;;  %9195 = vmatprep.mubr.f32.mxu0 %v18454_v46  ;;  %v18502_v19 = vpack.c.bf16 %v17200_v47, %v17198_v15 }
 0x8dd   :  { %13127 = vmatprep.subr.bf16.mxu0 %v18495_v24  ;;  %v18513_v24 = vld [vmem:[#allocation40_spill] sm:$0xff] }
 0x8df   :  { %9197 = vmatmul.mubr.f32.gmra.mrb[4].mxu0 %v17446_v59 }
 0x8e0   :  { %13129 = vmatpush1.bf16.msra.mxu0 %v18496_v10  ;;  %9202 = vmatprep.mubr.f32.mxu0 %v18454_v46  ;;  %v18514_v10 = vld [vmem:[#allocation44_spill] sm:$0xff] }
 0x8e1   :  { %13131 = vmatprep.subr.bf16.mxu0 %v18497_v18  ;;  %v18515_v18 = vld [vmem:[#allocation32_spill] sm:$0xff] }
 0x8e3   :  { %9204 = vmatmul.mubr.f32.gmra.mrb[6].mxu0 %v17444_v43 }
 0x8e4   :  { %13133 = vmatpush1.bf16.msra.mxu0 %v18498_v36  ;;  %9338 = vmatprep.mubr.f32.mxu0 %v18454_v46  ;;  %v18516_v36 = vld [vmem:[#allocation48_spill] sm:$0xff] }
 0x8e5   :  { %13135 = vmatprep.subr.bf16.mxu0 %v18499_v40  ;;  %v18517_v40 = vld [vmem:[#allocation13_spill] sm:$0xff] }
 0x8e8   :  { %13137 = vmatpush1.bf16.msra.mxu0 %v18500_v0  ;;  %v18518_v0 = vld [vmem:[#allocation5_spill] sm:$0xff] }
 0x8e9   :  { %13139 = vmatprep.subr.bf16.mxu0 %v18501_v6  ;;  %v18519_v6 = vld [vmem:[#allocation14_spill] sm:$0xff] }
 0x8ec   :  { %13141 = vmatpush1.bf16.msra.mxu0 %v18502_v19  ;;  %v18520_v19 = vld [vmem:[#allocation41_spill] sm:$0xff] }
 0x8ed   :  { %13143 = vmatprep.subr.bf16.mxu0 %v18503_v33  ;;  %v18521_v33 = vand.u32 4294901760, %v18477_v37  ;;  %v18529_v37 = vand.u32 4294901760, %v18485_v4 }
 0x8f0   :  { %13145 = vmatpush1.bf16.msra.mxu0 %v18504_v51  ;;  %v18522_v51 = vand.u32 4294901760, %v18478_v9  ;;  %v18530_v9 = vand.u32 4294901760, %v18486_v56  ;;  %v18536_v56 = vand.u32 4294901760, %v18491_v63 }
 0x8f1   :  { %13147 = vmatprep.subr.bf16.mxu0 %v18505_v5 }
 0x8f2   :  { %v13182_v5 = vpack.c.bf16 %v18522_v51, %v18521_v33  ;;  %v13188_v27 = vpack.c.bf16 %v18530_v9, %v18529_v37 }
 0x8f4   :  { %13149 = vmatpush1.bf16.msra.mxu0 %v18506_v41  ;;  %v18523_v41 = vld [vmem:[#allocation39_spill] sm:$0xff] }
 0x8f5   :  { %13151 = vmatprep.subr.bf16.mxu0 %v17059_v3 }
 0x8f7   :  { %9341 = vmatmul.mubr.f32.vlgmr.msra.gmra.mrb[0].mxu0 %v17422_v35 }
 0x8f8   :  { %13153 = vmatpush1.bf16.msra.mxu0 %v18507_v14  ;;  %9346 = vmatprep.mubr.f32.mxu0 %v18454_v46 }
 0x8f9   :  { %13155 = vmatprep.subr.bf16.mxu0 %v18508_v12 }
 0x8fb   :  { %9349 = vmatmul.mubr.f32.gmra.mrb[2].mxu0 %v17419_v44 }
 0x8fc   :  { %13157 = vmatpush1.bf16.msra.mxu0 %v18509_v2  ;;  %9354 = vmatprep.mubr.f32.mxu0 %v18454_v46 }
 0x8fd   :  { %13159 = vmatprep.subr.bf16.mxu0 %v18510_v21 }
 0x8ff   :  { %9357 = vmatmul.mubr.f32.gmra.mrb[4].mxu0 %v17452_v61  ;;  %v18544_v61 = vand.u32 4294901760, %v16974_v17  ;;  %v18550_v17 = vand.u32 4294901760, %v17202_v20  ;;  %v18557_v20 = vand.u32 4294901760, %v17232_v53  ;;  %v18562_v53 = vld [vmem:[#allocation25_spill] sm:$0xff] }
 0x900   :  { %13161 = vmatpush1.bf16.msra.mxu0 %v18511_v38  ;;  %9362 = vmatprep.mubr.f32.mxu0 %v18454_v46 }
 0x901   :  { %13163 = vmatprep.subr.bf16.mxu0 %v18512_v23 }
 0x903   :  { %9365 = vmatmul.mubr.f32.gmra.mrb[6].mxu0 %v17449_v26 }
 0x904   :  { %13165 = vmatpush1.bf16.msra.mxu0 %v18513_v24  ;;  %9467 = vmatprep.mubr.f32.mxu0 %v18454_v46 }
 0x905   :  { %13167 = vmatprep.subr.bf16.mxu0 %v18514_v10 }
 0x908   :  { %13169 = vmatpush1.bf16.msra.mxu0 %v18515_v18 }
 0x909   :  { %13171 = vmatprep.subr.bf16.mxu0 %v18516_v36 }
 0x90c   :  { %13173 = vmatpush1.bf16.msra.mxu0 %v18517_v40 }
 0x90d   :  { %13175 = vmatprep.subr.bf16.mxu0 %v18518_v0  ;;  %v18527_v0 = vand.u32 4294901760, %v18484_v32  ;;  %v18533_v32 = vand.u32 4294901760, %v17419_v44  ;;  %v18539_v44 = vand.u32 4294901760, %v18492_v34  ;;  %v18546_v34 = vand.u32 4294901760, %v17164_v50 }
 0x90e   :  { %v18553_v50 = vand.u32 4294901760, %v17216_v54 }
 0x910   :  { %13177 = vmatpush1.bf16.msra.mxu0 %v18519_v6  ;;  %v13186_v6 = vpack.c.bf16 %v18527_v0, %v18526_v13  ;;  %v18535_v13 = vand.u32 4294901760, %v18490_v22  ;;  %v18541_v22 = vand.u32 4294901760, %v16963_v62  ;;  %v18542_v0 = vand.u32 4294901760, %v16969_v7 }
 0x911   :  { %13179 = vmatprep.subr.bf16.mxu0 %v18520_v19  ;;  %v18528_v19 = vand.u32 4294901760, %v17422_v35  ;;  %v18537_v35 = vand.u32 4294901760, %v16945_v28  ;;  %v18543_v28 = vand.u32 4294901760, %v17449_v26  ;;  %v13202_v62 = vpack.c.bf16 %v18547_v8, %v18546_v34 }
 0x912   :  { %v13198_v63 = vpack.c.bf16 %v18542_v0, %v18541_v22  ;;  %v18548_v7 = vand.u32 4294901760, %v17198_v15  ;;  %v18549_v26 = vand.u32 4294901760, %v17200_v47  ;;  %v18555_v15 = vand.u32 4294901760, %v17226_v29 }
 0x913   :  { %v13194_v45 = vpack.c.bf16 %v18537_v35, %v18536_v56  ;;  %v18556_v47 = vand.u32 4294901760, %v17228_v42 }
 0x914   :  { %13181 = vmatpush1.bf16.msra.mxu0 %v18523_v41  ;;  %v13204_v33 = vpack.c.bf16 %v18549_v26, %v18548_v7  ;;  %v13210_v9 = vpack.c.bf16 %v18555_v15, %v18554_v39 }
 0x915   :  { %13183 = vmatprep.subr.bf16.mxu0 %v13182_v5  ;;  %v18552_v5 = vand.u32 4294901760, %v17213_v16  ;;  %v18560_v16 = vld [vmem:[#allocation41_spill] sm:$0xff] }
 0x917   :  { %9471 = vmatmul.mubr.f32.vlgmr.msra.gmra.mrb[0].mxu0 %v18528_v19  ;;  %v13208_v37 = vpack.c.bf16 %v18553_v50, %v18552_v5 }
 0x918   :  { %13185 = vmatpush1.bf16.msra.mxu0 %v13184_v1  ;;  %9476 = vmatprep.mubr.f32.mxu0 %v18454_v46  ;;  %v18534_v1 = vand.u32 4294901760, %v18489_v31  ;;  %v13196_v31 = vpack.c.bf16 %v18540_v11, %v18539_v44 }
 0x919   :  { %13187 = vmatprep.subr.bf16.mxu0 %v13186_v6  ;;  %v18545_v6 = vand.u32 4294901760, %v16979_v25  ;;  %v18551_v25 = vand.u32 4294901760, %v17209_v57  ;;  %v18559_v57 = vld [vmem:[#allocation14_spill] sm:$0xff] }
 0x91a   :  { %v13192_v4 = vpack.c.bf16 %v18535_v13, %v18534_v1 }
 0x91b   :  { %9480 = vmatmul.mubr.f32.gmra.mrb[2].mxu0 %v18533_v32  ;;  %v13200_v19 = vpack.c.bf16 %v18545_v6, %v18544_v61  ;;  %v13206_v51 = vpack.c.bf16 %v18551_v25, %v18550_v17  ;;  %v18567_v32 = vld [vmem:[#allocation53_spill] sm:$0xff] }
 0x91c   :  { %13189 = vmatpush1.bf16.msra.mxu0 %v13188_v27  ;;  %9485 = vmatprep.mubr.f32.mxu0 %v18454_v46  ;;  %v13212_v27 = vpack.c.bf16 %v18557_v20, %v18556_v47 }
 0x91d   :  { %13191 = vmatprep.subr.bf16.mxu0 %v13190_v30 }
 0x91f   :  { %9489 = vmatmul.mubr.f32.gmra.mrb[4].mxu0 %v18538_v60 }
 0x920   :  { %13193 = vmatpush1.bf16.msra.mxu0 %v13192_v4  ;;  %9494 = vmatprep.mubr.f32.mxu0 %v18454_v46  ;;  %v18568_v4 = vld [vmem:[#allocation55_spill] sm:$0xff] }
 0x921   :  { %13195 = vmatprep.subr.bf16.mxu0 %v13194_v45 }
 0x923   :  { %9498 = vmatmul.mubr.f32.gmra.mrb[6].mxu0 %v18543_v28 }
 0x924   :  { %13197 = vmatpush1.bf16.msra.mxu0 %v13196_v31  ;;  %9664 = vmatprep.mubr.f32.mxu0 %v18454_v46 }
 0x925   :  { %13199 = vmatprep.subr.bf16.mxu0 %v13198_v63 }
 0x928   :  { %13201 = vmatpush1.bf16.msra.mxu0 %v13200_v19 }
 0x929   :  { %13203 = vmatprep.subr.bf16.mxu0 %v13202_v62 }
 0x92c   :  { %13205 = vmatpush1.bf16.msra.mxu0 %v13204_v33 }
 0x92d   :  { %13207 = vmatprep.subr.bf16.mxu0 %v13206_v51 }
 0x930   :  { %13209 = vmatpush1.bf16.msra.mxu0 %v13208_v37 }
 0x931   :  { %13211 = vmatprep.subr.bf16.mxu0 %v13210_v9 }
 0x934   :  { %13213 = vmatpush1.bf16.msra.mxu0 %v13212_v27 }
 0x935   :  { %13215 = vmatprep.subr.bf16.mxu0 %v17059_v3  ;;  %v18558_v3 = vld [vmem:[#allocation5_spill] sm:$0xff] }
 0x937   :  { %9666 = vmatmul.mubr.f32.vlgmr.msra.gmra.mrb[0].mxu0 %v17416_v52 }
 0x938   :  { %13217 = vmatpush1.bf16.msra.mxu0 %v18507_v14  ;;  %9671 = vmatprep.mubr.f32.mxu0 %v18454_v46 }
 0x939   :  { %13219 = vmatprep.subr.bf16.mxu0 %v18508_v12 }
 0x93b   :  { %9673 = vmatmul.mubr.f32.gmra.mrb[2].mxu0 %v17414_v55 }
 0x93c   :  { %13221 = vmatpush1.bf16.msra.mxu0 %v18509_v2  ;;  %9678 = vmatprep.mubr.f32.mxu0 %v18454_v46 }
 0x93d   :  { %13223 = vmatprep.subr.bf16.mxu0 %v18510_v21 }
 0x93f   :  { %9680 = vmatmul.mubr.f32.gmra.mrb[4].mxu0 %v17446_v59 }
 0x940   :  { %13225 = vmatpush1.bf16.msra.mxu0 %v18511_v38  ;;  %9685 = vmatprep.mubr.f32.mxu0 %v18454_v46 }
 0x941   :  { %13227 = vmatprep.subr.bf16.mxu0 %v18512_v23 }
 0x943   :  { %9687 = vmatmul.mubr.f32.gmra.mrb[6].mxu0 %v17444_v43 }
 0x944   :  { %13229 = vmatpush1.bf16.msra.mxu0 %v18513_v24  ;;  %9789 = vmatprep.mubr.f32.mxu0 %v18454_v46 }
 0x945   :  { %13231 = vmatprep.subr.bf16.mxu0 %v18514_v10  ;;  %v18565_v10 = vld [vmem:[#allocation42_spill] sm:$0xff] }
 0x948   :  { %13233 = vmatpush1.bf16.msra.mxu0 %v18515_v18 }
 0x949   :  { %13235 = vmatprep.subr.bf16.mxu0 %v18516_v36 }
 0x94c   :  { %13237 = vmatpush1.bf16.msra.mxu0 %v18517_v40  ;;  %v18566_v40 = vld [vmem:[#allocation51_spill] sm:$0xff] }
 0x94d   :  { %13239 = vmatprep.subr.bf16.mxu0 %v18558_v3 }
 0x950   :  { %13241 = vmatpush1.bf16.msra.mxu0 %v18559_v57 }
 0x951   :  { %13243 = vmatprep.subr.bf16.mxu0 %v18560_v16 }
 0x954   :  { %13245 = vmatpush1.bf16.msra.mxu0 %v18523_v41 }
 0x957   :  { %9791 = vmatmul.mubr.f32.vlgmr.msra.gmra.mrb[0].mxu0 %v17416_v52 }
 0x958   :  { %9796 = vmatprep.mubr.f32.mxu0 %v18454_v46 }
 0x95b   :  { %9798 = vmatmul.mubr.f32.gmra.mrb[2].mxu0 %v17414_v55  ;;  %v18563_v55 = vld [vmem:[#allocation18_spill] sm:$0xff] }
 0x95c   :  { %9803 = vmatprep.mubr.f32.mxu0 %v18454_v46 }
 0x95f   :  { %9805 = vmatmul.mubr.f32.gmra.mrb[4].mxu0 %v17446_v59 }
 0x960   :  { %9810 = vmatprep.mubr.f32.mxu0 %v18454_v46  ;;  %v18564_v46 = vld [vmem:[#allocation45_spill] sm:$0xff] }
 0x963   :  { %9812 = vmatmul.mubr.f32.gmra.mrb[6].mxu0 %v17444_v43 }
 0xa2a   :  { %v9792_v54 = vpop.f32.mrb[0].mxu0 }
 0xa2b   :  { %v13250_v29 = vadd.f32 %v9792_v54, %v18561_v58  ;;  %v9794_v42 = vpop.f32.mrb[1].mxu0 }
 0xa2c   :  { %v13251_v14 = vadd.f32 %v9794_v42, %v18562_v53 }
 0xa2d   :  { %v9818_v12 = vmax.f32 %v13250_v29, 0.0 }
 0xa2e   :  { %v9819_v52 = vmax.f32 %v13251_v14, 0.0  ;;  %v9799_v2 = vpop.f32.mrb[2].mxu0 }
 0xa2f   :  { %9826 = vst [vmem:[%s17685_s5] sm:$0xff] %v9818_v12  ;;  %v13252_v21 = vadd.f32 %v9799_v2, %v18563_v55  ;;  %v9801_v59 = vpop.f32.mrb[3].mxu0 }
 0xa30   :  { %9827 = vst [vmem:[%s17685_s5 + $0x8] sm:$0xff] %v9819_v52  ;;  %v13253_v43 = vadd.f32 %v9801_v59, %v18564_v46 }
 0xa31   :  { %v9820_v38 = vmax.f32 %v13252_v21, 0.0 }
 0xa32   :  { %v9821_v23 = vmax.f32 %v13253_v43, 0.0  ;;  %v9806_v24 = vpop.f32.mrb[4].mxu0 }
 0xa33   :  { %9828 = vst [vmem:[%s17685_s5 + $0x10] sm:$0xff] %v9820_v38  ;;  %v13254_v18 = vadd.f32 %v9806_v24, %v18565_v10  ;;  %v9808_v36 = vpop.f32.mrb[5].mxu0 }
 0xa34   :  { %9829 = vst [vmem:[%s17685_s5 + $0x18] sm:$0xff] %v9821_v23  ;;  %v13255_v41 = vadd.f32 %v9808_v36, %v18566_v40 }
 0xa35   :  { %v9822_v48 = vmax.f32 %v13254_v18, 0.0 }
 0xa36   :  { %v9823_v49 = vmax.f32 %v13255_v41, 0.0  ;;  %v9813_v30 = vpop.f32.mrb[6].mxu0 }
 0xa37   :  { %9830 = vst [vmem:[%s17685_s5 + $0x20] sm:$0xff] %v9822_v48  ;;  %v13256_v1 = vadd.f32 %v9813_v30, %v18567_v32  ;;  %v9815_v13 = vpop.f32.mrb[7].mxu0 }
 0xa38   :  { %9831 = vst [vmem:[%s17685_s5 + $0x28] sm:$0xff] %v9823_v49  ;;  %v13257_v56 = vadd.f32 %v9815_v13, %v18568_v4 }
 0xa39   :  { %v9824_v35 = vmax.f32 %v13256_v1, 0.0 }
 0xa3a   :  { %v9825_v45 = vmax.f32 %v13257_v56, 0.0 }
 0xa3b   :  { %9832 = vst [vmem:[%s17685_s5 + $0x30] sm:$0xff] %v9824_v35 }
 0xa3c   :  { %9833 = vst [vmem:[%s17685_s5 + $0x38] sm:$0xff] %v9825_v45 }
 0xa3d   :  { %9842 = vsyncpa [#allocation3], 1 }

</bundles_post_ra>
